<compile_context>
chip_gen: v7x
topology: tpu7x:2x2x1
jax: 0.10.0
libtpu: 0.0.40
codegen_flags: <defaults>
</compile_context>

<pallas_src>
import numpy as np
import jax
import jax.numpy as jnp
from jax import lax
from jax.experimental import pallas as pl
from jax.experimental.pallas import tpu as pltpu

HIDDEN = 32
OUTPUT = 10
H_IN, W_IN, C_IN = 208, 144, 3
FC_PAD = 128            # lane-dense padded fc output width (sliced to OUTPUT outside)
QR_PAD = 16             # 13 h-quarter rows padded to 16 (sublane-tile aligned)


# ----------------------------- fused Pallas kernel ---------------------------------- #
def _cnn_kernel(p1_ref, w1_ref, b1_ref, w2_ref, b2_ref, wf_ref, bf_ref, o_ref, qs_ref):
    # p1_ref : (4, 576, 48) bf16   conv1 im2col patches; leading dim = 2x2-pool member,
    #                              rows = pb*144 + qc*16 + qr  (parity-split pooled1 order)
    # w1_ref : (48, 64)   bf16     conv1 weight as matmul matrix (kh,kw,cin) x oc
    # b1_ref : (1, 64)    f32
    # w2_ref : (4, 64, 128) bf16   conv2 weights: [parity pb][ic, arac*32 + oc]
    # b2_ref : (1, 1, 32) f32
    # wf_ref : (24, 32, 128) bf16  fc1 weights per pooled2 position, padded to 128 lanes
    # bf_ref : (1, 128)   f32      fc1 bias, zero padded
    # o_ref  : (1, 128)   f32
    # qs_ref : (9, 16, 128) f32    scratch: conv2 partials regrouped as (qc, qr, arac*32+oc)

    # ---- conv1 + bias + ReLU + 2x2 max-pool (pool = max over member matmuls) ----
    w1 = w1_ref[...]
    y = jnp.dot(p1_ref[0], w1, preferred_element_type=jnp.float32)
    for m in range(1, 4):
        y = jnp.maximum(y, jnp.dot(p1_ref[m], w1, preferred_element_type=jnp.float32))
    pooled1 = jnp.maximum(y + b1_ref[...], 0.0).astype(jnp.bfloat16)       # (576, 64)

    # ---- conv2 (k4, s2), parity-decomposed: 4 matmuls with lane-concatenated outputs ----
    g = jnp.dot(pooled1[0:144, :], w2_ref[0], preferred_element_type=jnp.float32)
    for pb in range(1, 4):
        g = g + jnp.dot(pooled1[pb * 144:(pb + 1) * 144, :], w2_ref[pb],
                        preferred_element_type=jnp.float32)                # (144, 128)

    # restage rows q = qc*16 + qr into a (9, 16, 128) block for shifted-window reads
    for qc in range(9):
        qs_ref[qc] = g[qc * 16:(qc + 1) * 16, :]

    # in-kernel im2col for conv2: 4 statically shifted window adds
    y2 = None
    for ac in range(2):
        blk = qs_ref[ac:ac + 8, :, :]                                      # (8, 16, 128)
        for ar in range(2):
            arac = ar * 2 + ac
            term = blk[:, ar:ar + 12, arac * HIDDEN:(arac + 1) * HIDDEN]   # (ow, oh, oc)
            y2 = term if y2 is None else y2 + term
    y2 = jnp.maximum(y2 + b2_ref[...], 0.0)                                # (8, 12, 32)

    # ---- 2x2 max-pool + fc1 + ReLU, fused into 24 accumulated MXU ops ----
    acc = bf_ref[...]                                                      # (1, 128) f32
    for ph in range(6):
        for pw in range(4):
            blk2 = jnp.maximum(y2[2 * pw, 2 * ph:2 * ph + 2, :],
                               y2[2 * pw + 1, 2 * ph:2 * ph + 2, :])       # (2, 32)
            v = jnp.maximum(blk2[0:1, :], blk2[1:2, :])                    # (1, 32)
            acc = acc + jnp.dot(v.astype(jnp.bfloat16), wf_ref[ph * 4 + pw],
                                preferred_element_type=jnp.float32)
    o_ref[...] = jnp.maximum(acc, 0.0)


# --------------------------- wrapper: pure layout plumbing -------------------------- #
def _prep_inputs(x_hwc, params):
    w1, b1, w2, b2, wf, bf = params
    bf16 = jnp.bfloat16

    # conv1 patches: stride == kernel  =>  reshape/transpose only (no gather).
    # dims after reshape: (qr, pr, dh, kh, qc, pc, dw, kw, cin)
    xr = x_hwc.astype(bf16).reshape(13, 2, 2, 4, 9, 2, 2, 4, 3)
    # reorder to (dh, dw, pr, pc, qc, qr, kh, kw, cin)
    xt = jnp.transpose(xr, (2, 6, 1, 5, 4, 0, 3, 7, 8))
    # pad qr 13 -> 16 (padding rows are never read downstream)
    xt = jnp.pad(xt, ((0, 0), (0, 0), (0, 0), (0, 0), (0, 0),
                      (0, QR_PAD - 13), (0, 0), (0, 0), (0, 0)))
    p1 = xt.reshape(4, 4 * 9 * QR_PAD, 48)                     # (member, pb*144+qc*16+qr, k)

    # conv1 weight (oc, cin, kh, kw) -> (kh, kw, cin) x oc
    w1m = jnp.transpose(w1, (2, 3, 1, 0)).reshape(48, 64).astype(bf16)
    b1r = b1.reshape(1, 64).astype(jnp.float32)

    # conv2 weight (oc, ic, kh, kw), kh=(ar,pr), kw=(ac,pc)  ->  [pb][ic, (ar*2+ac)*32+oc]
    w2t = jnp.transpose(w2, (2, 3, 1, 0)).reshape(2, 2, 2, 2, 64, HIDDEN)  # (ar,pr,ac,pc,ic,oc)
    w2k = jnp.transpose(w2t, (1, 3, 4, 0, 2, 5)).reshape(4, 64, 4 * HIDDEN).astype(bf16)
    b2r = b2.reshape(1, 1, HIDDEN).astype(jnp.float32)

    # fc1 weight: torch view(-1) flatten order is c*24 + (ph*4 + pw)
    wf3 = jnp.transpose(wf.reshape(OUTPUT, HIDDEN, 24), (2, 1, 0))         # (24, c, o)
    wf3 = jnp.pad(wf3, ((0, 0), (0, 0), (0, FC_PAD - OUTPUT))).astype(bf16)
    bfp = jnp.pad(bf, (0, FC_PAD - OUTPUT)).reshape(1, FC_PAD).astype(jnp.float32)

    return p1, w1m, b1r, w2k, b2r, wf3, bfp


def cnn_forward(x_hwc, params):
    """x_hwc: (208, 144, 3) — the same tensor PyTorch receives (it permutes to CHW)."""
    p1, w1m, b1r, w2k, b2r, wf3, bfp = _prep_inputs(x_hwc, params)
    out = pl.pallas_call(
        _cnn_kernel,
        out_shape=jax.ShapeDtypeStruct((1, FC_PAD), jnp.float32),
        scratch_shapes=[pltpu.VMEM((9, QR_PAD, 4 * HIDDEN), jnp.float32)],
        compiler_params=pltpu.CompilerParams(vmem_limit_bytes=16 * 1024 * 1024),
    )(p1, w1m, b1r, w2k, b2r, wf3, bfp)
    return out[0, :OUTPUT]


# --------------------------- pure-JAX reference (PyTorch semantics) ------------------ #
def cnn_reference(x_hwc, params):
    w1, b1, w2, b2, wf, bf = params
    dn = ("NCHW", "OIHW", "NCHW")
    t = jnp.transpose(x_hwc, (2, 0, 1))[None]
    t = lax.conv_general_dilated(t, w1, (4, 4), "VALID", dimension_numbers=dn,
                                 precision=lax.Precision.HIGHEST)
    t = jax.nn.relu(t + b1[None, :, None, None])
    t = lax.reduce_window(t, -jnp.inf, lax.max, (1, 1, 2, 2), (1, 1, 2, 2), "VALID")
    t = lax.conv_general_dilated(t, w2, (2, 2), "VALID", dimension_numbers=dn,
                                 precision=lax.Precision.HIGHEST)
    t = jax.nn.relu(t + b2[None, :, None, None])
    t = lax.reduce_window(t, -jnp.inf, lax.max, (1, 1, 2, 2), (1, 1, 2, 2), "VALID")
    flat = t[0].reshape(-1)                                    # torch view(-1) order
    return jax.nn.relu(jnp.dot(wf, flat, precision=lax.Precision.HIGHEST) + bf)


if __name__ == "__main__":
    key = jax.random.PRNGKey(0)
    kx, k1, k2, k3, k4, k5, k6 = jax.random.split(key, 7)

    x = jax.random.normal(kx, (H_IN, W_IN, C_IN), jnp.float32)
    w1 = jax.random.normal(k1, (64, 3, 4, 4), jnp.float32) / np.sqrt(3 * 4 * 4)
    b1 = jax.random.normal(k2, (64,), jnp.float32) * 0.05
    w2 = jax.random.normal(k3, (HIDDEN, 64, 4, 4), jnp.float32) / np.sqrt(64 * 4 * 4)
    b2 = jax.random.normal(k4, (HIDDEN,), jnp.float32) * 0.05
    wf = jax.random.normal(k5, (OUTPUT, HIDDEN * 6 * 4), jnp.float32) / np.sqrt(HIDDEN * 24)
    bf = jax.random.normal(k6, (OUTPUT,), jnp.float32) * 0.05
    params = (w1, b1, w2, b2, wf, bf)

    out = jax.block_until_ready(jax.jit(cnn_forward)(x, params))
    ref = jax.block_until_ready(cnn_reference(x, params))

    assert out.shape == (OUTPUT,), out.shape
    np.testing.assert_allclose(np.asarray(out), np.asarray(ref), rtol=2e-2, atol=2e-2)
    print("KERNEL_OK")
</pallas_src>

<mosaic_0001>
module attributes {stable_mosaic.version = 11 : i64} {
  func.func @_cnn_kernel(%arg0: memref<4x576x48xbf16, #tpu.memory_space<vmem>>, %arg1: memref<48x64xbf16, #tpu.memory_space<vmem>>, %arg2: memref<1x64xf32, #tpu.memory_space<vmem>>, %arg3: memref<4x64x128xbf16, #tpu.memory_space<vmem>>, %arg4: memref<1x1x32xf32, #tpu.memory_space<vmem>>, %arg5: memref<24x32x128xbf16, #tpu.memory_space<vmem>>, %arg6: memref<1x128xf32, #tpu.memory_space<vmem>>, %arg7: memref<1x128xf32, #tpu.memory_space<vmem>>, %arg8: memref<9x16x128xf32, #tpu.memory_space<vmem>>) attributes {dimension_semantics = [], scalar_prefetch = 0 : i64, scratch_operands = 1 : i64, tpu.core_type = #tpu.core_type<tc>} {
    %c0 = arith.constant 0 : index
    %c0_0 = arith.constant 0 : index
    %0 = vector.load %arg1[%c0, %c0_0] : memref<48x64xbf16, #tpu.memory_space<vmem>>, vector<48x64xbf16>
    %c0_1 = arith.constant 0 : index
    %c0_2 = arith.constant 0 : index
    %c0_3 = arith.constant 0 : index
    %1 = vector.load %arg0[%c0_1, %c0_2, %c0_3] : memref<4x576x48xbf16, #tpu.memory_space<vmem>>, vector<1x576x48xbf16>
    %2 = vector.shape_cast %1 : vector<1x576x48xbf16> to vector<576x48xbf16>
    %cst = arith.constant dense<0.000000e+00> : vector<576x64xf32>
    %3 = tpu.matmul %2, %0, %cst {dimension_numbers = #tpu.dot_dimension_numbers<[1], [0], [0], [1], [0, 0, 1, 1], [], []>} : vector<576x48xbf16>, vector<48x64xbf16>, vector<576x64xf32> -> vector<576x64xf32>
    %c1 = arith.constant 1 : index
    %c0_4 = arith.constant 0 : index
    %c0_5 = arith.constant 0 : index
    %4 = vector.load %arg0[%c1, %c0_4, %c0_5] : memref<4x576x48xbf16, #tpu.memory_space<vmem>>, vector<1x576x48xbf16>
    %5 = vector.shape_cast %4 : vector<1x576x48xbf16> to vector<576x48xbf16>
    %cst_6 = arith.constant dense<0.000000e+00> : vector<576x64xf32>
    %6 = tpu.matmul %5, %0, %cst_6 {dimension_numbers = #tpu.dot_dimension_numbers<[1], [0], [0], [1], [0, 0, 1, 1], [], []>} : vector<576x48xbf16>, vector<48x64xbf16>, vector<576x64xf32> -> vector<576x64xf32>
    %7 = arith.maximumf %3, %6 : vector<576x64xf32>
    %c2 = arith.constant 2 : index
    %c0_7 = arith.constant 0 : index
    %c0_8 = arith.constant 0 : index
    %8 = vector.load %arg0[%c2, %c0_7, %c0_8] : memref<4x576x48xbf16, #tpu.memory_space<vmem>>, vector<1x576x48xbf16>
    %9 = vector.shape_cast %8 : vector<1x576x48xbf16> to vector<576x48xbf16>
    %cst_9 = arith.constant dense<0.000000e+00> : vector<576x64xf32>
    %10 = tpu.matmul %9, %0, %cst_9 {dimension_numbers = #tpu.dot_dimension_numbers<[1], [0], [0], [1], [0, 0, 1, 1], [], []>} : vector<576x48xbf16>, vector<48x64xbf16>, vector<576x64xf32> -> vector<576x64xf32>
    %11 = arith.maximumf %7, %10 : vector<576x64xf32>
    %c3 = arith.constant 3 : index
    %c0_10 = arith.constant 0 : index
    %c0_11 = arith.constant 0 : index
    %12 = vector.load %arg0[%c3, %c0_10, %c0_11] : memref<4x576x48xbf16, #tpu.memory_space<vmem>>, vector<1x576x48xbf16>
    %13 = vector.shape_cast %12 : vector<1x576x48xbf16> to vector<576x48xbf16>
    %cst_12 = arith.constant dense<0.000000e+00> : vector<576x64xf32>
    %14 = tpu.matmul %13, %0, %cst_12 {dimension_numbers = #tpu.dot_dimension_numbers<[1], [0], [0], [1], [0, 0, 1, 1], [], []>} : vector<576x48xbf16>, vector<48x64xbf16>, vector<576x64xf32> -> vector<576x64xf32>
    %15 = arith.maximumf %11, %14 : vector<576x64xf32>
    %c0_13 = arith.constant 0 : index
    %c0_14 = arith.constant 0 : index
    %16 = vector.load %arg2[%c0_13, %c0_14] : memref<1x64xf32, #tpu.memory_space<vmem>>, vector<1x64xf32>
    %17 = vector.broadcast %16 : vector<1x64xf32> to vector<576x64xf32>
    %18 = arith.addf %15, %17 : vector<576x64xf32>
    %cst_15 = arith.constant 0.000000e+00 : f32
    %19 = vector.broadcast %cst_15 : f32 to vector<576x64xf32>
    %20 = arith.maximumf %18, %19 : vector<576x64xf32>
    %21 = arith.truncf %20 : vector<576x64xf32> to vector<576x64xbf16>
    %22 = vector.extract_strided_slice %21 {offsets = [0, 0], sizes = [144, 64], strides = [1, 1]} : vector<576x64xbf16> to vector<144x64xbf16>
    %c0_16 = arith.constant 0 : index
    %c0_17 = arith.constant 0 : index
    %c0_18 = arith.constant 0 : index
    %23 = vector.load %arg3[%c0_16, %c0_17, %c0_18] : memref<4x64x128xbf16, #tpu.memory_space<vmem>>, vector<1x64x128xbf16>
    %24 = vector.shape_cast %23 : vector<1x64x128xbf16> to vector<64x128xbf16>
    %cst_19 = arith.constant dense<0.000000e+00> : vector<144x128xf32>
    %25 = tpu.matmul %22, %24, %cst_19 {dimension_numbers = #tpu.dot_dimension_numbers<[1], [0], [0], [1], [0, 0, 1, 1], [], []>} : vector<144x64xbf16>, vector<64x128xbf16>, vector<144x128xf32> -> vector<144x128xf32>
    %26 = vector.extract_strided_slice %21 {offsets = [144, 0], sizes = [144, 64], strides = [1, 1]} : vector<576x64xbf16> to vector<144x64xbf16>
    %c1_20 = arith.constant 1 : index
    %c0_21 = arith.constant 0 : index
    %c0_22 = arith.constant 0 : index
    %27 = vector.load %arg3[%c1_20, %c0_21, %c0_22] : memref<4x64x128xbf16, #tpu.memory_space<vmem>>, vector<1x64x128xbf16>
    %28 = vector.shape_cast %27 : vector<1x64x128xbf16> to vector<64x128xbf16>
    %cst_23 = arith.constant dense<0.000000e+00> : vector<144x128xf32>
    %29 = tpu.matmul %26, %28, %cst_23 {dimension_numbers = #tpu.dot_dimension_numbers<[1], [0], [0], [1], [0, 0, 1, 1], [], []>} : vector<144x64xbf16>, vector<64x128xbf16>, vector<144x128xf32> -> vector<144x128xf32>
    %30 = arith.addf %25, %29 : vector<144x128xf32>
    %31 = vector.extract_strided_slice %21 {offsets = [288, 0], sizes = [144, 64], strides = [1, 1]} : vector<576x64xbf16> to vector<144x64xbf16>
    %c2_24 = arith.constant 2 : index
    %c0_25 = arith.constant 0 : index
    %c0_26 = arith.constant 0 : index
    %32 = vector.load %arg3[%c2_24, %c0_25, %c0_26] : memref<4x64x128xbf16, #tpu.memory_space<vmem>>, vector<1x64x128xbf16>
    %33 = vector.shape_cast %32 : vector<1x64x128xbf16> to vector<64x128xbf16>
    %cst_27 = arith.constant dense<0.000000e+00> : vector<144x128xf32>
    %34 = tpu.matmul %31, %33, %cst_27 {dimension_numbers = #tpu.dot_dimension_numbers<[1], [0], [0], [1], [0, 0, 1, 1], [], []>} : vector<144x64xbf16>, vector<64x128xbf16>, vector<144x128xf32> -> vector<144x128xf32>
    %35 = arith.addf %30, %34 : vector<144x128xf32>
    %36 = vector.extract_strided_slice %21 {offsets = [432, 0], sizes = [144, 64], strides = [1, 1]} : vector<576x64xbf16> to vector<144x64xbf16>
    %c3_28 = arith.constant 3 : index
    %c0_29 = arith.constant 0 : index
    %c0_30 = arith.constant 0 : index
    %37 = vector.load %arg3[%c3_28, %c0_29, %c0_30] : memref<4x64x128xbf16, #tpu.memory_space<vmem>>, vector<1x64x128xbf16>
    %38 = vector.shape_cast %37 : vector<1x64x128xbf16> to vector<64x128xbf16>
    %cst_31 = arith.constant dense<0.000000e+00> : vector<144x128xf32>
    %39 = tpu.matmul %36, %38, %cst_31 {dimension_numbers = #tpu.dot_dimension_numbers<[1], [0], [0], [1], [0, 0, 1, 1], [], []>} : vector<144x64xbf16>, vector<64x128xbf16>, vector<144x128xf32> -> vector<144x128xf32>
    %40 = arith.addf %35, %39 : vector<144x128xf32>
    %41 = vector.extract_strided_slice %40 {offsets = [0, 0], sizes = [16, 128], strides = [1, 1]} : vector<144x128xf32> to vector<16x128xf32>
    %c0_32 = arith.constant 0 : index
    %c0_33 = arith.constant 0 : index
    %c0_34 = arith.constant 0 : index
    %42 = vector.load %arg8[%c0_32, %c0_33, %c0_34] : memref<9x16x128xf32, #tpu.memory_space<vmem>>, vector<1x16x128xf32>
    %43 = vector.shape_cast %42 : vector<1x16x128xf32> to vector<16x128xf32>
    %44 = vector.shape_cast %41 : vector<16x128xf32> to vector<1x16x128xf32>
    tpu.vector_store %arg8[%c0_32, %c0_33, %c0_34], %44 {strides = array<i32>} : memref<9x16x128xf32, #tpu.memory_space<vmem>>, vector<1x16x128xf32>,
    %45 = vector.extract_strided_slice %40 {offsets = [16, 0], sizes = [16, 128], strides = [1, 1]} : vector<144x128xf32> to vector<16x128xf32>
    %c1_35 = arith.constant 1 : index
    %c0_36 = arith.constant 0 : index
    %c0_37 = arith.constant 0 : index
    %46 = vector.load %arg8[%c1_35, %c0_36, %c0_37] : memref<9x16x128xf32, #tpu.memory_space<vmem>>, vector<1x16x128xf32>
    %47 = vector.shape_cast %46 : vector<1x16x128xf32> to vector<16x128xf32>
    %48 = vector.shape_cast %45 : vector<16x128xf32> to vector<1x16x128xf32>
    tpu.vector_store %arg8[%c1_35, %c0_36, %c0_37], %48 {strides = array<i32>} : memref<9x16x128xf32, #tpu.memory_space<vmem>>, vector<1x16x128xf32>,
    %49 = vector.extract_strided_slice %40 {offsets = [32, 0], sizes = [16, 128], strides = [1, 1]} : vector<144x128xf32> to vector<16x128xf32>
    %c2_38 = arith.constant 2 : index
    %c0_39 = arith.constant 0 : index
    %c0_40 = arith.constant 0 : index
    %50 = vector.load %arg8[%c2_38, %c0_39, %c0_40] : memref<9x16x128xf32, #tpu.memory_space<vmem>>, vector<1x16x128xf32>
    %51 = vector.shape_cast %50 : vector<1x16x128xf32> to vector<16x128xf32>
    %52 = vector.shape_cast %49 : vector<16x128xf32> to vector<1x16x128xf32>
    tpu.vector_store %arg8[%c2_38, %c0_39, %c0_40], %52 {strides = array<i32>} : memref<9x16x128xf32, #tpu.memory_space<vmem>>, vector<1x16x128xf32>,
    %53 = vector.extract_strided_slice %40 {offsets = [48, 0], sizes = [16, 128], strides = [1, 1]} : vector<144x128xf32> to vector<16x128xf32>
    %c3_41 = arith.constant 3 : index
    %c0_42 = arith.constant 0 : index
    %c0_43 = arith.constant 0 : index
    %54 = vector.load %arg8[%c3_41, %c0_42, %c0_43] : memref<9x16x128xf32, #tpu.memory_space<vmem>>, vector<1x16x128xf32>
    %55 = vector.shape_cast %54 : vector<1x16x128xf32> to vector<16x128xf32>
    %56 = vector.shape_cast %53 : vector<16x128xf32> to vector<1x16x128xf32>
    tpu.vector_store %arg8[%c3_41, %c0_42, %c0_43], %56 {strides = array<i32>} : memref<9x16x128xf32, #tpu.memory_space<vmem>>, vector<1x16x128xf32>,
    %57 = vector.extract_strided_slice %40 {offsets = [64, 0], sizes = [16, 128], strides = [1, 1]} : vector<144x128xf32> to vector<16x128xf32>
    %c4 = arith.constant 4 : index
    %c0_44 = arith.constant 0 : index
    %c0_45 = arith.constant 0 : index
    %58 = vector.load %arg8[%c4, %c0_44, %c0_45] : memref<9x16x128xf32, #tpu.memory_space<vmem>>, vector<1x16x128xf32>
    %59 = vector.shape_cast %58 : vector<1x16x128xf32> to vector<16x128xf32>
    %60 = vector.shape_cast %57 : vector<16x128xf32> to vector<1x16x128xf32>
    tpu.vector_store %arg8[%c4, %c0_44, %c0_45], %60 {strides = array<i32>} : memref<9x16x128xf32, #tpu.memory_space<vmem>>, vector<1x16x128xf32>,
    %61 = vector.extract_strided_slice %40 {offsets = [80, 0], sizes = [16, 128], strides = [1, 1]} : vector<144x128xf32> to vector<16x128xf32>
    %c5 = arith.constant 5 : index
    %c0_46 = arith.constant 0 : index
    %c0_47 = arith.constant 0 : index
    %62 = vector.load %arg8[%c5, %c0_46, %c0_47] : memref<9x16x128xf32, #tpu.memory_space<vmem>>, vector<1x16x128xf32>
    %63 = vector.shape_cast %62 : vector<1x16x128xf32> to vector<16x128xf32>
    %64 = vector.shape_cast %61 : vector<16x128xf32> to vector<1x16x128xf32>
    tpu.vector_store %arg8[%c5, %c0_46, %c0_47], %64 {strides = array<i32>} : memref<9x16x128xf32, #tpu.memory_space<vmem>>, vector<1x16x128xf32>,
    %65 = vector.extract_strided_slice %40 {offsets = [96, 0], sizes = [16, 128], strides = [1, 1]} : vector<144x128xf32> to vector<16x128xf32>
    %c6 = arith.constant 6 : index
    %c0_48 = arith.constant 0 : index
    %c0_49 = arith.constant 0 : index
    %66 = vector.load %arg8[%c6, %c0_48, %c0_49] : memref<9x16x128xf32, #tpu.memory_space<vmem>>, vector<1x16x128xf32>
    %67 = vector.shape_cast %66 : vector<1x16x128xf32> to vector<16x128xf32>
    %68 = vector.shape_cast %65 : vector<16x128xf32> to vector<1x16x128xf32>
    tpu.vector_store %arg8[%c6, %c0_48, %c0_49], %68 {strides = array<i32>} : memref<9x16x128xf32, #tpu.memory_space<vmem>>, vector<1x16x128xf32>,
    %69 = vector.extract_strided_slice %40 {offsets = [112, 0], sizes = [16, 128], strides = [1, 1]} : vector<144x128xf32> to vector<16x128xf32>
    %c7 = arith.constant 7 : index
    %c0_50 = arith.constant 0 : index
    %c0_51 = arith.constant 0 : index
    %70 = vector.load %arg8[%c7, %c0_50, %c0_51] : memref<9x16x128xf32, #tpu.memory_space<vmem>>, vector<1x16x128xf32>
    %71 = vector.shape_cast %70 : vector<1x16x128xf32> to vector<16x128xf32>
    %72 = vector.shape_cast %69 : vector<16x128xf32> to vector<1x16x128xf32>
    tpu.vector_store %arg8[%c7, %c0_50, %c0_51], %72 {strides = array<i32>} : memref<9x16x128xf32, #tpu.memory_space<vmem>>, vector<1x16x128xf32>,
    %73 = vector.extract_strided_slice %40 {offsets = [128, 0], sizes = [16, 128], strides = [1, 1]} : vector<144x128xf32> to vector<16x128xf32>
    %c8 = arith.constant 8 : index
    %c0_52 = arith.constant 0 : index
    %c0_53 = arith.constant 0 : index
    %74 = vector.load %arg8[%c8, %c0_52, %c0_53] : memref<9x16x128xf32, #tpu.memory_space<vmem>>, vector<1x16x128xf32>
    %75 = vector.shape_cast %74 : vector<1x16x128xf32> to vector<16x128xf32>
    %76 = vector.shape_cast %73 : vector<16x128xf32> to vector<1x16x128xf32>
    tpu.vector_store %arg8[%c8, %c0_52, %c0_53], %76 {strides = array<i32>} : memref<9x16x128xf32, #tpu.memory_space<vmem>>, vector<1x16x128xf32>,
    %c0_54 = arith.constant 0 : index
    %c0_55 = arith.constant 0 : index
    %c0_56 = arith.constant 0 : index
    %77 = vector.load %arg8[%c0_54, %c0_55, %c0_56] : memref<9x16x128xf32, #tpu.memory_space<vmem>>, vector<8x16x128xf32>
    %78 = vector.extract_strided_slice %77 {offsets = [0, 0, 0], sizes = [8, 12, 32], strides = [1, 1, 1]} : vector<8x16x128xf32> to vector<8x12x32xf32>
    %79 = vector.extract_strided_slice %77 {offsets = [0, 1, 64], sizes = [8, 12, 32], strides = [1, 1, 1]} : vector<8x16x128xf32> to vector<8x12x32xf32>
    %80 = arith.addf %78, %79 : vector<8x12x32xf32>
    %c1_57 = arith.constant 1 : index
    %c0_58 = arith.constant 0 : index
    %c0_59 = arith.constant 0 : index
    %81 = vector.load %arg8[%c1_57, %c0_58, %c0_59] : memref<9x16x128xf32, #tpu.memory_space<vmem>>, vector<8x16x128xf32>
    %82 = vector.extract_strided_slice %81 {offsets = [0, 0, 32], sizes = [8, 12, 32], strides = [1, 1, 1]} : vector<8x16x128xf32> to vector<8x12x32xf32>
    %83 = arith.addf %80, %82 : vector<8x12x32xf32>
    %84 = vector.extract_strided_slice %81 {offsets = [0, 1, 96], sizes = [8, 12, 32], strides = [1, 1, 1]} : vector<8x16x128xf32> to vector<8x12x32xf32>
    %85 = arith.addf %83, %84 : vector<8x12x32xf32>
    %c0_60 = arith.constant 0 : index
    %c0_61 = arith.constant 0 : index
    %c0_62 = arith.constant 0 : index
    %86 = vector.load %arg4[%c0_60, %c0_61, %c0_62] : memref<1x1x32xf32, #tpu.memory_space<vmem>>, vector<1x1x32xf32>
    %87 = vector.broadcast %86 : vector<1x1x32xf32> to vector<8x12x32xf32>
    %88 = arith.addf %85, %87 : vector<8x12x32xf32>
    %cst_63 = arith.constant 0.000000e+00 : f32
    %89 = vector.broadcast %cst_63 : f32 to vector<8x12x32xf32>
    %90 = arith.maximumf %88, %89 : vector<8x12x32xf32>
    %c0_64 = arith.constant 0 : index
    %c0_65 = arith.constant 0 : index
    %91 = vector.load %arg6[%c0_64, %c0_65] : memref<1x128xf32, #tpu.memory_space<vmem>>, vector<1x128xf32>
    %92 = vector.extract_strided_slice %90 {offsets = [0, 0, 0], sizes = [1, 2, 32], strides = [1, 1, 1]} : vector<8x12x32xf32> to vector<1x2x32xf32>
    %93 = vector.shape_cast %92 : vector<1x2x32xf32> to vector<2x32xf32>
    %94 = vector.extract_strided_slice %90 {offsets = [1, 0, 0], sizes = [1, 2, 32], strides = [1, 1, 1]} : vector<8x12x32xf32> to vector<1x2x32xf32>
    %95 = vector.shape_cast %94 : vector<1x2x32xf32> to vector<2x32xf32>
    %96 = arith.maximumf %93, %95 : vector<2x32xf32>
    %97 = vector.extract_strided_slice %96 {offsets = [0, 0], sizes = [1, 32], strides = [1, 1]} : vector<2x32xf32> to vector<1x32xf32>
    %98 = vector.extract_strided_slice %96 {offsets = [1, 0], sizes = [1, 32], strides = [1, 1]} : vector<2x32xf32> to vector<1x32xf32>
    %99 = arith.maximumf %97, %98 : vector<1x32xf32>
    %100 = arith.truncf %99 : vector<1x32xf32> to vector<1x32xbf16>
    %c0_66 = arith.constant 0 : index
    %c0_67 = arith.constant 0 : index
    %c0_68 = arith.constant 0 : index
    %101 = vector.load %arg5[%c0_66, %c0_67, %c0_68] : memref<24x32x128xbf16, #tpu.memory_space<vmem>>, vector<1x32x128xbf16>
    %102 = vector.shape_cast %101 : vector<1x32x128xbf16> to vector<32x128xbf16>
    %cst_69 = arith.constant dense<0.000000e+00> : vector<1x128xf32>
    %103 = tpu.matmul %100, %102, %cst_69 {dimension_numbers = #tpu.dot_dimension_numbers<[1], [0], [0], [1], [0, 0, 1, 1], [], []>} : vector<1x32xbf16>, vector<32x128xbf16>, vector<1x128xf32> -> vector<1x128xf32>
    %104 = arith.addf %91, %103 : vector<1x128xf32>
    %105 = vector.extract_strided_slice %90 {offsets = [2, 0, 0], sizes = [1, 2, 32], strides = [1, 1, 1]} : vector<8x12x32xf32> to vector<1x2x32xf32>
    %106 = vector.shape_cast %105 : vector<1x2x32xf32> to vector<2x32xf32>
    %107 = vector.extract_strided_slice %90 {offsets = [3, 0, 0], sizes = [1, 2, 32], strides = [1, 1, 1]} : vector<8x12x32xf32> to vector<1x2x32xf32>
    %108 = vector.shape_cast %107 : vector<1x2x32xf32> to vector<2x32xf32>
    %109 = arith.maximumf %106, %108 : vector<2x32xf32>
    %110 = vector.extract_strided_slice %109 {offsets = [0, 0], sizes = [1, 32], strides = [1, 1]} : vector<2x32xf32> to vector<1x32xf32>
    %111 = vector.extract_strided_slice %109 {offsets = [1, 0], sizes = [1, 32], strides = [1, 1]} : vector<2x32xf32> to vector<1x32xf32>
    %112 = arith.maximumf %110, %111 : vector<1x32xf32>
    %113 = arith.truncf %112 : vector<1x32xf32> to vector<1x32xbf16>
    %c1_70 = arith.constant 1 : index
    %c0_71 = arith.constant 0 : index
    %c0_72 = arith.constant 0 : index
    %114 = vector.load %arg5[%c1_70, %c0_71, %c0_72] : memref<24x32x128xbf16, #tpu.memory_space<vmem>>, vector<1x32x128xbf16>
    %115 = vector.shape_cast %114 : vector<1x32x128xbf16> to vector<32x128xbf16>
    %cst_73 = arith.constant dense<0.000000e+00> : vector<1x128xf32>
    %116 = tpu.matmul %113, %115, %cst_73 {dimension_numbers = #tpu.dot_dimension_numbers<[1], [0], [0], [1], [0, 0, 1, 1], [], []>} : vector<1x32xbf16>, vector<32x128xbf16>, vector<1x128xf32> -> vector<1x128xf32>
    %117 = arith.addf %104, %116 : vector<1x128xf32>
    %118 = vector.extract_strided_slice %90 {offsets = [4, 0, 0], sizes = [1, 2, 32], strides = [1, 1, 1]} : vector<8x12x32xf32> to vector<1x2x32xf32>
    %119 = vector.shape_cast %118 : vector<1x2x32xf32> to vector<2x32xf32>
    %120 = vector.extract_strided_slice %90 {offsets = [5, 0, 0], sizes = [1, 2, 32], strides = [1, 1, 1]} : vector<8x12x32xf32> to vector<1x2x32xf32>
    %121 = vector.shape_cast %120 : vector<1x2x32xf32> to vector<2x32xf32>
    %122 = arith.maximumf %119, %121 : vector<2x32xf32>
    %123 = vector.extract_strided_slice %122 {offsets = [0, 0], sizes = [1, 32], strides = [1, 1]} : vector<2x32xf32> to vector<1x32xf32>
    %124 = vector.extract_strided_slice %122 {offsets = [1, 0], sizes = [1, 32], strides = [1, 1]} : vector<2x32xf32> to vector<1x32xf32>
    %125 = arith.maximumf %123, %124 : vector<1x32xf32>
    %126 = arith.truncf %125 : vector<1x32xf32> to vector<1x32xbf16>
    %c2_74 = arith.constant 2 : index
    %c0_75 = arith.constant 0 : index
    %c0_76 = arith.constant 0 : index
    %127 = vector.load %arg5[%c2_74, %c0_75, %c0_76] : memref<24x32x128xbf16, #tpu.memory_space<vmem>>, vector<1x32x128xbf16>
    %128 = vector.shape_cast %127 : vector<1x32x128xbf16> to vector<32x128xbf16>
    %cst_77 = arith.constant dense<0.000000e+00> : vector<1x128xf32>
    %129 = tpu.matmul %126, %128, %cst_77 {dimension_numbers = #tpu.dot_dimension_numbers<[1], [0], [0], [1], [0, 0, 1, 1], [], []>} : vector<1x32xbf16>, vector<32x128xbf16>, vector<1x128xf32> -> vector<1x128xf32>
    %130 = arith.addf %117, %129 : vector<1x128xf32>
    %131 = vector.extract_strided_slice %90 {offsets = [6, 0, 0], sizes = [1, 2, 32], strides = [1, 1, 1]} : vector<8x12x32xf32> to vector<1x2x32xf32>
    %132 = vector.shape_cast %131 : vector<1x2x32xf32> to vector<2x32xf32>
    %133 = vector.extract_strided_slice %90 {offsets = [7, 0, 0], sizes = [1, 2, 32], strides = [1, 1, 1]} : vector<8x12x32xf32> to vector<1x2x32xf32>
    %134 = vector.shape_cast %133 : vector<1x2x32xf32> to vector<2x32xf32>
    %135 = arith.maximumf %132, %134 : vector<2x32xf32>
    %136 = vector.extract_strided_slice %135 {offsets = [0, 0], sizes = [1, 32], strides = [1, 1]} : vector<2x32xf32> to vector<1x32xf32>
    %137 = vector.extract_strided_slice %135 {offsets = [1, 0], sizes = [1, 32], strides = [1, 1]} : vector<2x32xf32> to vector<1x32xf32>
    %138 = arith.maximumf %136, %137 : vector<1x32xf32>
    %139 = arith.truncf %138 : vector<1x32xf32> to vector<1x32xbf16>
    %c3_78 = arith.constant 3 : index
    %c0_79 = arith.constant 0 : index
    %c0_80 = arith.constant 0 : index
    %140 = vector.load %arg5[%c3_78, %c0_79, %c0_80] : memref<24x32x128xbf16, #tpu.memory_space<vmem>>, vector<1x32x128xbf16>
    %141 = vector.shape_cast %140 : vector<1x32x128xbf16> to vector<32x128xbf16>
    %cst_81 = arith.constant dense<0.000000e+00> : vector<1x128xf32>
    %142 = tpu.matmul %139, %141, %cst_81 {dimension_numbers = #tpu.dot_dimension_numbers<[1], [0], [0], [1], [0, 0, 1, 1], [], []>} : vector<1x32xbf16>, vector<32x128xbf16>, vector<1x128xf32> -> vector<1x128xf32>
    %143 = arith.addf %130, %142 : vector<1x128xf32>
    %144 = vector.extract_strided_slice %90 {offsets = [0, 2, 0], sizes = [1, 2, 32], strides = [1, 1, 1]} : vector<8x12x32xf32> to vector<1x2x32xf32>
    %145 = vector.shape_cast %144 : vector<1x2x32xf32> to vector<2x32xf32>
    %146 = vector.extract_strided_slice %90 {offsets = [1, 2, 0], sizes = [1, 2, 32], strides = [1, 1, 1]} : vector<8x12x32xf32> to vector<1x2x32xf32>
    %147 = vector.shape_cast %146 : vector<1x2x32xf32> to vector<2x32xf32>
    %148 = arith.maximumf %145, %147 : vector<2x32xf32>
    %149 = vector.extract_strided_slice %148 {offsets = [0, 0], sizes = [1, 32], strides = [1, 1]} : vector<2x32xf32> to vector<1x32xf32>
    %150 = vector.extract_strided_slice %148 {offsets = [1, 0], sizes = [1, 32], strides = [1, 1]} : vector<2x32xf32> to vector<1x32xf32>
    %151 = arith.maximumf %149, %150 : vector<1x32xf32>
    %152 = arith.truncf %151 : vector<1x32xf32> to vector<1x32xbf16>
    %c4_82 = arith.constant 4 : index
    %c0_83 = arith.constant 0 : index
    %c0_84 = arith.constant 0 : index
    %153 = vector.load %arg5[%c4_82, %c0_83, %c0_84] : memref<24x32x128xbf16, #tpu.memory_space<vmem>>, vector<1x32x128xbf16>
    %154 = vector.shape_cast %153 : vector<1x32x128xbf16> to vector<32x128xbf16>
    %cst_85 = arith.constant dense<0.000000e+00> : vector<1x128xf32>
    %155 = tpu.matmul %152, %154, %cst_85 {dimension_numbers = #tpu.dot_dimension_numbers<[1], [0], [0], [1], [0, 0, 1, 1], [], []>} : vector<1x32xbf16>, vector<32x128xbf16>, vector<1x128xf32> -> vector<1x128xf32>
    %156 = arith.addf %143, %155 : vector<1x128xf32>
    %157 = vector.extract_strided_slice %90 {offsets = [2, 2, 0], sizes = [1, 2, 32], strides = [1, 1, 1]} : vector<8x12x32xf32> to vector<1x2x32xf32>
    %158 = vector.shape_cast %157 : vector<1x2x32xf32> to vector<2x32xf32>
    %159 = vector.extract_strided_slice %90 {offsets = [3, 2, 0], sizes = [1, 2, 32], strides = [1, 1, 1]} : vector<8x12x32xf32> to vector<1x2x32xf32>
    %160 = vector.shape_cast %159 : vector<1x2x32xf32> to vector<2x32xf32>
    %161 = arith.maximumf %158, %160 : vector<2x32xf32>
    %162 = vector.extract_strided_slice %161 {offsets = [0, 0], sizes = [1, 32], strides = [1, 1]} : vector<2x32xf32> to vector<1x32xf32>
    %163 = vector.extract_strided_slice %161 {offsets = [1, 0], sizes = [1, 32], strides = [1, 1]} : vector<2x32xf32> to vector<1x32xf32>
    %164 = arith.maximumf %162, %163 : vector<1x32xf32>
    %165 = arith.truncf %164 : vector<1x32xf32> to vector<1x32xbf16>
    %c5_86 = arith.constant 5 : index
    %c0_87 = arith.constant 0 : index
    %c0_88 = arith.constant 0 : index
    %166 = vector.load %arg5[%c5_86, %c0_87, %c0_88] : memref<24x32x128xbf16, #tpu.memory_space<vmem>>, vector<1x32x128xbf16>
    %167 = vector.shape_cast %166 : vector<1x32x128xbf16> to vector<32x128xbf16>
    %cst_89 = arith.constant dense<0.000000e+00> : vector<1x128xf32>
    %168 = tpu.matmul %165, %167, %cst_89 {dimension_numbers = #tpu.dot_dimension_numbers<[1], [0], [0], [1], [0, 0, 1, 1], [], []>} : vector<1x32xbf16>, vector<32x128xbf16>, vector<1x128xf32> -> vector<1x128xf32>
    %169 = arith.addf %156, %168 : vector<1x128xf32>
    %170 = vector.extract_strided_slice %90 {offsets = [4, 2, 0], sizes = [1, 2, 32], strides = [1, 1, 1]} : vector<8x12x32xf32> to vector<1x2x32xf32>
    %171 = vector.shape_cast %170 : vector<1x2x32xf32> to vector<2x32xf32>
    %172 = vector.extract_strided_slice %90 {offsets = [5, 2, 0], sizes = [1, 2, 32], strides = [1, 1, 1]} : vector<8x12x32xf32> to vector<1x2x32xf32>
    %173 = vector.shape_cast %172 : vector<1x2x32xf32> to vector<2x32xf32>
    %174 = arith.maximumf %171, %173 : vector<2x32xf32>
    %175 = vector.extract_strided_slice %174 {offsets = [0, 0], sizes = [1, 32], strides = [1, 1]} : vector<2x32xf32> to vector<1x32xf32>
    %176 = vector.extract_strided_slice %174 {offsets = [1, 0], sizes = [1, 32], strides = [1, 1]} : vector<2x32xf32> to vector<1x32xf32>
    %177 = arith.maximumf %175, %176 : vector<1x32xf32>
    %178 = arith.truncf %177 : vector<1x32xf32> to vector<1x32xbf16>
    %c6_90 = arith.constant 6 : index
    %c0_91 = arith.constant 0 : index
    %c0_92 = arith.constant 0 : index
    %179 = vector.load %arg5[%c6_90, %c0_91, %c0_92] : memref<24x32x128xbf16, #tpu.memory_space<vmem>>, vector<1x32x128xbf16>
    %180 = vector.shape_cast %179 : vector<1x32x128xbf16> to vector<32x128xbf16>
    %cst_93 = arith.constant dense<0.000000e+00> : vector<1x128xf32>
    %181 = tpu.matmul %178, %180, %cst_93 {dimension_numbers = #tpu.dot_dimension_numbers<[1], [0], [0], [1], [0, 0, 1, 1], [], []>} : vector<1x32xbf16>, vector<32x128xbf16>, vector<1x128xf32> -> vector<1x128xf32>
    %182 = arith.addf %169, %181 : vector<1x128xf32>
    %183 = vector.extract_strided_slice %90 {offsets = [6, 2, 0], sizes = [1, 2, 32], strides = [1, 1, 1]} : vector<8x12x32xf32> to vector<1x2x32xf32>
    %184 = vector.shape_cast %183 : vector<1x2x32xf32> to vector<2x32xf32>
    %185 = vector.extract_strided_slice %90 {offsets = [7, 2, 0], sizes = [1, 2, 32], strides = [1, 1, 1]} : vector<8x12x32xf32> to vector<1x2x32xf32>
    %186 = vector.shape_cast %185 : vector<1x2x32xf32> to vector<2x32xf32>
    %187 = arith.maximumf %184, %186 : vector<2x32xf32>
    %188 = vector.extract_strided_slice %187 {offsets = [0, 0], sizes = [1, 32], strides = [1, 1]} : vector<2x32xf32> to vector<1x32xf32>
    %189 = vector.extract_strided_slice %187 {offsets = [1, 0], sizes = [1, 32], strides = [1, 1]} : vector<2x32xf32> to vector<1x32xf32>
    %190 = arith.maximumf %188, %189 : vector<1x32xf32>
    %191 = arith.truncf %190 : vector<1x32xf32> to vector<1x32xbf16>
    %c7_94 = arith.constant 7 : index
    %c0_95 = arith.constant 0 : index
    %c0_96 = arith.constant 0 : index
    %192 = vector.load %arg5[%c7_94, %c0_95, %c0_96] : memref<24x32x128xbf16, #tpu.memory_space<vmem>>, vector<1x32x128xbf16>
    %193 = vector.shape_cast %192 : vector<1x32x128xbf16> to vector<32x128xbf16>
    %cst_97 = arith.constant dense<0.000000e+00> : vector<1x128xf32>
    %194 = tpu.matmul %191, %193, %cst_97 {dimension_numbers = #tpu.dot_dimension_numbers<[1], [0], [0], [1], [0, 0, 1, 1], [], []>} : vector<1x32xbf16>, vector<32x128xbf16>, vector<1x128xf32> -> vector<1x128xf32>
    %195 = arith.addf %182, %194 : vector<1x128xf32>
    %196 = vector.extract_strided_slice %90 {offsets = [0, 4, 0], sizes = [1, 2, 32], strides = [1, 1, 1]} : vector<8x12x32xf32> to vector<1x2x32xf32>
    %197 = vector.shape_cast %196 : vector<1x2x32xf32> to vector<2x32xf32>
    %198 = vector.extract_strided_slice %90 {offsets = [1, 4, 0], sizes = [1, 2, 32], strides = [1, 1, 1]} : vector<8x12x32xf32> to vector<1x2x32xf32>
    %199 = vector.shape_cast %198 : vector<1x2x32xf32> to vector<2x32xf32>
    %200 = arith.maximumf %197, %199 : vector<2x32xf32>
    %201 = vector.extract_strided_slice %200 {offsets = [0, 0], sizes = [1, 32], strides = [1, 1]} : vector<2x32xf32> to vector<1x32xf32>
    %202 = vector.extract_strided_slice %200 {offsets = [1, 0], sizes = [1, 32], strides = [1, 1]} : vector<2x32xf32> to vector<1x32xf32>
    %203 = arith.maximumf %201, %202 : vector<1x32xf32>
    %204 = arith.truncf %203 : vector<1x32xf32> to vector<1x32xbf16>
    %c8_98 = arith.constant 8 : index
    %c0_99 = arith.constant 0 : index
    %c0_100 = arith.constant 0 : index
    %205 = vector.load %arg5[%c8_98, %c0_99, %c0_100] : memref<24x32x128xbf16, #tpu.memory_space<vmem>>, vector<1x32x128xbf16>
    %206 = vector.shape_cast %205 : vector<1x32x128xbf16> to vector<32x128xbf16>
    %cst_101 = arith.constant dense<0.000000e+00> : vector<1x128xf32>
    %207 = tpu.matmul %204, %206, %cst_101 {dimension_numbers = #tpu.dot_dimension_numbers<[1], [0], [0], [1], [0, 0, 1, 1], [], []>} : vector<1x32xbf16>, vector<32x128xbf16>, vector<1x128xf32> -> vector<1x128xf32>
    %208 = arith.addf %195, %207 : vector<1x128xf32>
    %209 = vector.extract_strided_slice %90 {offsets = [2, 4, 0], sizes = [1, 2, 32], strides = [1, 1, 1]} : vector<8x12x32xf32> to vector<1x2x32xf32>
    %210 = vector.shape_cast %209 : vector<1x2x32xf32> to vector<2x32xf32>
    %211 = vector.extract_strided_slice %90 {offsets = [3, 4, 0], sizes = [1, 2, 32], strides = [1, 1, 1]} : vector<8x12x32xf32> to vector<1x2x32xf32>
    %212 = vector.shape_cast %211 : vector<1x2x32xf32> to vector<2x32xf32>
    %213 = arith.maximumf %210, %212 : vector<2x32xf32>
    %214 = vector.extract_strided_slice %213 {offsets = [0, 0], sizes = [1, 32], strides = [1, 1]} : vector<2x32xf32> to vector<1x32xf32>
    %215 = vector.extract_strided_slice %213 {offsets = [1, 0], sizes = [1, 32], strides = [1, 1]} : vector<2x32xf32> to vector<1x32xf32>
    %216 = arith.maximumf %214, %215 : vector<1x32xf32>
    %217 = arith.truncf %216 : vector<1x32xf32> to vector<1x32xbf16>
    %c9 = arith.constant 9 : index
    %c0_102 = arith.constant 0 : index
    %c0_103 = arith.constant 0 : index
    %218 = vector.load %arg5[%c9, %c0_102, %c0_103] : memref<24x32x128xbf16, #tpu.memory_space<vmem>>, vector<1x32x128xbf16>
    %219 = vector.shape_cast %218 : vector<1x32x128xbf16> to vector<32x128xbf16>
    %cst_104 = arith.constant dense<0.000000e+00> : vector<1x128xf32>
    %220 = tpu.matmul %217, %219, %cst_104 {dimension_numbers = #tpu.dot_dimension_numbers<[1], [0], [0], [1], [0, 0, 1, 1], [], []>} : vector<1x32xbf16>, vector<32x128xbf16>, vector<1x128xf32> -> vector<1x128xf32>
    %221 = arith.addf %208, %220 : vector<1x128xf32>
    %222 = vector.extract_strided_slice %90 {offsets = [4, 4, 0], sizes = [1, 2, 32], strides = [1, 1, 1]} : vector<8x12x32xf32> to vector<1x2x32xf32>
    %223 = vector.shape_cast %222 : vector<1x2x32xf32> to vector<2x32xf32>
    %224 = vector.extract_strided_slice %90 {offsets = [5, 4, 0], sizes = [1, 2, 32], strides = [1, 1, 1]} : vector<8x12x32xf32> to vector<1x2x32xf32>
    %225 = vector.shape_cast %224 : vector<1x2x32xf32> to vector<2x32xf32>
    %226 = arith.maximumf %223, %225 : vector<2x32xf32>
    %227 = vector.extract_strided_slice %226 {offsets = [0, 0], sizes = [1, 32], strides = [1, 1]} : vector<2x32xf32> to vector<1x32xf32>
    %228 = vector.extract_strided_slice %226 {offsets = [1, 0], sizes = [1, 32], strides = [1, 1]} : vector<2x32xf32> to vector<1x32xf32>
    %229 = arith.maximumf %227, %228 : vector<1x32xf32>
    %230 = arith.truncf %229 : vector<1x32xf32> to vector<1x32xbf16>
    %c10 = arith.constant 10 : index
    %c0_105 = arith.constant 0 : index
    %c0_106 = arith.constant 0 : index
    %231 = vector.load %arg5[%c10, %c0_105, %c0_106] : memref<24x32x128xbf16, #tpu.memory_space<vmem>>, vector<1x32x128xbf16>
    %232 = vector.shape_cast %231 : vector<1x32x128xbf16> to vector<32x128xbf16>
    %cst_107 = arith.constant dense<0.000000e+00> : vector<1x128xf32>
    %233 = tpu.matmul %230, %232, %cst_107 {dimension_numbers = #tpu.dot_dimension_numbers<[1], [0], [0], [1], [0, 0, 1, 1], [], []>} : vector<1x32xbf16>, vector<32x128xbf16>, vector<1x128xf32> -> vector<1x128xf32>
    %234 = arith.addf %221, %233 : vector<1x128xf32>
    %235 = vector.extract_strided_slice %90 {offsets = [6, 4, 0], sizes = [1, 2, 32], strides = [1, 1, 1]} : vector<8x12x32xf32> to vector<1x2x32xf32>
    %236 = vector.shape_cast %235 : vector<1x2x32xf32> to vector<2x32xf32>
    %237 = vector.extract_strided_slice %90 {offsets = [7, 4, 0], sizes = [1, 2, 32], strides = [1, 1, 1]} : vector<8x12x32xf32> to vector<1x2x32xf32>
    %238 = vector.shape_cast %237 : vector<1x2x32xf32> to vector<2x32xf32>
    %239 = arith.maximumf %236, %238 : vector<2x32xf32>
    %240 = vector.extract_strided_slice %239 {offsets = [0, 0], sizes = [1, 32], strides = [1, 1]} : vector<2x32xf32> to vector<1x32xf32>
    %241 = vector.extract_strided_slice %239 {offsets = [1, 0], sizes = [1, 32], strides = [1, 1]} : vector<2x32xf32> to vector<1x32xf32>
    %242 = arith.maximumf %240, %241 : vector<1x32xf32>
    %243 = arith.truncf %242 : vector<1x32xf32> to vector<1x32xbf16>
    %c11 = arith.constant 11 : index
    %c0_108 = arith.constant 0 : index
    %c0_109 = arith.constant 0 : index
    %244 = vector.load %arg5[%c11, %c0_108, %c0_109] : memref<24x32x128xbf16, #tpu.memory_space<vmem>>, vector<1x32x128xbf16>
    %245 = vector.shape_cast %244 : vector<1x32x128xbf16> to vector<32x128xbf16>
    %cst_110 = arith.constant dense<0.000000e+00> : vector<1x128xf32>
    %246 = tpu.matmul %243, %245, %cst_110 {dimension_numbers = #tpu.dot_dimension_numbers<[1], [0], [0], [1], [0, 0, 1, 1], [], []>} : vector<1x32xbf16>, vector<32x128xbf16>, vector<1x128xf32> -> vector<1x128xf32>
    %247 = arith.addf %234, %246 : vector<1x128xf32>
    %248 = vector.extract_strided_slice %90 {offsets = [0, 6, 0], sizes = [1, 2, 32], strides = [1, 1, 1]} : vector<8x12x32xf32> to vector<1x2x32xf32>
    %249 = vector.shape_cast %248 : vector<1x2x32xf32> to vector<2x32xf32>
    %250 = vector.extract_strided_slice %90 {offsets = [1, 6, 0], sizes = [1, 2, 32], strides = [1, 1, 1]} : vector<8x12x32xf32> to vector<1x2x32xf32>
    %251 = vector.shape_cast %250 : vector<1x2x32xf32> to vector<2x32xf32>
    %252 = arith.maximumf %249, %251 : vector<2x32xf32>
    %253 = vector.extract_strided_slice %252 {offsets = [0, 0], sizes = [1, 32], strides = [1, 1]} : vector<2x32xf32> to vector<1x32xf32>
    %254 = vector.extract_strided_slice %252 {offsets = [1, 0], sizes = [1, 32], strides = [1, 1]} : vector<2x32xf32> to vector<1x32xf32>
    %255 = arith.maximumf %253, %254 : vector<1x32xf32>
    %256 = arith.truncf %255 : vector<1x32xf32> to vector<1x32xbf16>
    %c12 = arith.constant 12 : index
    %c0_111 = arith.constant 0 : index
    %c0_112 = arith.constant 0 : index
    %257 = vector.load %arg5[%c12, %c0_111, %c0_112] : memref<24x32x128xbf16, #tpu.memory_space<vmem>>, vector<1x32x128xbf16>
    %258 = vector.shape_cast %257 : vector<1x32x128xbf16> to vector<32x128xbf16>
    %cst_113 = arith.constant dense<0.000000e+00> : vector<1x128xf32>
    %259 = tpu.matmul %256, %258, %cst_113 {dimension_numbers = #tpu.dot_dimension_numbers<[1], [0], [0], [1], [0, 0, 1, 1], [], []>} : vector<1x32xbf16>, vector<32x128xbf16>, vector<1x128xf32> -> vector<1x128xf32>
    %260 = arith.addf %247, %259 : vector<1x128xf32>
    %261 = vector.extract_strided_slice %90 {offsets = [2, 6, 0], sizes = [1, 2, 32], strides = [1, 1, 1]} : vector<8x12x32xf32> to vector<1x2x32xf32>
    %262 = vector.shape_cast %261 : vector<1x2x32xf32> to vector<2x32xf32>
    %263 = vector.extract_strided_slice %90 {offsets = [3, 6, 0], sizes = [1, 2, 32], strides = [1, 1, 1]} : vector<8x12x32xf32> to vector<1x2x32xf32>
    %264 = vector.shape_cast %263 : vector<1x2x32xf32> to vector<2x32xf32>
    %265 = arith.maximumf %262, %264 : vector<2x32xf32>
    %266 = vector.extract_strided_slice %265 {offsets = [0, 0], sizes = [1, 32], strides = [1, 1]} : vector<2x32xf32> to vector<1x32xf32>
    %267 = vector.extract_strided_slice %265 {offsets = [1, 0], sizes = [1, 32], strides = [1, 1]} : vector<2x32xf32> to vector<1x32xf32>
    %268 = arith.maximumf %266, %267 : vector<1x32xf32>
    %269 = arith.truncf %268 : vector<1x32xf32> to vector<1x32xbf16>
    %c13 = arith.constant 13 : index
    %c0_114 = arith.constant 0 : index
    %c0_115 = arith.constant 0 : index
    %270 = vector.load %arg5[%c13, %c0_114, %c0_115] : memref<24x32x128xbf16, #tpu.memory_space<vmem>>, vector<1x32x128xbf16>
    %271 = vector.shape_cast %270 : vector<1x32x128xbf16> to vector<32x128xbf16>
    %cst_116 = arith.constant dense<0.000000e+00> : vector<1x128xf32>
    %272 = tpu.matmul %269, %271, %cst_116 {dimension_numbers = #tpu.dot_dimension_numbers<[1], [0], [0], [1], [0, 0, 1, 1], [], []>} : vector<1x32xbf16>, vector<32x128xbf16>, vector<1x128xf32> -> vector<1x128xf32>
    %273 = arith.addf %260, %272 : vector<1x128xf32>
    %274 = vector.extract_strided_slice %90 {offsets = [4, 6, 0], sizes = [1, 2, 32], strides = [1, 1, 1]} : vector<8x12x32xf32> to vector<1x2x32xf32>
    %275 = vector.shape_cast %274 : vector<1x2x32xf32> to vector<2x32xf32>
    %276 = vector.extract_strided_slice %90 {offsets = [5, 6, 0], sizes = [1, 2, 32], strides = [1, 1, 1]} : vector<8x12x32xf32> to vector<1x2x32xf32>
    %277 = vector.shape_cast %276 : vector<1x2x32xf32> to vector<2x32xf32>
    %278 = arith.maximumf %275, %277 : vector<2x32xf32>
    %279 = vector.extract_strided_slice %278 {offsets = [0, 0], sizes = [1, 32], strides = [1, 1]} : vector<2x32xf32> to vector<1x32xf32>
    %280 = vector.extract_strided_slice %278 {offsets = [1, 0], sizes = [1, 32], strides = [1, 1]} : vector<2x32xf32> to vector<1x32xf32>
    %281 = arith.maximumf %279, %280 : vector<1x32xf32>
    %282 = arith.truncf %281 : vector<1x32xf32> to vector<1x32xbf16>
    %c14 = arith.constant 14 : index
    %c0_117 = arith.constant 0 : index
    %c0_118 = arith.constant 0 : index
    %283 = vector.load %arg5[%c14, %c0_117, %c0_118] : memref<24x32x128xbf16, #tpu.memory_space<vmem>>, vector<1x32x128xbf16>
    %284 = vector.shape_cast %283 : vector<1x32x128xbf16> to vector<32x128xbf16>
    %cst_119 = arith.constant dense<0.000000e+00> : vector<1x128xf32>
    %285 = tpu.matmul %282, %284, %cst_119 {dimension_numbers = #tpu.dot_dimension_numbers<[1], [0], [0], [1], [0, 0, 1, 1], [], []>} : vector<1x32xbf16>, vector<32x128xbf16>, vector<1x128xf32> -> vector<1x128xf32>
    %286 = arith.addf %273, %285 : vector<1x128xf32>
    %287 = vector.extract_strided_slice %90 {offsets = [6, 6, 0], sizes = [1, 2, 32], strides = [1, 1, 1]} : vector<8x12x32xf32> to vector<1x2x32xf32>
    %288 = vector.shape_cast %287 : vector<1x2x32xf32> to vector<2x32xf32>
    %289 = vector.extract_strided_slice %90 {offsets = [7, 6, 0], sizes = [1, 2, 32], strides = [1, 1, 1]} : vector<8x12x32xf32> to vector<1x2x32xf32>
    %290 = vector.shape_cast %289 : vector<1x2x32xf32> to vector<2x32xf32>
    %291 = arith.maximumf %288, %290 : vector<2x32xf32>
    %292 = vector.extract_strided_slice %291 {offsets = [0, 0], sizes = [1, 32], strides = [1, 1]} : vector<2x32xf32> to vector<1x32xf32>
    %293 = vector.extract_strided_slice %291 {offsets = [1, 0], sizes = [1, 32], strides = [1, 1]} : vector<2x32xf32> to vector<1x32xf32>
    %294 = arith.maximumf %292, %293 : vector<1x32xf32>
    %295 = arith.truncf %294 : vector<1x32xf32> to vector<1x32xbf16>
    %c15 = arith.constant 15 : index
    %c0_120 = arith.constant 0 : index
    %c0_121 = arith.constant 0 : index
    %296 = vector.load %arg5[%c15, %c0_120, %c0_121] : memref<24x32x128xbf16, #tpu.memory_space<vmem>>, vector<1x32x128xbf16>
    %297 = vector.shape_cast %296 : vector<1x32x128xbf16> to vector<32x128xbf16>
    %cst_122 = arith.constant dense<0.000000e+00> : vector<1x128xf32>
    %298 = tpu.matmul %295, %297, %cst_122 {dimension_numbers = #tpu.dot_dimension_numbers<[1], [0], [0], [1], [0, 0, 1, 1], [], []>} : vector<1x32xbf16>, vector<32x128xbf16>, vector<1x128xf32> -> vector<1x128xf32>
    %299 = arith.addf %286, %298 : vector<1x128xf32>
    %300 = vector.extract_strided_slice %90 {offsets = [0, 8, 0], sizes = [1, 2, 32], strides = [1, 1, 1]} : vector<8x12x32xf32> to vector<1x2x32xf32>
    %301 = vector.shape_cast %300 : vector<1x2x32xf32> to vector<2x32xf32>
    %302 = vector.extract_strided_slice %90 {offsets = [1, 8, 0], sizes = [1, 2, 32], strides = [1, 1, 1]} : vector<8x12x32xf32> to vector<1x2x32xf32>
    %303 = vector.shape_cast %302 : vector<1x2x32xf32> to vector<2x32xf32>
    %304 = arith.maximumf %301, %303 : vector<2x32xf32>
    %305 = vector.extract_strided_slice %304 {offsets = [0, 0], sizes = [1, 32], strides = [1, 1]} : vector<2x32xf32> to vector<1x32xf32>
    %306 = vector.extract_strided_slice %304 {offsets = [1, 0], sizes = [1, 32], strides = [1, 1]} : vector<2x32xf32> to vector<1x32xf32>
    %307 = arith.maximumf %305, %306 : vector<1x32xf32>
    %308 = arith.truncf %307 : vector<1x32xf32> to vector<1x32xbf16>
    %c16 = arith.constant 16 : index
    %c0_123 = arith.constant 0 : index
    %c0_124 = arith.constant 0 : index
    %309 = vector.load %arg5[%c16, %c0_123, %c0_124] : memref<24x32x128xbf16, #tpu.memory_space<vmem>>, vector<1x32x128xbf16>
    %310 = vector.shape_cast %309 : vector<1x32x128xbf16> to vector<32x128xbf16>
    %cst_125 = arith.constant dense<0.000000e+00> : vector<1x128xf32>
    %311 = tpu.matmul %308, %310, %cst_125 {dimension_numbers = #tpu.dot_dimension_numbers<[1], [0], [0], [1], [0, 0, 1, 1], [], []>} : vector<1x32xbf16>, vector<32x128xbf16>, vector<1x128xf32> -> vector<1x128xf32>
    %312 = arith.addf %299, %311 : vector<1x128xf32>
    %313 = vector.extract_strided_slice %90 {offsets = [2, 8, 0], sizes = [1, 2, 32], strides = [1, 1, 1]} : vector<8x12x32xf32> to vector<1x2x32xf32>
    %314 = vector.shape_cast %313 : vector<1x2x32xf32> to vector<2x32xf32>
    %315 = vector.extract_strided_slice %90 {offsets = [3, 8, 0], sizes = [1, 2, 32], strides = [1, 1, 1]} : vector<8x12x32xf32> to vector<1x2x32xf32>
    %316 = vector.shape_cast %315 : vector<1x2x32xf32> to vector<2x32xf32>
    %317 = arith.maximumf %314, %316 : vector<2x32xf32>
    %318 = vector.extract_strided_slice %317 {offsets = [0, 0], sizes = [1, 32], strides = [1, 1]} : vector<2x32xf32> to vector<1x32xf32>
    %319 = vector.extract_strided_slice %317 {offsets = [1, 0], sizes = [1, 32], strides = [1, 1]} : vector<2x32xf32> to vector<1x32xf32>
    %320 = arith.maximumf %318, %319 : vector<1x32xf32>
    %321 = arith.truncf %320 : vector<1x32xf32> to vector<1x32xbf16>
    %c17 = arith.constant 17 : index
    %c0_126 = arith.constant 0 : index
    %c0_127 = arith.constant 0 : index
    %322 = vector.load %arg5[%c17, %c0_126, %c0_127] : memref<24x32x128xbf16, #tpu.memory_space<vmem>>, vector<1x32x128xbf16>
    %323 = vector.shape_cast %322 : vector<1x32x128xbf16> to vector<32x128xbf16>
    %cst_128 = arith.constant dense<0.000000e+00> : vector<1x128xf32>
    %324 = tpu.matmul %321, %323, %cst_128 {dimension_numbers = #tpu.dot_dimension_numbers<[1], [0], [0], [1], [0, 0, 1, 1], [], []>} : vector<1x32xbf16>, vector<32x128xbf16>, vector<1x128xf32> -> vector<1x128xf32>
    %325 = arith.addf %312, %324 : vector<1x128xf32>
    %326 = vector.extract_strided_slice %90 {offsets = [4, 8, 0], sizes = [1, 2, 32], strides = [1, 1, 1]} : vector<8x12x32xf32> to vector<1x2x32xf32>
    %327 = vector.shape_cast %326 : vector<1x2x32xf32> to vector<2x32xf32>
    %328 = vector.extract_strided_slice %90 {offsets = [5, 8, 0], sizes = [1, 2, 32], strides = [1, 1, 1]} : vector<8x12x32xf32> to vector<1x2x32xf32>
    %329 = vector.shape_cast %328 : vector<1x2x32xf32> to vector<2x32xf32>
    %330 = arith.maximumf %327, %329 : vector<2x32xf32>
    %331 = vector.extract_strided_slice %330 {offsets = [0, 0], sizes = [1, 32], strides = [1, 1]} : vector<2x32xf32> to vector<1x32xf32>
    %332 = vector.extract_strided_slice %330 {offsets = [1, 0], sizes = [1, 32], strides = [1, 1]} : vector<2x32xf32> to vector<1x32xf32>
    %333 = arith.maximumf %331, %332 : vector<1x32xf32>
    %334 = arith.truncf %333 : vector<1x32xf32> to vector<1x32xbf16>
    %c18 = arith.constant 18 : index
    %c0_129 = arith.constant 0 : index
    %c0_130 = arith.constant 0 : index
    %335 = vector.load %arg5[%c18, %c0_129, %c0_130] : memref<24x32x128xbf16, #tpu.memory_space<vmem>>, vector<1x32x128xbf16>
    %336 = vector.shape_cast %335 : vector<1x32x128xbf16> to vector<32x128xbf16>
    %cst_131 = arith.constant dense<0.000000e+00> : vector<1x128xf32>
    %337 = tpu.matmul %334, %336, %cst_131 {dimension_numbers = #tpu.dot_dimension_numbers<[1], [0], [0], [1], [0, 0, 1, 1], [], []>} : vector<1x32xbf16>, vector<32x128xbf16>, vector<1x128xf32> -> vector<1x128xf32>
    %338 = arith.addf %325, %337 : vector<1x128xf32>
    %339 = vector.extract_strided_slice %90 {offsets = [6, 8, 0], sizes = [1, 2, 32], strides = [1, 1, 1]} : vector<8x12x32xf32> to vector<1x2x32xf32>
    %340 = vector.shape_cast %339 : vector<1x2x32xf32> to vector<2x32xf32>
    %341 = vector.extract_strided_slice %90 {offsets = [7, 8, 0], sizes = [1, 2, 32], strides = [1, 1, 1]} : vector<8x12x32xf32> to vector<1x2x32xf32>
    %342 = vector.shape_cast %341 : vector<1x2x32xf32> to vector<2x32xf32>
    %343 = arith.maximumf %340, %342 : vector<2x32xf32>
    %344 = vector.extract_strided_slice %343 {offsets = [0, 0], sizes = [1, 32], strides = [1, 1]} : vector<2x32xf32> to vector<1x32xf32>
    %345 = vector.extract_strided_slice %343 {offsets = [1, 0], sizes = [1, 32], strides = [1, 1]} : vector<2x32xf32> to vector<1x32xf32>
    %346 = arith.maximumf %344, %345 : vector<1x32xf32>
    %347 = arith.truncf %346 : vector<1x32xf32> to vector<1x32xbf16>
    %c19 = arith.constant 19 : index
    %c0_132 = arith.constant 0 : index
    %c0_133 = arith.constant 0 : index
    %348 = vector.load %arg5[%c19, %c0_132, %c0_133] : memref<24x32x128xbf16, #tpu.memory_space<vmem>>, vector<1x32x128xbf16>
    %349 = vector.shape_cast %348 : vector<1x32x128xbf16> to vector<32x128xbf16>
    %cst_134 = arith.constant dense<0.000000e+00> : vector<1x128xf32>
    %350 = tpu.matmul %347, %349, %cst_134 {dimension_numbers = #tpu.dot_dimension_numbers<[1], [0], [0], [1], [0, 0, 1, 1], [], []>} : vector<1x32xbf16>, vector<32x128xbf16>, vector<1x128xf32> -> vector<1x128xf32>
    %351 = arith.addf %338, %350 : vector<1x128xf32>
    %352 = vector.extract_strided_slice %90 {offsets = [0, 10, 0], sizes = [1, 2, 32], strides = [1, 1, 1]} : vector<8x12x32xf32> to vector<1x2x32xf32>
    %353 = vector.shape_cast %352 : vector<1x2x32xf32> to vector<2x32xf32>
    %354 = vector.extract_strided_slice %90 {offsets = [1, 10, 0], sizes = [1, 2, 32], strides = [1, 1, 1]} : vector<8x12x32xf32> to vector<1x2x32xf32>
    %355 = vector.shape_cast %354 : vector<1x2x32xf32> to vector<2x32xf32>
    %356 = arith.maximumf %353, %355 : vector<2x32xf32>
    %357 = vector.extract_strided_slice %356 {offsets = [0, 0], sizes = [1, 32], strides = [1, 1]} : vector<2x32xf32> to vector<1x32xf32>
    %358 = vector.extract_strided_slice %356 {offsets = [1, 0], sizes = [1, 32], strides = [1, 1]} : vector<2x32xf32> to vector<1x32xf32>
    %359 = arith.maximumf %357, %358 : vector<1x32xf32>
    %360 = arith.truncf %359 : vector<1x32xf32> to vector<1x32xbf16>
    %c20 = arith.constant 20 : index
    %c0_135 = arith.constant 0 : index
    %c0_136 = arith.constant 0 : index
    %361 = vector.load %arg5[%c20, %c0_135, %c0_136] : memref<24x32x128xbf16, #tpu.memory_space<vmem>>, vector<1x32x128xbf16>
    %362 = vector.shape_cast %361 : vector<1x32x128xbf16> to vector<32x128xbf16>
    %cst_137 = arith.constant dense<0.000000e+00> : vector<1x128xf32>
    %363 = tpu.matmul %360, %362, %cst_137 {dimension_numbers = #tpu.dot_dimension_numbers<[1], [0], [0], [1], [0, 0, 1, 1], [], []>} : vector<1x32xbf16>, vector<32x128xbf16>, vector<1x128xf32> -> vector<1x128xf32>
    %364 = arith.addf %351, %363 : vector<1x128xf32>
    %365 = vector.extract_strided_slice %90 {offsets = [2, 10, 0], sizes = [1, 2, 32], strides = [1, 1, 1]} : vector<8x12x32xf32> to vector<1x2x32xf32>
    %366 = vector.shape_cast %365 : vector<1x2x32xf32> to vector<2x32xf32>
    %367 = vector.extract_strided_slice %90 {offsets = [3, 10, 0], sizes = [1, 2, 32], strides = [1, 1, 1]} : vector<8x12x32xf32> to vector<1x2x32xf32>
    %368 = vector.shape_cast %367 : vector<1x2x32xf32> to vector<2x32xf32>
    %369 = arith.maximumf %366, %368 : vector<2x32xf32>
    %370 = vector.extract_strided_slice %369 {offsets = [0, 0], sizes = [1, 32], strides = [1, 1]} : vector<2x32xf32> to vector<1x32xf32>
    %371 = vector.extract_strided_slice %369 {offsets = [1, 0], sizes = [1, 32], strides = [1, 1]} : vector<2x32xf32> to vector<1x32xf32>
    %372 = arith.maximumf %370, %371 : vector<1x32xf32>
    %373 = arith.truncf %372 : vector<1x32xf32> to vector<1x32xbf16>
    %c21 = arith.constant 21 : index
    %c0_138 = arith.constant 0 : index
    %c0_139 = arith.constant 0 : index
    %374 = vector.load %arg5[%c21, %c0_138, %c0_139] : memref<24x32x128xbf16, #tpu.memory_space<vmem>>, vector<1x32x128xbf16>
    %375 = vector.shape_cast %374 : vector<1x32x128xbf16> to vector<32x128xbf16>
    %cst_140 = arith.constant dense<0.000000e+00> : vector<1x128xf32>
    %376 = tpu.matmul %373, %375, %cst_140 {dimension_numbers = #tpu.dot_dimension_numbers<[1], [0], [0], [1], [0, 0, 1, 1], [], []>} : vector<1x32xbf16>, vector<32x128xbf16>, vector<1x128xf32> -> vector<1x128xf32>
    %377 = arith.addf %364, %376 : vector<1x128xf32>
    %378 = vector.extract_strided_slice %90 {offsets = [4, 10, 0], sizes = [1, 2, 32], strides = [1, 1, 1]} : vector<8x12x32xf32> to vector<1x2x32xf32>
    %379 = vector.shape_cast %378 : vector<1x2x32xf32> to vector<2x32xf32>
    %380 = vector.extract_strided_slice %90 {offsets = [5, 10, 0], sizes = [1, 2, 32], strides = [1, 1, 1]} : vector<8x12x32xf32> to vector<1x2x32xf32>
    %381 = vector.shape_cast %380 : vector<1x2x32xf32> to vector<2x32xf32>
    %382 = arith.maximumf %379, %381 : vector<2x32xf32>
    %383 = vector.extract_strided_slice %382 {offsets = [0, 0], sizes = [1, 32], strides = [1, 1]} : vector<2x32xf32> to vector<1x32xf32>
    %384 = vector.extract_strided_slice %382 {offsets = [1, 0], sizes = [1, 32], strides = [1, 1]} : vector<2x32xf32> to vector<1x32xf32>
    %385 = arith.maximumf %383, %384 : vector<1x32xf32>
    %386 = arith.truncf %385 : vector<1x32xf32> to vector<1x32xbf16>
    %c22 = arith.constant 22 : index
    %c0_141 = arith.constant 0 : index
    %c0_142 = arith.constant 0 : index
    %387 = vector.load %arg5[%c22, %c0_141, %c0_142] : memref<24x32x128xbf16, #tpu.memory_space<vmem>>, vector<1x32x128xbf16>
    %388 = vector.shape_cast %387 : vector<1x32x128xbf16> to vector<32x128xbf16>
    %cst_143 = arith.constant dense<0.000000e+00> : vector<1x128xf32>
    %389 = tpu.matmul %386, %388, %cst_143 {dimension_numbers = #tpu.dot_dimension_numbers<[1], [0], [0], [1], [0, 0, 1, 1], [], []>} : vector<1x32xbf16>, vector<32x128xbf16>, vector<1x128xf32> -> vector<1x128xf32>
    %390 = arith.addf %377, %389 : vector<1x128xf32>
    %391 = vector.extract_strided_slice %90 {offsets = [6, 10, 0], sizes = [1, 2, 32], strides = [1, 1, 1]} : vector<8x12x32xf32> to vector<1x2x32xf32>
    %392 = vector.shape_cast %391 : vector<1x2x32xf32> to vector<2x32xf32>
    %393 = vector.extract_strided_slice %90 {offsets = [7, 10, 0], sizes = [1, 2, 32], strides = [1, 1, 1]} : vector<8x12x32xf32> to vector<1x2x32xf32>
    %394 = vector.shape_cast %393 : vector<1x2x32xf32> to vector<2x32xf32>
    %395 = arith.maximumf %392, %394 : vector<2x32xf32>
    %396 = vector.extract_strided_slice %395 {offsets = [0, 0], sizes = [1, 32], strides = [1, 1]} : vector<2x32xf32> to vector<1x32xf32>
    %397 = vector.extract_strided_slice %395 {offsets = [1, 0], sizes = [1, 32], strides = [1, 1]} : vector<2x32xf32> to vector<1x32xf32>
    %398 = arith.maximumf %396, %397 : vector<1x32xf32>
    %399 = arith.truncf %398 : vector<1x32xf32> to vector<1x32xbf16>
    %c23 = arith.constant 23 : index
    %c0_144 = arith.constant 0 : index
    %c0_145 = arith.constant 0 : index
    %400 = vector.load %arg5[%c23, %c0_144, %c0_145] : memref<24x32x128xbf16, #tpu.memory_space<vmem>>, vector<1x32x128xbf16>
    %401 = vector.shape_cast %400 : vector<1x32x128xbf16> to vector<32x128xbf16>
    %cst_146 = arith.constant dense<0.000000e+00> : vector<1x128xf32>
    %402 = tpu.matmul %399, %401, %cst_146 {dimension_numbers = #tpu.dot_dimension_numbers<[1], [0], [0], [1], [0, 0, 1, 1], [], []>} : vector<1x32xbf16>, vector<32x128xbf16>, vector<1x128xf32> -> vector<1x128xf32>
    %403 = arith.addf %390, %402 : vector<1x128xf32>
    %cst_147 = arith.constant 0.000000e+00 : f32
    %404 = vector.broadcast %cst_147 : f32 to vector<1x128xf32>
    %405 = arith.maximumf %403, %404 : vector<1x128xf32>
    %c0_148 = arith.constant 0 : index
    %c0_149 = arith.constant 0 : index
    %406 = vector.load %arg7[%c0_148, %c0_149] : memref<1x128xf32, #tpu.memory_space<vmem>>, vector<1x128xf32>
    tpu.vector_store %arg7[%c0_148, %c0_149], %405 {strides = array<i32>} : memref<1x128xf32, #tpu.memory_space<vmem>>, vector<1x128xf32>,
    return
  }
}

</mosaic_0001>

<bundles_post_ra>
// kernel: cnn_forward.1
= control target key start
LH: loop header
LB: loop body
LE: loop exit
PB: predicated region body
PF: predicated region fallthrough
CT: control target
= control target key end

     0   :  { %vm303_vm0 = vcmask 392192   ;;  %vm7924_vm1 = vmmov 0   ;;  %vm3223_vm2 = vcmask 523264   ;;  %vm3936_vm3 = vcmask 1046528   ;;  %s7925_s15 = smov 64   ;;  %s7926_s16 = smov 96   ;;  %s10266_s1 = inlined_call_operand.vmem [shape: bf16[48,64], index: 1, kind: input, shape index: {}]   ;;  %s10267_s0 = inlined_call_operand.vmem [shape: bf16[4,576,48], index: 0, kind: input, shape index: {}]   ;;  %s10268_s3 = inlined_call_operand.vmem [shape: bf16[4,64,128], index: 3, kind: input, shape index: {}]   ;;  %s10269_s2 = inlined_call_operand.vmem [shape: f32[1,64], index: 2, kind: input, shape index: {}]   ;;  %s10270_s5 = inlined_call_operand.vmem [shape: bf16[24,32,128], index: 5, kind: input, shape index: {}]   ;;  %s10271_s4 = inlined_call_operand.vmem [shape: f32[1,1,32], index: 4, kind: input, shape index: {}]   ;;  %s10272_s6 = inlined_call_operand.vmem [shape: f32[1,128], index: 6, kind: input, shape index: {}]   ;;  %s10273_s7 = inlined_call_operand.vmem [shape: f32[1,128], index: 7, kind: output, shape index: {}]  }
   0x1   :  { %v7971_v0 = vld [vmem:[%s10266_s1] sm:$0xff]   ;;  %v7976_v1 = vld [vmem:[%s10266_s1 + $0x8] sm:$0xff]   ;;  %v7983_v2 = vld [vmem:[%s10266_s1 + $0x10] sm:$0xff]   ;;  %s7927_s17 = smov 32   ;;  %vm4271_vm4 = vcmask 261120  }
   0x2   :  { %6820 = vmatprep.subr.bf16.mxu0 %v7971_v0  ;;  %7500 = vmatprep.subr.bf16.mxu1 %v7971_v0  ;;  %v7715_v3 = vld [vmem:[%s10267_s0] sm:$0xff]   ;;  %v7717_v5 = vld [vmem:[%s10267_s0 + $0x8] sm:$0xff]   ;;  %v7719_v7 = vld [vmem:[%s10267_s0 + $0x10] sm:$0xff]  }
   0x3   :  { %6821 = vmatpush3.bf16.msra.mxu0 %v7971_v0  ;;  %7503 = vmatpush3.bf16.msra.mxu1 %v7971_v0  ;;  %v7716_v4 = vld [vmem:[%s10267_s0 + $0xc0] sm:$0xff]   ;;  %v7718_v6 = vld [vmem:[%s10267_s0 + $0xc8] sm:$0xff]   ;;  %v7720_v8 = vld [vmem:[%s10267_s0 + $0xd0] sm:$0xff]  }
   0x4   :  { %6822 = vmatprep.subr.bf16.mxu0 %v7976_v1  ;;  %7501 = vmatprep.subr.bf16.mxu1 %v7976_v1  ;;  %v7721_v9 = vld [vmem:[%s10267_s0 + $0x18] sm:$0xff]   ;;  %v7723_v11 = vld [vmem:[%s10267_s0 + $0x20] sm:$0xff]   ;;  %v7725_v13 = vld [vmem:[%s10267_s0 + $0x28] sm:$0xff]  }
   0x5   :  { %6826 = vmatprep.mubr.msk.bf16.mxu0 %vm303_vm0, %v7715_v3  ;;  %6874 = vmatprep.mubr.msk.bf16.mxu1 %vm303_vm0, %v7716_v4  ;;  %v7722_v10 = vld [vmem:[%s10267_s0 + $0xd8] sm:$0xff]   ;;  %v7724_v12 = vld [vmem:[%s10267_s0 + $0xe0] sm:$0xff]   ;;  %v7726_v14 = vld [vmem:[%s10267_s0 + $0xe8] sm:$0xff]  }
   0x6   :  { %v7727_v15 = vld [vmem:[%s10267_s0 + $0x30] sm:$0xff]   ;;  %v7729_v17 = vld [vmem:[%s10267_s0 + $0x38] sm:$0xff]   ;;  %v7731_v19 = vld [vmem:[%s10267_s0 + $0x40] sm:$0xff]  }
   0x7   :  { %6823 = vmatpush3.bf16.msra.mxu0 %v7976_v1  ;;  %7504 = vmatpush3.bf16.msra.mxu1 %v7976_v1  ;;  %v7728_v16 = vld [vmem:[%s10267_s0 + $0xf0] sm:$0xff]   ;;  %v7730_v18 = vld [vmem:[%s10267_s0 + $0xf8] sm:$0xff]   ;;  %v7732_v20 = vld [vmem:[%s10267_s0 + $0x100] sm:$0xff]  }
   0x8   :  { %6824 = vmatprep.subr.bf16.mxu0 %v7983_v2  ;;  %7502 = vmatprep.subr.bf16.mxu1 %v7983_v2  ;;  %v7733_v21 = vld [vmem:[%s10267_s0 + $0x48] sm:$0xff]   ;;  %v7735_v23 = vld [vmem:[%s10267_s0 + $0x50] sm:$0xff]   ;;  %v7737_v25 = vld [vmem:[%s10267_s0 + $0x58] sm:$0xff]  }
   0x9   :  { %v7734_v22 = vld [vmem:[%s10267_s0 + $0x108] sm:$0xff]   ;;  %v7736_v24 = vld [vmem:[%s10267_s0 + $0x110] sm:$0xff]   ;;  %v7738_v26 = vld [vmem:[%s10267_s0 + $0x118] sm:$0xff]  }
   0xa   :  { %v7739_v27 = vld [vmem:[%s10267_s0 + $0x60] sm:$0xff]   ;;  %v7741_v29 = vld [vmem:[%s10267_s0 + $0x68] sm:$0xff]   ;;  %v7743_v31 = vld [vmem:[%s10267_s0 + $0x70] sm:$0xff]  }
   0xb   :  { %6825 = vmatpush3.bf16.msra.mxu0 %v7983_v2  ;;  %7505 = vmatpush3.bf16.msra.mxu1 %v7983_v2  ;;  %v7740_v28 = vld [vmem:[%s10267_s0 + $0x120] sm:$0xff]   ;;  %v7742_v30 = vld [vmem:[%s10267_s0 + $0x128] sm:$0xff]   ;;  %v7744_v32 = vld [vmem:[%s10267_s0 + $0x130] sm:$0xff]  }
   0xc   :  { %6898 = vmatprep.subr.bf16.mxu1 %v7971_v0  ;;  %6976 = vmatprep.subr.bf16.mxu0 %v7971_v0  ;;  %v7745_v33 = vld [vmem:[%s10267_s0 + $0x78] sm:$0xff]   ;;  %v7747_v35 = vld [vmem:[%s10267_s0 + $0x80] sm:$0xff]   ;;  %v7749_v37 = vld [vmem:[%s10267_s0 + $0x88] sm:$0xff]  }
   0xd   :  { %v7746_v34 = vld [vmem:[%s10267_s0 + $0x138] sm:$0xff]   ;;  %v7748_v36 = vld [vmem:[%s10267_s0 + $0x140] sm:$0xff]   ;;  %v7750_v38 = vld [vmem:[%s10267_s0 + $0x148] sm:$0xff]  }
   0xe   :  { %6827 = vmatmul.mubr.msk.bf16.vlgmr.msra.gmra.mrb[0].mxu0 %vm303_vm0, %v7717_v5  ;;  %6875 = vmatmul.mubr.msk.bf16.vlgmr.msra.gmra.mrb[0].mxu1 %vm303_vm0, %v7718_v6  ;;  %v7751_v39 = vld [vmem:[%s10267_s0 + $0x90] sm:$0xff]   ;;  %v7753_v41 = vld [vmem:[%s10267_s0 + $0x98] sm:$0xff]   ;;  %v7755_v43 = vld [vmem:[%s10267_s0 + $0xa0] sm:$0xff]  }
   0xf   :  { %6899 = vmatpush3.bf16.msra.mxu1 %v7971_v0  ;;  %6830 = vmatprep.mubr.msk.bf16.mxu0 %vm303_vm0, %v7719_v7  ;;  %v7752_v40 = vld [vmem:[%s10267_s0 + $0x150] sm:$0xff]   ;;  %v7754_v42 = vld [vmem:[%s10267_s0 + $0x158] sm:$0xff]   ;;  %v7756_v44 = vld [vmem:[%s10267_s0 + $0x160] sm:$0xff]  }
  0x10   :  { %6878 = vmatprep.mubr.msk.bf16.mxu1 %vm303_vm0, %v7720_v8  ;;  %6900 = vmatprep.subr.bf16.mxu1 %v7976_v1  ;;  %v7757_v45 = vld [vmem:[%s10267_s0 + $0xa8] sm:$0xff]   ;;  %v7759_v47 = vld [vmem:[%s10267_s0 + $0xb0] sm:$0xff]   ;;  %v7761_v49 = vld [vmem:[%s10267_s0 + $0xb8] sm:$0xff]  }
  0x11   :  { %6977 = vmatpush3.bf16.msra.mxu0 %v7971_v0  ;;  %v7758_v46 = vld [vmem:[%s10267_s0 + $0x168] sm:$0xff]   ;;  %v7760_v48 = vld [vmem:[%s10267_s0 + $0x170] sm:$0xff]   ;;  %v7762_v50 = vld [vmem:[%s10267_s0 + $0x178] sm:$0xff]  }
  0x12   :  { %6978 = vmatprep.subr.bf16.mxu0 %v7976_v1  ;;  %v7763_v51 = vld [vmem:[%s10267_s0 + $0x180] sm:$0xff]   ;;  %v7765_v53 = vld [vmem:[%s10267_s0 + $0x188] sm:$0xff]   ;;  %v7767_v55 = vld [vmem:[%s10267_s0 + $0x190] sm:$0xff]  }
  0x13   :  { %6901 = vmatpush3.bf16.msra.mxu1 %v7976_v1  ;;  %v7764_v52 = vld [vmem:[%s10267_s0 + $0x240] sm:$0xff]   ;;  %v7766_v54 = vld [vmem:[%s10267_s0 + $0x248] sm:$0xff]   ;;  %v7768_v56 = vld [vmem:[%s10267_s0 + $0x250] sm:$0xff]  }
  0x14   :  { %6902 = vmatprep.subr.bf16.mxu1 %v7983_v2  ;;  %v7769_v57 = vld [vmem:[%s10267_s0 + $0x198] sm:$0xff]   ;;  %v7771_v59 = vld [vmem:[%s10267_s0 + $0x1a0] sm:$0xff]   ;;  %v7773_v61 = vld [vmem:[%s10267_s0 + $0x1a8] sm:$0xff]  }
  0x15   :  { %6979 = vmatpush3.bf16.msra.mxu0 %v7976_v1  ;;  %v7770_v58 = vld [vmem:[%s10267_s0 + $0x258] sm:$0xff]   ;;  %v7772_v60 = vld [vmem:[%s10267_s0 + $0x260] sm:$0xff]   ;;  %v7774_v62 = vld [vmem:[%s10267_s0 + $0x268] sm:$0xff]  }
  0x16   :  { %6831 = vmatmul.mubr.msk.bf16.gmra.mrb[4].mxu0 %vm303_vm0, %v7721_v9  ;;  %6879 = vmatmul.mubr.msk.bf16.gmra.mrb[4].mxu1 %vm303_vm0, %v7722_v10  ;;  %v7775_v63 = vld [vmem:[%s10267_s0 + $0x1b0] sm:$0xff]   ;;  %v7779_v3 = vld [vmem:[%s10267_s0 + $0x1c0] sm:$0xff]   ;;  %v7781_v5 = vld [vmem:[%s10267_s0 + $0x1c8] sm:$0xff]  }
  0x17   :  { %6834 = vmatprep.mubr.msk.bf16.mxu0 %vm303_vm0, %v7723_v11  ;;  %6882 = vmatprep.mubr.msk.bf16.mxu1 %vm303_vm0, %v7724_v12  ;;  %v7780_v4 = vld [vmem:[%s10267_s0 + $0x280] sm:$0xff]   ;;  %v7782_v6 = vld [vmem:[%s10267_s0 + $0x288] sm:$0xff]   ;;  %v7783_v7 = vld [vmem:[%s10267_s0 + $0x1d0] sm:$0xff]  }
  0x18   :  { %6903 = vmatpush3.bf16.msra.mxu1 %v7983_v2  ;;  %6980 = vmatprep.subr.bf16.mxu0 %v7983_v2  ;;  %v7784_v8 = vld [vmem:[%s10267_s0 + $0x290] sm:$0xff]   ;;  %v7785_v9 = vld [vmem:[%s10267_s0 + $0x1d8] sm:$0xff]   ;;  %v7787_v11 = vld [vmem:[%s10267_s0 + $0x1e0] sm:$0xff]  }
  0x19   :  { %7054 = vmatprep.subr.bf16.mxu1 %v7971_v0  ;;  %6981 = vmatpush3.bf16.msra.mxu0 %v7983_v2  ;;  %v7786_v10 = vld [vmem:[%s10267_s0 + $0x298] sm:$0xff]   ;;  %v7788_v12 = vld [vmem:[%s10267_s0 + $0x2a0] sm:$0xff]  }
  0x1e   :  { %6835 = vmatmul.mubr.msk.bf16.gmra.mrb[8].mxu0 %vm303_vm0, %v7725_v13  ;;  %6883 = vmatmul.mubr.msk.bf16.gmra.mrb[8].mxu1 %vm303_vm0, %v7726_v14  ;;  %v7789_v13 = vld [vmem:[%s10267_s0 + $0x1e8] sm:$0xff]  }
  0x1f   :  { %6838 = vmatprep.mubr.msk.bf16.mxu0 %vm303_vm0, %v7727_v15  ;;  %6886 = vmatprep.mubr.msk.bf16.mxu1 %vm303_vm0, %v7728_v16  ;;  %v7790_v14 = vld [vmem:[%s10267_s0 + $0x2a8] sm:$0xff]   ;;  %v7791_v15 = vld [vmem:[%s10267_s0 + $0x1f0] sm:$0xff]  }
  0x20   :  { %v7792_v16 = vld [vmem:[%s10267_s0 + $0x2b0] sm:$0xff]  }
  0x26   :  { %6839 = vmatmul.mubr.msk.bf16.gmra.mrb[12].mxu0 %vm303_vm0, %v7729_v17  ;;  %6887 = vmatmul.mubr.msk.bf16.gmra.mrb[12].mxu1 %vm303_vm0, %v7730_v18  ;;  %v7793_v17 = vld [vmem:[%s10267_s0 + $0x1f8] sm:$0xff]  }
  0x27   :  { %6842 = vmatprep.mubr.msk.bf16.mxu0 %vm303_vm0, %v7731_v19  ;;  %6890 = vmatprep.mubr.msk.bf16.mxu1 %vm303_vm0, %v7732_v20  ;;  %v7794_v18 = vld [vmem:[%s10267_s0 + $0x2b8] sm:$0xff]   ;;  %v7795_v19 = vld [vmem:[%s10267_s0 + $0x200] sm:$0xff]  }
  0x28   :  { %v7796_v20 = vld [vmem:[%s10267_s0 + $0x2c0] sm:$0xff]  }
  0x2e   :  { %6843 = vmatmul.mubr.msk.bf16.gmra.mrb[16].mxu0 %vm303_vm0, %v7733_v21  ;;  %6891 = vmatmul.mubr.msk.bf16.gmra.mrb[16].mxu1 %vm303_vm0, %v7734_v22  ;;  %v7797_v21 = vld [vmem:[%s10267_s0 + $0x208] sm:$0xff]  }
  0x2f   :  { %6846 = vmatprep.mubr.msk.bf16.mxu0 %vm303_vm0, %v7735_v23  ;;  %6894 = vmatprep.mubr.msk.bf16.mxu1 %vm303_vm0, %v7736_v24  ;;  %v7798_v22 = vld [vmem:[%s10267_s0 + $0x2c8] sm:$0xff]   ;;  %v7799_v23 = vld [vmem:[%s10267_s0 + $0x210] sm:$0xff]  }
  0x30   :  { %v7800_v24 = vld [vmem:[%s10267_s0 + $0x2d0] sm:$0xff]  }
  0x36   :  { %6847 = vmatmul.mubr.msk.bf16.gmra.mrb[20].mxu0 %vm303_vm0, %v7737_v25  ;;  %6895 = vmatmul.mubr.msk.bf16.gmra.mrb[20].mxu1 %vm303_vm0, %v7738_v26  ;;  %v7801_v25 = vld [vmem:[%s10267_s0 + $0x218] sm:$0xff]  }
  0x37   :  { %6850 = vmatprep.mubr.msk.bf16.mxu0 %vm303_vm0, %v7739_v27  ;;  %6904 = vmatprep.mubr.msk.bf16.mxu1 %vm303_vm0, %v7740_v28  ;;  %v7802_v26 = vld [vmem:[%s10267_s0 + $0x2d8] sm:$0xff]   ;;  %v7803_v27 = vld [vmem:[%s10267_s0 + $0x220] sm:$0xff]  }
  0x38   :  { %v7804_v28 = vld [vmem:[%s10267_s0 + $0x2e0] sm:$0xff]  }
  0x3e   :  { %6851 = vmatmul.mubr.msk.bf16.gmra.mrb[24].mxu0 %vm303_vm0, %v7741_v29  ;;  %6905 = vmatmul.mubr.msk.bf16.vlgmr.msra.gmra.mrb[24].mxu1 %vm303_vm0, %v7742_v30  ;;  %v7805_v29 = vld [vmem:[%s10267_s0 + $0x228] sm:$0xff]  }
  0x3f   :  { %7055 = vmatpush3.bf16.msra.mxu1 %v7971_v0  ;;  %6854 = vmatprep.mubr.msk.bf16.mxu0 %vm303_vm0, %v7743_v31  ;;  %v7776_v0 = vld [vmem:[%s10267_s0 + $0x270] sm:$0xff]   ;;  %v7806_v30 = vld [vmem:[%s10267_s0 + $0x2e8] sm:$0xff]  }
  0x40   :  { %6908 = vmatprep.mubr.msk.bf16.mxu1 %vm303_vm0, %v7744_v32  ;;  %7056 = vmatprep.subr.bf16.mxu1 %v7976_v1  ;;  %v7807_v31 = vld [vmem:[%s10267_s0 + $0x230] sm:$0xff]  }
  0x41   :  { %v7808_v32 = vld [vmem:[%s10267_s0 + $0x2f0] sm:$0xff]  }
  0x43   :  { %7057 = vmatpush3.bf16.msra.mxu1 %v7976_v1  ;;  %v7777_v1 = vld [vmem:[%s10267_s0 + $0x1b8] sm:$0xff]  }
  0x44   :  { %7058 = vmatprep.subr.bf16.mxu1 %v7983_v2 }
  0x46   :  { %6855 = vmatmul.mubr.msk.bf16.gmra.mrb[28].mxu0 %vm303_vm0, %v7745_v33  ;;  %6909 = vmatmul.mubr.msk.bf16.gmra.mrb[28].mxu1 %vm303_vm0, %v7746_v34  ;;  %v7853_v33 = vld [vmem:[%s10268_s3 + $0x20] sm:$0xff]   ;;  %v7809_v34 = vld [vmem:[%s10267_s0 + $0x238] sm:$0xff]  }
  0x47   :  { %6858 = vmatprep.mubr.msk.bf16.mxu0 %vm303_vm0, %v7747_v35  ;;  %6912 = vmatprep.mubr.msk.bf16.mxu1 %vm303_vm0, %v7748_v36  ;;  %v7810_v35 = vld [vmem:[%s10267_s0 + $0x2f8] sm:$0xff]   ;;  %v10274_v36 = vmov 0.0  }
  0x48   :  { %7059 = vmatpush3.bf16.msra.mxu1 %v7983_v2  ;;  %v7778_v2 = vld [vmem:[%s10267_s0 + $0x278] sm:$0xff]   ;;  %7132 = vmatprep.subr.bf16.mxu0 %v10274_v36 }
  0x49   :  { %7308 = vmatprep.subr.bf16.mxu1 %v10274_v36 }
  0x4e   :  { %6859 = vmatmul.mubr.msk.bf16.gmra.mrb[32].mxu0 %vm303_vm0, %v7749_v37  ;;  %6913 = vmatmul.mubr.msk.bf16.gmra.mrb[32].mxu1 %vm303_vm0, %v7750_v38  ;;  %v7811_v37 = vld [vmem:[%s10267_s0 + $0x300] sm:$0xff]  }
  0x4f   :  { %6862 = vmatprep.mubr.msk.bf16.mxu0 %vm303_vm0, %v7751_v39  ;;  %6916 = vmatprep.mubr.msk.bf16.mxu1 %vm303_vm0, %v7752_v40  ;;  %v7812_v38 = vld [vmem:[%s10267_s0 + $0x360] sm:$0xff]   ;;  %v7813_v39 = vld [vmem:[%s10267_s0 + $0x308] sm:$0xff]  }
  0x50   :  { %v7814_v40 = vld [vmem:[%s10267_s0 + $0x368] sm:$0xff]  }
  0x56   :  { %6863 = vmatmul.mubr.msk.bf16.gmra.mrb[36].mxu0 %vm303_vm0, %v7753_v41  ;;  %6917 = vmatmul.mubr.msk.bf16.gmra.mrb[36].mxu1 %vm303_vm0, %v7754_v42  ;;  %v7815_v41 = vld [vmem:[%s10267_s0 + $0x310] sm:$0xff]  }
  0x57   :  { %6866 = vmatprep.mubr.msk.bf16.mxu0 %vm303_vm0, %v7755_v43  ;;  %6920 = vmatprep.mubr.msk.bf16.mxu1 %vm303_vm0, %v7756_v44  ;;  %v7816_v42 = vld [vmem:[%s10267_s0 + $0x370] sm:$0xff]   ;;  %v7817_v43 = vld [vmem:[%s10267_s0 + $0x318] sm:$0xff]  }
  0x58   :  { %v7818_v44 = vld [vmem:[%s10267_s0 + $0x378] sm:$0xff]  }
  0x5e   :  { %6867 = vmatmul.mubr.msk.bf16.gmra.mrb[40].mxu0 %vm303_vm0, %v7757_v45  ;;  %6921 = vmatmul.mubr.msk.bf16.gmra.mrb[40].mxu1 %vm303_vm0, %v7758_v46  ;;  %v7819_v45 = vld [vmem:[%s10267_s0 + $0x320] sm:$0xff]  }
  0x5f   :  { %6870 = vmatprep.mubr.msk.bf16.mxu0 %vm303_vm0, %v7759_v47  ;;  %6924 = vmatprep.mubr.msk.bf16.mxu1 %vm303_vm0, %v7760_v48  ;;  %v7820_v46 = vld [vmem:[%s10267_s0 + $0x380] sm:$0xff]   ;;  %v7821_v47 = vld [vmem:[%s10267_s0 + $0x328] sm:$0xff]  }
  0x60   :  { %v7822_v48 = vld [vmem:[%s10267_s0 + $0x388] sm:$0xff]  }
  0x66   :  { %6871 = vmatmul.mubr.msk.bf16.gmra.mrb[44].mxu0 %vm303_vm0, %v7761_v49  ;;  %6925 = vmatmul.mubr.msk.bf16.gmra.mrb[44].mxu1 %vm303_vm0, %v7762_v50  ;;  %v7823_v49 = vld [vmem:[%s10267_s0 + $0x330] sm:$0xff]  }
  0x67   :  { %6928 = vmatprep.mubr.msk.bf16.mxu1 %vm303_vm0, %v7763_v51  ;;  %6982 = vmatprep.mubr.msk.bf16.mxu0 %vm303_vm0, %v7764_v52  ;;  %v7824_v50 = vld [vmem:[%s10267_s0 + $0x390] sm:$0xff]  }
  0x6e   :  { %6929 = vmatmul.mubr.msk.bf16.gmra.mrb[48].mxu1 %vm303_vm0, %v7765_v53  ;;  %6983 = vmatmul.mubr.msk.bf16.vlgmr.msra.gmra.mrb[48].mxu0 %vm303_vm0, %v7766_v54  ;;  %v7825_v54 = vld [vmem:[%s10267_s0 + $0x338] sm:$0xff]  }
  0x6f   :  { %6932 = vmatprep.mubr.msk.bf16.mxu1 %vm303_vm0, %v7767_v55  ;;  %6986 = vmatprep.mubr.msk.bf16.mxu0 %vm303_vm0, %v7768_v56  ;;  %v7826_v55 = vld [vmem:[%s10267_s0 + $0x398] sm:$0xff]  }
  0x70   :  { %7133 = vmatpush3.bf16.msra.mxu0 %v7853_v33 }
  0x71   :  { %7134 = vmatprep.subr.bf16.mxu0 %v10274_v36 }
  0x76   :  { %6933 = vmatmul.mubr.msk.bf16.gmra.mrb[52].mxu1 %vm303_vm0, %v7769_v57  ;;  %6987 = vmatmul.mubr.msk.bf16.gmra.mrb[52].mxu0 %vm303_vm0, %v7770_v58  ;;  %v7827_v58 = vld [vmem:[%s10267_s0 + $0x340] sm:$0xff]  }
  0x77   :  { %6936 = vmatprep.mubr.msk.bf16.mxu1 %vm303_vm0, %v7771_v59  ;;  %6990 = vmatprep.mubr.msk.bf16.mxu0 %vm303_vm0, %v7772_v60  ;;  %v7828_v59 = vld [vmem:[%s10267_s0 + $0x3a0] sm:$0xff]  }
  0x7e   :  { %6937 = vmatmul.mubr.msk.bf16.gmra.mrb[56].mxu1 %vm303_vm0, %v7773_v61  ;;  %6991 = vmatmul.mubr.msk.bf16.gmra.mrb[56].mxu0 %vm303_vm0, %v7774_v62  ;;  %v7860_v61 = vld [vmem:[%s10268_s3 + $0x28] sm:$0xff]  }
  0x7f   :  { %6940 = vmatprep.mubr.msk.bf16.mxu1 %vm303_vm0, %v7775_v63  ;;  %6994 = vmatprep.mubr.msk.bf16.mxu0 %vm303_vm0, %v7776_v0 }
  0x80   :  { %7135 = vmatpush3.bf16.msra.mxu0 %v7860_v61 }
  0x81   :  { %7136 = vmatprep.subr.bf16.mxu0 %v10274_v36 }
  0x86   :  { %6941 = vmatmul.mubr.msk.bf16.gmra.mrb[60].mxu1 %vm303_vm0, %v7777_v1  ;;  %6995 = vmatmul.mubr.msk.bf16.gmra.mrb[60].mxu0 %vm303_vm0, %v7778_v2 }
  0x87   :  { %6944 = vmatprep.mubr.msk.bf16.mxu1 %vm303_vm0, %v7779_v3  ;;  %6998 = vmatprep.mubr.msk.bf16.mxu0 %vm303_vm0, %v7780_v4  ;;  %v7829_v3 = vld [vmem:[%s10267_s0 + $0x348] sm:$0xff]  }
  0x88   :  { %v7830_v4 = vld [vmem:[%s10267_s0 + $0x3a8] sm:$0xff]  }
  0x8e   :  { %6945 = vmatmul.mubr.msk.bf16.gmra.mrb[64].mxu1 %vm303_vm0, %v7781_v5  ;;  %6999 = vmatmul.mubr.msk.bf16.gmra.mrb[64].mxu0 %vm303_vm0, %v7782_v6 }
  0x8f   :  { %6948 = vmatprep.mubr.msk.bf16.mxu1 %vm303_vm0, %v7783_v7  ;;  %7002 = vmatprep.mubr.msk.bf16.mxu0 %vm303_vm0, %v7784_v8  ;;  %v7831_v7 = vld [vmem:[%s10267_s0 + $0x350] sm:$0xff]  }
  0x90   :  { %v7832_v8 = vld [vmem:[%s10267_s0 + $0x3b0] sm:$0xff]  }
  0x96   :  { %6949 = vmatmul.mubr.msk.bf16.gmra.mrb[68].mxu1 %vm303_vm0, %v7785_v9  ;;  %7003 = vmatmul.mubr.msk.bf16.gmra.mrb[68].mxu0 %vm303_vm0, %v7786_v10 }
  0x97   :  { %6952 = vmatprep.mubr.msk.bf16.mxu1 %vm303_vm0, %v7787_v11  ;;  %7006 = vmatprep.mubr.msk.bf16.mxu0 %vm303_vm0, %v7788_v12 }
  0x9e   :  { %6953 = vmatmul.mubr.msk.bf16.gmra.mrb[72].mxu1 %vm303_vm0, %v7789_v13  ;;  %7007 = vmatmul.mubr.msk.bf16.gmra.mrb[72].mxu0 %vm303_vm0, %v7790_v14 }
  0x9f   :  { %6956 = vmatprep.mubr.msk.bf16.mxu1 %vm303_vm0, %v7791_v15  ;;  %7010 = vmatprep.mubr.msk.bf16.mxu0 %vm303_vm0, %v7792_v16  ;;  %v7833_v15 = vld [vmem:[%s10267_s0 + $0x358] sm:$0xff]  }
  0xa0   :  { %v7834_v16 = vld [vmem:[%s10267_s0 + $0x3b8] sm:$0xff]  }
  0xa6   :  { %6957 = vmatmul.mubr.msk.bf16.gmra.mrb[76].mxu1 %vm303_vm0, %v7793_v17  ;;  %7011 = vmatmul.mubr.msk.bf16.gmra.mrb[76].mxu0 %vm303_vm0, %v7794_v18 }
  0xa7   :  { %6960 = vmatprep.mubr.msk.bf16.mxu1 %vm303_vm0, %v7795_v19  ;;  %7014 = vmatprep.mubr.msk.bf16.mxu0 %vm303_vm0, %v7796_v20  ;;  %v7835_v19 = vld [vmem:[%s10267_s0 + $0x3c0] sm:$0xff]  }
  0xae   :  { %6961 = vmatmul.mubr.msk.bf16.gmra.mrb[80].mxu1 %vm303_vm0, %v7797_v21  ;;  %7015 = vmatmul.mubr.msk.bf16.gmra.mrb[80].mxu0 %vm303_vm0, %v7798_v22 }
  0xaf   :  { %6964 = vmatprep.mubr.msk.bf16.mxu1 %vm303_vm0, %v7799_v23  ;;  %7018 = vmatprep.mubr.msk.bf16.mxu0 %vm303_vm0, %v7800_v24 }
  0xb6   :  { %6965 = vmatmul.mubr.msk.bf16.gmra.mrb[84].mxu1 %vm303_vm0, %v7801_v25  ;;  %7019 = vmatmul.mubr.msk.bf16.gmra.mrb[84].mxu0 %vm303_vm0, %v7802_v26  ;;  %v7836_v26 = vld [vmem:[%s10267_s0 + $0x3c8] sm:$0xff]  }
  0xb7   :  { %6968 = vmatprep.mubr.msk.bf16.mxu1 %vm303_vm0, %v7803_v27  ;;  %7022 = vmatprep.mubr.msk.bf16.mxu0 %vm303_vm0, %v7804_v28 }
  0xbe   :  { %6969 = vmatmul.mubr.msk.bf16.gmra.mrb[88].mxu1 %vm303_vm0, %v7805_v29  ;;  %7023 = vmatmul.mubr.msk.bf16.gmra.mrb[88].mxu0 %vm303_vm0, %v7806_v30  ;;  %v7837_v29 = vld [vmem:[%s10267_s0 + $0x3d0] sm:$0xff]  }
  0xbf   :  { %6972 = vmatprep.mubr.msk.bf16.mxu1 %vm303_vm0, %v7807_v31  ;;  %7026 = vmatprep.mubr.msk.bf16.mxu0 %vm303_vm0, %v7808_v32 }
  0xc6   :  { %6973 = vmatmul.mubr.msk.bf16.gmra.mrb[92].mxu1 %vm303_vm0, %v7809_v34  ;;  %7027 = vmatmul.mubr.msk.bf16.gmra.mrb[92].mxu0 %vm303_vm0, %v7810_v35 }
  0xc7   :  { %7030 = vmatprep.mubr.msk.bf16.mxu0 %vm303_vm0, %v7811_v37  ;;  %7060 = vmatprep.mubr.msk.bf16.mxu1 %vm303_vm0, %v7812_v38  ;;  %v7838_v37 = vld [vmem:[%s10267_s0 + $0x3d8] sm:$0xff]  }
  0xce   :  { %7031 = vmatmul.mubr.msk.bf16.gmra.mrb[96].mxu0 %vm303_vm0, %v7813_v39  ;;  %7061 = vmatmul.mubr.msk.bf16.vlgmr.msra.gmra.mrb[96].mxu1 %vm303_vm0, %v7814_v40  ;;  %v7839_v40 = vld [vmem:[%s10267_s0 + $0x3e0] sm:$0xff]  }
  0xcf   :  { %7034 = vmatprep.mubr.msk.bf16.mxu0 %vm303_vm0, %v7815_v41  ;;  %7064 = vmatprep.mubr.msk.bf16.mxu1 %vm303_vm0, %v7816_v42 }
  0xd6   :  { %7035 = vmatmul.mubr.msk.bf16.gmra.mrb[100].mxu0 %vm303_vm0, %v7817_v43  ;;  %7065 = vmatmul.mubr.msk.bf16.gmra.mrb[100].mxu1 %vm303_vm0, %v7818_v44  ;;  %v7861_v44 = vld [vmem:[%s10268_s3 + $0x30] sm:$0xff]  }
  0xd7   :  { %7038 = vmatprep.mubr.msk.bf16.mxu0 %vm303_vm0, %v7819_v45  ;;  %7068 = vmatprep.mubr.msk.bf16.mxu1 %vm303_vm0, %v7820_v46 }
  0xd8   :  { %7137 = vmatpush3.bf16.msra.mxu0 %v7861_v44 }
  0xd9   :  { %7138 = vmatprep.subr.bf16.mxu0 %v10274_v36 }
  0xde   :  { %7039 = vmatmul.mubr.msk.bf16.gmra.mrb[104].mxu0 %vm303_vm0, %v7821_v47  ;;  %7069 = vmatmul.mubr.msk.bf16.gmra.mrb[104].mxu1 %vm303_vm0, %v7822_v48  ;;  %v7840_v48 = vld [vmem:[%s10267_s0 + $0x3e8] sm:$0xff]  }
  0xdf   :  { %7042 = vmatprep.mubr.msk.bf16.mxu0 %vm303_vm0, %v7823_v49  ;;  %7072 = vmatprep.mubr.msk.bf16.mxu1 %vm303_vm0, %v7824_v50 }
  0xe1   :  { %v8459_v51 = vpop.f32.mrb[0].mxu1  ;;  %v8461_v52 = vpop.f32.mrb[0].mxu0 }
  0xe2   :  { %10321 = vst [vmem:[#allocation3_spill] sm:$0xff] %v8459_v51  ;;  %v8463_v53 = vpop.f32.mrb[1].mxu1  ;;  %v8471_v56 = vpop.f32.mrb[1].mxu0 }
  0xe3   :  { %10322 = vst [vmem:[#allocation4_spill] sm:$0xff] %v8463_v53  ;;  %v8473_v57 = vpop.f32.mrb[2].mxu1  ;;  %v8481_v60 = vpop.f32.mrb[2].mxu0 }
  0xe4   :  { %10323 = vst [vmem:[#allocation5_spill] sm:$0xff] %v8473_v57  ;;  %v8486_v62 = vpop.f32.mrb[3].mxu1  ;;  %v8488_v63 = vpop.f32.mrb[3].mxu0 }
  0xe5   :  { %10324 = vst [vmem:[#allocation6_spill] sm:$0xff] %v8486_v62 }
  0xe6   :  { %7043 = vmatmul.mubr.msk.bf16.gmra.mrb[108].mxu0 %vm303_vm0, %v7825_v54  ;;  %7073 = vmatmul.mubr.msk.bf16.gmra.mrb[108].mxu1 %vm303_vm0, %v7826_v55  ;;  %v7841_v54 = vld [vmem:[%s10267_s0 + $0x3f0] sm:$0xff]  }
  0xe7   :  { %7046 = vmatprep.mubr.msk.bf16.mxu0 %vm303_vm0, %v7827_v58  ;;  %7076 = vmatprep.mubr.msk.bf16.mxu1 %vm303_vm0, %v7828_v59 }
  0xe9   :  { %v8495_v0 = vpop.f32.mrb[4].mxu1  ;;  %v8497_v1 = vpop.f32.mrb[4].mxu0 }
  0xea   :  { %10325 = vst [vmem:[#allocation7_spill] sm:$0xff] %v8495_v0  ;;  %v8499_v2 = vpop.f32.mrb[5].mxu1  ;;  %v8507_v5 = vpop.f32.mrb[5].mxu0 }
  0xeb   :  { %10326 = vst [vmem:[#allocation8_spill] sm:$0xff] %v8499_v2  ;;  %v8509_v6 = vpop.f32.mrb[6].mxu1  ;;  %v8517_v9 = vpop.f32.mrb[6].mxu0 }
  0xec   :  { %10327 = vst [vmem:[#allocation9_spill] sm:$0xff] %v8509_v6  ;;  %v8519_v10 = vpop.f32.mrb[7].mxu1  ;;  %v8521_v11 = vpop.f32.mrb[7].mxu0 }
  0xed   :  { %10328 = vst [vmem:[#allocation10_spill] sm:$0xff] %v8519_v10 }
  0xee   :  { %7047 = vmatmul.mubr.msk.bf16.gmra.mrb[112].mxu0 %vm303_vm0, %v7829_v3  ;;  %7077 = vmatmul.mubr.msk.bf16.gmra.mrb[112].mxu1 %vm303_vm0, %v7830_v4  ;;  %v7846_v4 = vld [vmem:[%s10267_s0 + $0x418] sm:$0xff]  }
  0xef   :  { %7050 = vmatprep.mubr.msk.bf16.mxu0 %vm303_vm0, %v7831_v7  ;;  %7080 = vmatprep.mubr.msk.bf16.mxu1 %vm303_vm0, %v7832_v8  ;;  %v7842_v8 = vld [vmem:[%s10267_s0 + $0x3f8] sm:$0xff]  }
  0xf1   :  { %v8527_v12 = vpop.f32.mrb[8].mxu1  ;;  %v8529_v13 = vpop.f32.mrb[8].mxu0 }
  0xf2   :  { %10329 = vst [vmem:[#allocation11_spill] sm:$0xff] %v8527_v12  ;;  %v8531_v14 = vpop.f32.mrb[9].mxu1  ;;  %v8539_v17 = vpop.f32.mrb[9].mxu0 }
  0xf3   :  { %10330 = vst [vmem:[#allocation12_spill] sm:$0xff] %v8531_v14  ;;  %v8541_v18 = vpop.f32.mrb[10].mxu1  ;;  %v8546_v20 = vpop.f32.mrb[10].mxu0 }
  0xf4   :  { %10331 = vst [vmem:[#allocation13_spill] sm:$0xff] %v8541_v18  ;;  %v8548_v21 = vpop.f32.mrb[11].mxu1  ;;  %v8550_v22 = vpop.f32.mrb[11].mxu0 }
  0xf5   :  { %10332 = vst [vmem:[#allocation14_spill] sm:$0xff] %v8548_v21 }
  0xf6   :  { %7051 = vmatmul.mubr.msk.bf16.gmra.mrb[116].mxu0 %vm303_vm0, %v7833_v15  ;;  %7081 = vmatmul.mubr.msk.bf16.gmra.mrb[116].mxu1 %vm303_vm0, %v7834_v16 }
  0xf7   :  { %7084 = vmatprep.mubr.msk.bf16.mxu1 %vm303_vm0, %v7835_v19 }
  0xf9   :  { %v8555_v23 = vpop.f32.mrb[12].mxu1  ;;  %v8557_v24 = vpop.f32.mrb[12].mxu0 }
  0xfa   :  { %10333 = vst [vmem:[#allocation15_spill] sm:$0xff] %v8555_v23  ;;  %v8559_v25 = vpop.f32.mrb[13].mxu1  ;;  %v8564_v27 = vpop.f32.mrb[13].mxu0 }
  0xfb   :  { %10334 = vst [vmem:[#allocation16_spill] sm:$0xff] %v8559_v25  ;;  %v8566_v28 = vpop.f32.mrb[14].mxu1  ;;  %v8571_v30 = vpop.f32.mrb[14].mxu0 }
  0xfc   :  { %10335 = vst [vmem:[#allocation17_spill] sm:$0xff] %v8566_v28  ;;  %v8573_v31 = vpop.f32.mrb[15].mxu1  ;;  %v8575_v32 = vpop.f32.mrb[15].mxu0 }
  0xfd   :  { %10336 = vst [vmem:[#allocation18_spill] sm:$0xff] %v8573_v31  ;;  %10337 = vst [vmem:[#allocation19_spill] sm:$0xff] %v8575_v32 }
  0xfe   :  { %7085 = vmatmul.mubr.msk.bf16.gmra.mrb[120].mxu1 %vm303_vm0, %v7836_v26  ;;  %v7843_v26 = vld [vmem:[%s10267_s0 + $0x400] sm:$0xff]  }
  0xff   :  { %7088 = vmatprep.mubr.msk.bf16.mxu1 %vm303_vm0, %v7837_v29 }
 0x101   :  { %v8579_v33 = vpop.f32.mrb[16].mxu1  ;;  %v8581_v34 = vpop.f32.mrb[16].mxu0 }
 0x102   :  { %10338 = vst [vmem:[#allocation20_spill] sm:$0xff] %v8579_v33  ;;  %10339 = vst [vmem:[#allocation21_spill] sm:$0xff] %v8581_v34  ;;  %v8583_v35 = vpop.f32.mrb[17].mxu1  ;;  %v8588_v38 = vpop.f32.mrb[17].mxu0 }
 0x103   :  { %10340 = vst [vmem:[#allocation22_spill] sm:$0xff] %v8583_v35  ;;  %10341 = vst [vmem:[#allocation23_spill] sm:$0xff] %v8588_v38  ;;  %v8590_v39 = vpop.f32.mrb[18].mxu1  ;;  %v8595_v41 = vpop.f32.mrb[18].mxu0  ;;  %v7848_v35 = vld [vmem:[%s10267_s0 + $0x428] sm:$0xff]  }
 0x104   :  { %10342 = vst [vmem:[#allocation24_spill] sm:$0xff] %v8590_v39  ;;  %v8597_v42 = vpop.f32.mrb[19].mxu1  ;;  %v8599_v43 = vpop.f32.mrb[19].mxu0 }
 0x105   :  { %10343 = vst [vmem:[#allocation25_spill] sm:$0xff] %v8597_v42 }
 0x106   :  { %7089 = vmatmul.mubr.msk.bf16.gmra.mrb[124].mxu1 %vm303_vm0, %v7838_v37  ;;  %v7844_v37 = vld [vmem:[%s10267_s0 + $0x408] sm:$0xff]  }
 0x107   :  { %7092 = vmatprep.mubr.msk.bf16.mxu1 %vm303_vm0, %v7839_v40 }
 0x109   :  { %v8607_v45 = vpop.f32.mrb[20].mxu1  ;;  %v8609_v46 = vpop.f32.mrb[20].mxu0 }
 0x10a   :  { %10344 = vst [vmem:[#allocation26_spill] sm:$0xff] %v8607_v45  ;;  %10345 = vst [vmem:[#allocation27_spill] sm:$0xff] %v8609_v46  ;;  %v8611_v47 = vpop.f32.mrb[21].mxu1  ;;  %v8616_v49 = vpop.f32.mrb[21].mxu0 }
 0x10b   :  { %10346 = vst [vmem:[#allocation28_spill] sm:$0xff] %v8611_v47  ;;  %v8618_v50 = vpop.f32.mrb[22].mxu1  ;;  %v8623_v55 = vpop.f32.mrb[22].mxu0 }
 0x10c   :  { %10347 = vst [vmem:[#allocation29_spill] sm:$0xff] %v8618_v50  ;;  %10348 = vst [vmem:[#allocation30_spill] sm:$0xff] %v8623_v55  ;;  %v8625_v58 = vpop.f32.mrb[23].mxu1  ;;  %v8627_v59 = vpop.f32.mrb[23].mxu0 }
 0x10d   :  { %10349 = vst [vmem:[#allocation31_spill] sm:$0xff] %v8625_v58 }
 0x10e   :  { %7093 = vmatmul.mubr.msk.bf16.gmra.mrb[128].mxu1 %vm303_vm0, %v7840_v48 }
 0x10f   :  { %7096 = vmatprep.mubr.msk.bf16.mxu1 %vm303_vm0, %v7841_v54 }
 0x111   :  { %v8631_v61 = vpop.f32.mrb[24].mxu1  ;;  %v8633_v3 = vpop.f32.mrb[24].mxu0 }
 0x112   :  { %v8637_v7 = vpop.f32.mrb[25].mxu1  ;;  %v8642_v15 = vpop.f32.mrb[25].mxu0 }
 0x113   :  { %v8646_v19 = vpop.f32.mrb[26].mxu1  ;;  %v8651_v29 = vpop.f32.mrb[26].mxu0  ;;  %v10368_v46 = vmax.f32 %v8471_v56, %v8637_v7 }
 0x114   :  { %v8655_v40 = vpop.f32.mrb[27].mxu1  ;;  %v8657_v44 = vpop.f32.mrb[27].mxu0 }
 0x116   :  { %7097 = vmatmul.mubr.msk.bf16.gmra.mrb[132].mxu1 %vm303_vm0, %v7842_v8 }
 0x117   :  { %7100 = vmatprep.mubr.msk.bf16.mxu1 %vm303_vm0, %v7843_v26  ;;  %v7845_v26 = vld [vmem:[%s10267_s0 + $0x410] sm:$0xff]  }
 0x119   :  { %v8663_v54 = vpop.f32.mrb[28].mxu1  ;;  %v8665_v16 = vpop.f32.mrb[28].mxu0 }
 0x11a   :  { %v8669_v36 = vpop.f32.mrb[29].mxu1  ;;  %v8674_v58 = vpop.f32.mrb[29].mxu0 }
 0x11b   :  { %v8678_v48 = vpop.f32.mrb[30].mxu1  ;;  %v8683_v50 = vpop.f32.mrb[30].mxu0 }
 0x11c   :  { %v8687_v47 = vpop.f32.mrb[31].mxu1  ;;  %v8689_v45 = vpop.f32.mrb[31].mxu0 }
 0x11e   :  { %7101 = vmatmul.mubr.msk.bf16.gmra.mrb[136].mxu1 %vm303_vm0, %v7844_v37 }
 0x11f   :  { %7104 = vmatprep.mubr.msk.bf16.mxu1 %vm303_vm0, %v7845_v26  ;;  %v7847_v26 = vld [vmem:[%s10267_s0 + $0x420] sm:$0xff]  }
 0x121   :  { %v8695_v8 = vpop.f32.mrb[32].mxu1  ;;  %v8697_v39 = vpop.f32.mrb[32].mxu0 }
 0x122   :  { %v8701_v33 = vpop.f32.mrb[33].mxu1  ;;  %v8706_v31 = vpop.f32.mrb[33].mxu0 }
 0x123   :  { %v8710_v42 = vpop.f32.mrb[34].mxu1  ;;  %v8715_v28 = vpop.f32.mrb[34].mxu0 }
 0x124   :  { %v8719_v25 = vpop.f32.mrb[35].mxu1  ;;  %v8721_v23 = vpop.f32.mrb[35].mxu0 }
 0x126   :  { %7105 = vmatmul.mubr.msk.bf16.gmra.mrb[140].mxu1 %vm303_vm0, %v7846_v4  ;;  %v7862_v4 = vld [vmem:[%s10268_s3 + $0x38] sm:$0xff]  }
 0x127   :  { %7108 = vmatprep.mubr.msk.bf16.mxu1 %vm303_vm0, %v7847_v26  ;;  %v7849_v26 = vld [vmem:[%s10267_s0 + $0x430] sm:$0xff]   ;;  %7139 = vmatpush3.bf16.msra.mxu0 %v7862_v4  ;;  %v7851_v4 = vld [vmem:[%s10267_s0 + $0x440] sm:$0xff]  }
 0x129   :  { %v8727_v37 = vpop.f32.mrb[36].mxu1  ;;  %v8729_v18 = vpop.f32.mrb[36].mxu0 }
 0x12a   :  { %v8733_v12 = vpop.f32.mrb[37].mxu1  ;;  %v8738_v10 = vpop.f32.mrb[37].mxu0 }
 0x12b   :  { %v8742_v21 = vpop.f32.mrb[38].mxu1  ;;  %v8747_v6 = vpop.f32.mrb[38].mxu0 }
 0x12c   :  { %v8751_v2 = vpop.f32.mrb[39].mxu1  ;;  %v8753_v0 = vpop.f32.mrb[39].mxu0 }
 0x12d   :  { %10350 = vst [vmem:[#allocation32_spill] sm:$0xff] %v8751_v2 }
 0x12e   :  { %7109 = vmatmul.mubr.msk.bf16.gmra.mrb[144].mxu1 %vm303_vm0, %v7848_v35  ;;  %v7850_v35 = vld [vmem:[%s10267_s0 + $0x438] sm:$0xff]  }
 0x12f   :  { %7112 = vmatprep.mubr.msk.bf16.mxu1 %vm303_vm0, %v7849_v26  ;;  %v10355_v26 = vmov 0.0  }
 0x130   :  { %7176 = vmatprep.subr.bf16.mxu0 %v10355_v26  ;;  %7140 = vmatprep.mubr.msk.bf16.mxu0 %vm7924_vm1, %v10355_v26 }
 0x131   :  { %v8762_v57 = vpop.f32.mrb[40].mxu1  ;;  %v8764_v53 = vpop.f32.mrb[40].mxu0 }
 0x132   :  { %10351 = vst [vmem:[#allocation33_spill] sm:$0xff] %v8762_v57  ;;  %10352 = vst [vmem:[#allocation34_spill] sm:$0xff] %v8764_v53  ;;  %v8768_v51 = vpop.f32.mrb[41].mxu1  ;;  %v8773_v62 = vpop.f32.mrb[41].mxu0 }
 0x133   :  { %10353 = vst [vmem:[#allocation35_spill] sm:$0xff] %v8768_v51  ;;  %10354 = vst [vmem:[#allocation36_spill] sm:$0xff] %v8773_v62  ;;  %v8778_v32 = vpop.f32.mrb[42].mxu1  ;;  %v8780_v53 = vpop.f32.mrb[42].mxu0  ;;  %v10366_v51 = vmax.f32 %v8461_v52, %v8631_v61 }
 0x134   :  { %10356 = vst [vmem:[#allocation37_spill] sm:$0xff] %v8780_v53  ;;  %v8787_v57 = vpop.f32.mrb[43].mxu1  ;;  %v8789_v34 = vpop.f32.mrb[43].mxu0 }
 0x135   :  { %10357 = vst [vmem:[#allocation38_spill] sm:$0xff] %v8789_v34  ;;  %v7852_v34 = vld [vmem:[%s10267_s0 + $0x448] sm:$0xff]  }
 0x136   :  { %7113 = vmatmul.mubr.msk.bf16.gmra.mrb[148].mxu1 %vm303_vm0, %v7850_v35 }
 0x137   :  { %7116 = vmatprep.mubr.msk.bf16.mxu1 %vm303_vm0, %v7851_v4 }
 0x139   :  { %v8795_v2 = vpop.f32.mrb[44].mxu1  ;;  %v8797_v53 = vpop.f32.mrb[44].mxu0 }
 0x13a   :  { %10358 = vst [vmem:[#allocation39_spill] sm:$0xff] %v8795_v2  ;;  %10359 = vst [vmem:[#allocation40_spill] sm:$0xff] %v8797_v53  ;;  %v8801_v38 = vpop.f32.mrb[45].mxu1  ;;  %v8803_v14 = vpop.f32.mrb[45].mxu0  ;;  %v7854_v53 = vld [vmem:[%s10267_s0 + $0x450] sm:$0xff]  }
 0x13b   :  { %10360 = vst [vmem:[#allocation41_spill] sm:$0xff] %v8801_v38  ;;  %10361 = vst [vmem:[#allocation42_spill] sm:$0xff] %v8803_v14  ;;  %v8810_v62 = vpop.f32.mrb[46].mxu1  ;;  %v8812_v4 = vpop.f32.mrb[46].mxu0 }
 0x13c   :  { %10362 = vst [vmem:[#allocation43_spill] sm:$0xff] %v8810_v62  ;;  %10363 = vst [vmem:[#allocation44_spill] sm:$0xff] %v8812_v4  ;;  %v8819_v2 = vpop.f32.mrb[47].mxu1  ;;  %v8821_v14 = vpop.f32.mrb[47].mxu0 }
 0x13d   :  { %10364 = vst [vmem:[#allocation45_spill] sm:$0xff] %v8819_v2  ;;  %10365 = vst [vmem:[#allocation46_spill] sm:$0xff] %v8821_v14 }
 0x13e   :  { %7117 = vmatmul.mubr.msk.bf16.gmra.mrb[152].mxu1 %vm303_vm0, %v7852_v34  ;;  %v7855_v34 = vld [vmem:[%s10267_s0 + $0x458] sm:$0xff]  }
 0x13f   :  { %7120 = vmatprep.mubr.msk.bf16.mxu1 %vm303_vm0, %v7854_v53 }
 0x141   :  { %v8827_v35 = vpop.f32.mrb[48].mxu1  ;;  %v6984_v4 = vpop.f32.mrb[48].mxu0 }
 0x142   :  { %v8834_v62 = vmax.f32 %v10366_v51, %v6984_v4  ;;  %v8836_v55 = vpop.f32.mrb[49].mxu1  ;;  %v1882_v14 = vpop.f32.mrb[49].mxu0  ;;  %v7856_v51 = vld [vmem:[%s10267_s0 + $0x460] sm:$0xff]   ;;  %v10369_v4 = vmax.f32 %v8481_v60, %v8646_v19 }
 0x143   :  { %v8846_v2 = vmax.f32 %v10368_v46, %v1882_v14  ;;  %v8848_v38 = vpop.f32.mrb[50].mxu1  ;;  %v6985_v52 = vpop.f32.mrb[50].mxu0  ;;  %v10371_v46 = vmax.f32 %v8488_v63, %v8655_v40  ;;  %v7857_v40 = vld [vmem:[%s10267_s0 + $0x468] sm:$0xff]  }
 0x144   :  { %10367 = vst [vmem:[#allocation47_spill] sm:$0xff] %v8834_v62  ;;  %v8858_v62 = vmax.f32 %v10369_v4, %v6985_v52  ;;  %v8860_v53 = vpop.f32.mrb[51].mxu1  ;;  %v1885_v56 = vpop.f32.mrb[51].mxu0  ;;  %v10373_v52 = vmax.f32 %v8497_v1, %v8663_v54  ;;  %v7858_v54 = vld [vmem:[%s10267_s0 + $0x470] sm:$0xff]  }
 0x145   :  { %v8867_v7 = vmax.f32 %v10371_v46, %v1885_v56 }
 0x146   :  { %10370 = vst [vmem:[#allocation48_spill] sm:$0xff] %v8858_v62  ;;  %7121 = vmatmul.mubr.msk.bf16.gmra.mrb[156].mxu1 %vm303_vm0, %v7855_v34  ;;  %v10379_v34 = vmax.f32 %v8521_v11, %v8687_v47  ;;  %v7859_v47 = vld [vmem:[%s10267_s0 + $0x478] sm:$0xff]   ;;  %v10439_v62 = vld [vmem:[#allocation5_spill] sm:$0xff] }
 0x147   :  { %10372 = vst [vmem:[#allocation49_spill] sm:$0xff] %v8867_v7  ;;  %7124 = vmatprep.mubr.msk.bf16.mxu1 %vm303_vm0, %v7856_v51  ;;  %v10375_v51 = vmax.f32 %v8507_v5, %v8669_v36  ;;  %v10436_v7 = vld [vmem:[#allocation4_spill] sm:$0xff] }
 0x149   :  { %v8871_v61 = vpop.f32.mrb[52].mxu1  ;;  %v6988_v60 = vpop.f32.mrb[52].mxu0 }
 0x14a   :  { %v8878_v4 = vmax.f32 %v10373_v52, %v6988_v60  ;;  %v8880_v14 = vpop.f32.mrb[53].mxu1  ;;  %v1898_v63 = vpop.f32.mrb[53].mxu0  ;;  %v10377_v52 = vmax.f32 %v8517_v9, %v8678_v48 }
 0x14b   :  { %v8890_v56 = vmax.f32 %v10375_v51, %v1898_v63  ;;  %v8892_v46 = vpop.f32.mrb[54].mxu1  ;;  %v6989_v1 = vpop.f32.mrb[54].mxu0 }
 0x14c   :  { %10374 = vst [vmem:[#allocation50_spill] sm:$0xff] %v8878_v4  ;;  %v8904_v36 = vmax.f32 %v10377_v52, %v6989_v1  ;;  %v8906_v5 = vpop.f32.mrb[55].mxu1  ;;  %v1901_v63 = vpop.f32.mrb[55].mxu0  ;;  %v10381_v1 = vmax.f32 %v8529_v13, %v8695_v8 }
 0x14d   :  { %10376 = vst [vmem:[#allocation51_spill] sm:$0xff] %v8890_v56  ;;  %v8913_v19 = vmax.f32 %v10379_v34, %v1901_v63  ;;  %v10383_v34 = vmax.f32 %v8539_v17, %v8701_v33  ;;  %v10387_v17 = vmax.f32 %v8550_v22, %v8719_v25  ;;  %v10404_v25 = vld [vmem:[#allocation36_spill] sm:$0xff]  ;;  %v10433_v56 = vld [vmem:[#allocation3_spill] sm:$0xff] }
 0x14e   :  { %10378 = vst [vmem:[#allocation52_spill] sm:$0xff] %v8904_v36  ;;  %7125 = vmatmul.mubr.msk.bf16.gmra.mrb[160].mxu1 %vm303_vm0, %v7857_v40  ;;  %v10429_v36 = vld [vmem:[#allocation46_spill] sm:$0xff] }
 0x14f   :  { %10380 = vst [vmem:[#allocation53_spill] sm:$0xff] %v8913_v19  ;;  %7128 = vmatprep.mubr.msk.bf16.mxu1 %vm303_vm0, %v7858_v54 }
 0x151   :  { %v8917_v60 = vpop.f32.mrb[56].mxu1  ;;  %v6992_v9 = vpop.f32.mrb[56].mxu0 }
 0x152   :  { %v8924_v52 = vmax.f32 %v10381_v1, %v6992_v9  ;;  %v8926_v51 = vpop.f32.mrb[57].mxu1  ;;  %v1914_v11 = vpop.f32.mrb[57].mxu0  ;;  %v10385_v9 = vmax.f32 %v8546_v20, %v8710_v42  ;;  %v10399_v42 = vld [vmem:[#allocation34_spill] sm:$0xff] }
 0x153   :  { %v8936_v54 = vmax.f32 %v10383_v34, %v1914_v11  ;;  %v8938_v63 = vpop.f32.mrb[58].mxu1  ;;  %v6993_v13 = vpop.f32.mrb[58].mxu0  ;;  %v10389_v34 = vmax.f32 %v8557_v24, %v8727_v37  ;;  %v10393_v24 = vmax.f32 %v8571_v30, %v8742_v21  ;;  %v10400_v21 = vld [vmem:[#allocation21_spill] sm:$0xff] }
 0x154   :  { %10382 = vst [vmem:[#allocation54_spill] sm:$0xff] %v8924_v52  ;;  %v8945_v1 = vmax.f32 %v10385_v9, %v6993_v13  ;;  %v8947_v48 = vpop.f32.mrb[59].mxu1  ;;  %v1917_v52 = vpop.f32.mrb[59].mxu0  ;;  %v10401_v30 = vld [vmem:[#allocation33_spill] sm:$0xff] }
 0x155   :  { %10384 = vst [vmem:[#allocation55_spill] sm:$0xff] %v8936_v54  ;;  %v8954_v33 = vmax.f32 %v10387_v17, %v1917_v52  ;;  %v10391_v52 = vmax.f32 %v8564_v27, %v8733_v12  ;;  %v10395_v12 = vld [vmem:[#allocation19_spill] sm:$0xff]  ;;  %v10396_v27 = vld [vmem:[#allocation32_spill] sm:$0xff] }
 0x156   :  { %10386 = vst [vmem:[#allocation56_spill] sm:$0xff] %v8945_v1  ;;  %7129 = vmatmul.mubr.msk.bf16.gmra.mrb[164].mxu1 %vm303_vm0, %v7859_v47  ;;  %v10415_v54 = vld [vmem:[#allocation40_spill] sm:$0xff] }
 0x157   :  { %10388 = vst [vmem:[#allocation57_spill] sm:$0xff] %v8954_v33  ;;  %7312 = vmatprep.mubr.msk.bf16.mxu1 %vm7924_vm1, %v10355_v26  ;;  %v10412_v33 = vld [vmem:[#allocation38_spill] sm:$0xff] }
 0x159   :  { %v8959_v11 = vpop.f32.mrb[60].mxu1  ;;  %v6996_v20 = vpop.f32.mrb[60].mxu0 }
 0x15a   :  { %v8966_v13 = vmax.f32 %v10389_v34, %v6996_v20  ;;  %v8968_v9 = vpop.f32.mrb[61].mxu1  ;;  %v1930_v22 = vpop.f32.mrb[61].mxu0 }
 0x15b   :  { %v8975_v47 = vmax.f32 %v10391_v52, %v1930_v22  ;;  %v8977_v17 = vpop.f32.mrb[62].mxu1  ;;  %v6997_v40 = vpop.f32.mrb[62].mxu0  ;;  %v10397_v22 = vmax.f32 %v10395_v12, %v10396_v27  ;;  %v10405_v12 = vld [vmem:[#allocation23_spill] sm:$0xff] }
 0x15c   :  { %10390 = vst [vmem:[#allocation58_spill] sm:$0xff] %v8966_v13  ;;  %v8984_v37 = vmax.f32 %v10393_v24, %v6997_v40  ;;  %v8986_v20 = vpop.f32.mrb[63].mxu1  ;;  %v1933_v34 = vpop.f32.mrb[63].mxu0  ;;  %v10402_v40 = vmax.f32 %v10400_v21, %v10401_v30 }
 0x15d   :  { %10392 = vst [vmem:[#allocation59_spill] sm:$0xff] %v8975_v47  ;;  %v8993_v52 = vmax.f32 %v10397_v22, %v1933_v34  ;;  %v10406_v34 = vld [vmem:[#allocation35_spill] sm:$0xff]  ;;  %v10409_v47 = vld [vmem:[#allocation37_spill] sm:$0xff] }
 0x15e   :  { %10394 = vst [vmem:[#allocation60_spill] sm:$0xff] %v8984_v37  ;;  %v10407_v27 = vmax.f32 %v10405_v12, %v10406_v34 }
 0x15f   :  { %10398 = vst [vmem:[#allocation19_spill] sm:$0xff] %v8993_v52 }
 0x161   :  { %v8995_v8 = vpop.f32.mrb[64].mxu1  ;;  %v7000_v26 = vpop.f32.mrb[64].mxu0 }
 0x162   :  { %v9002_v24 = vmax.f32 %v10402_v40, %v7000_v26  ;;  %v9004_v37 = vpop.f32.mrb[65].mxu1  ;;  %v1946_v13 = vpop.f32.mrb[65].mxu0  ;;  %v10410_v26 = vmax.f32 %v8595_v41, %v8778_v32  ;;  %v10416_v32 = vld [vmem:[#allocation27_spill] sm:$0xff] }
 0x163   :  { %v9011_v22 = vmax.f32 %v10407_v27, %v1946_v13  ;;  %v9013_v52 = vpop.f32.mrb[66].mxu1  ;;  %v7001_v1 = vpop.f32.mrb[66].mxu0  ;;  %v10413_v13 = vmax.f32 %v8599_v43, %v8787_v57  ;;  %v10417_v41 = vld [vmem:[#allocation39_spill] sm:$0xff]  ;;  %v10421_v57 = vld [vmem:[#allocation41_spill] sm:$0xff] }
 0x164   :  { %10403 = vst [vmem:[#allocation32_spill] sm:$0xff] %v9002_v24  ;;  %v9020_v21 = vmax.f32 %v10410_v26, %v7001_v1  ;;  %v9022_v30 = vpop.f32.mrb[67].mxu1  ;;  %v1949_v40 = vpop.f32.mrb[67].mxu0  ;;  %v10418_v1 = vmax.f32 %v10416_v32, %v10417_v41  ;;  %v10420_v24 = vld [vmem:[#allocation42_spill] sm:$0xff]  ;;  %v10422_v43 = vmax.f32 %v8616_v49, %v10421_v57  ;;  %v10430_v49 = vld [vmem:[#allocation45_spill] sm:$0xff] }
 0x165   :  { %10408 = vst [vmem:[#allocation34_spill] sm:$0xff] %v9011_v22  ;;  %v9029_v12 = vmax.f32 %v10413_v13, %v1949_v40  ;;  %v10424_v22 = vld [vmem:[#allocation44_spill] sm:$0xff]  ;;  %v10425_v32 = vld [vmem:[#allocation30_spill] sm:$0xff] }
 0x166   :  { %10411 = vst [vmem:[#allocation21_spill] sm:$0xff] %v9020_v21 }
 0x167   :  { %10414 = vst [vmem:[#allocation33_spill] sm:$0xff] %v9029_v12 }
 0x169   :  { %v9031_v34 = vpop.f32.mrb[68].mxu1  ;;  %v7004_v27 = vpop.f32.mrb[68].mxu0 }
 0x16a   :  { %v9038_v26 = vmax.f32 %v10418_v1, %v7004_v27  ;;  %v9040_v21 = vpop.f32.mrb[69].mxu1  ;;  %v1962_v19 = vpop.f32.mrb[69].mxu0  ;;  %v10426_v27 = vld [vmem:[#allocation43_spill] sm:$0xff] }
 0x16b   :  { %v9047_v40 = vmax.f32 %v10422_v43, %v1962_v19  ;;  %v9049_v13 = vpop.f32.mrb[70].mxu1  ;;  %v7005_v12 = vpop.f32.mrb[70].mxu0  ;;  %v10427_v41 = vmax.f32 %v10425_v32, %v10426_v27  ;;  %v10431_v19 = vmax.f32 %v8627_v59, %v10430_v49  ;;  %v10437_v59 = vmax.f32 %v8642_v15, %v8836_v55 }
 0x16c   :  { %10419 = vst [vmem:[#allocation36_spill] sm:$0xff] %v9038_v26  ;;  %v9058_v26 = vpop.f32.mrb[71].mxu1  ;;  %v1965_v4 = vpop.f32.mrb[71].mxu0  ;;  %v10443_v55 = vmax.f32 %v8657_v44, %v8860_v53  ;;  %v10449_v44 = vmax.f32 %v8674_v58, %v8880_v14  ;;  %v10455_v58 = vmax.f32 %v8689_v45, %v8906_v5  ;;  %v10461_v45 = vmax.f32 %v8706_v31, %v8926_v51 }
 0x16d   :  { %10423 = vst [vmem:[#allocation23_spill] sm:$0xff] %v9047_v40  ;;  %v9056_v1 = vmax.f32 %v10427_v41, %v7005_v12  ;;  %v9065_v57 = vmax.f32 %v10431_v19, %v1965_v4  ;;  %v10434_v12 = vmax.f32 %v8633_v3, %v8827_v35  ;;  %v10440_v3 = vmax.f32 %v8651_v29, %v8848_v38 }
 0x16e   :  { %v10446_v38 = vmax.f32 %v8665_v16, %v8871_v61  ;;  %v10452_v16 = vmax.f32 %v8683_v50, %v8892_v46  ;;  %v10458_v50 = vmax.f32 %v8697_v39, %v8917_v60  ;;  %v10464_v39 = vmax.f32 %v8715_v28, %v8938_v63 }
 0x16f   :  { %10428 = vst [vmem:[#allocation35_spill] sm:$0xff] %v9056_v1  ;;  %10432 = vst [vmem:[#allocation37_spill] sm:$0xff] %v9065_v57  ;;  %v10442_v1 = vld [vmem:[#allocation6_spill] sm:$0xff]  ;;  %v10445_v57 = vld [vmem:[#allocation7_spill] sm:$0xff]  ;;  %v10467_v31 = vmax.f32 %v8721_v23, %v8947_v48  ;;  %v10470_v28 = vmax.f32 %v8729_v18, %v8959_v11  ;;  %v10473_v23 = vmax.f32 %v8738_v10, %v8968_v9 }
 0x170   :  { %v10476_v18 = vmax.f32 %v8747_v6, %v8977_v17  ;;  %v10479_v10 = vmax.f32 %v8753_v0, %v8986_v20  ;;  %v10482_v6 = vmax.f32 %v10399_v42, %v8995_v8  ;;  %v10485_v0 = vmax.f32 %v10404_v25, %v9004_v37 }
 0x171   :  { %v9067_v43 = vpop.f32.mrb[72].mxu1  ;;  %v7008_v40 = vpop.f32.mrb[72].mxu0  ;;  %v10488_v8 = vmax.f32 %v10409_v47, %v9013_v52  ;;  %v10491_v25 = vmax.f32 %v10412_v33, %v9022_v30  ;;  %v10494_v47 = vmax.f32 %v10415_v54, %v9031_v34  ;;  %v10497_v33 = vmax.f32 %v10420_v24, %v9040_v21 }
 0x172   :  { %v9074_v32 = vmax.f32 %v10434_v12, %v7008_v40  ;;  %v9076_v27 = vpop.f32.mrb[73].mxu1  ;;  %v1978_v41 = vpop.f32.mrb[73].mxu0  ;;  %v10500_v54 = vmax.f32 %v10424_v22, %v9049_v13  ;;  %v10503_v24 = vmax.f32 %v10429_v36, %v9058_v26  ;;  %v10505_v22 = vmax.f32 %v10433_v56, %v9067_v43 }
 0x173   :  { %v9083_v4 = vmax.f32 %v10437_v59, %v1978_v41  ;;  %v9085_v49 = vpop.f32.mrb[74].mxu1  ;;  %v7009_v19 = vpop.f32.mrb[74].mxu0  ;;  %v10508_v36 = vmax.f32 %v10436_v7, %v9076_v27 }
 0x174   :  { %10435 = vst [vmem:[#allocation38_spill] sm:$0xff] %v9074_v32  ;;  %v9092_v35 = vmax.f32 %v10440_v3, %v7009_v19  ;;  %v9094_v40 = vpop.f32.mrb[75].mxu1  ;;  %v1981_v12 = vpop.f32.mrb[75].mxu0  ;;  %v10448_v32 = vld [vmem:[#allocation8_spill] sm:$0xff]  ;;  %v10509_v56 = vmax.f32 %v10439_v62, %v9085_v49 }
 0x175   :  { %10438 = vst [vmem:[#allocation40_spill] sm:$0xff] %v9083_v4  ;;  %v9101_v15 = vmax.f32 %v10443_v55, %v1981_v12  ;;  %v10451_v4 = vld [vmem:[#allocation9_spill] sm:$0xff]  ;;  %v10511_v7 = vmax.f32 %v10442_v1, %v9094_v40  ;;  %v10514_v40 = vld [vmem:[#allocation50_spill] sm:$0xff] }
 0x176   :  { %10441 = vst [vmem:[#allocation27_spill] sm:$0xff] %v9092_v35  ;;  %v10454_v35 = vld [vmem:[#allocation10_spill] sm:$0xff] }
 0x177   :  { %10444 = vst [vmem:[#allocation39_spill] sm:$0xff] %v9101_v15  ;;  %v10457_v15 = vld [vmem:[#allocation11_spill] sm:$0xff] }
 0x179   :  { %v9103_v41 = vpop.f32.mrb[76].mxu1  ;;  %v7012_v59 = vpop.f32.mrb[76].mxu0 }
 0x17a   :  { %v9110_v29 = vmax.f32 %v10446_v38, %v7012_v59  ;;  %v9112_v19 = vpop.f32.mrb[77].mxu1  ;;  %v1994_v3 = vpop.f32.mrb[77].mxu0 }
 0x17b   :  { %v9119_v53 = vmax.f32 %v10449_v44, %v1994_v3  ;;  %v9121_v12 = vpop.f32.mrb[78].mxu1  ;;  %v7013_v55 = vpop.f32.mrb[78].mxu0 }
 0x17c   :  { %10447 = vst [vmem:[#allocation42_spill] sm:$0xff] %v9110_v29  ;;  %v9128_v61 = vmax.f32 %v10452_v16, %v7013_v55  ;;  %v9130_v59 = vpop.f32.mrb[79].mxu1  ;;  %v1997_v38 = vpop.f32.mrb[79].mxu0  ;;  %v10460_v29 = vld [vmem:[#allocation12_spill] sm:$0xff] }
 0x17d   :  { %10450 = vst [vmem:[#allocation41_spill] sm:$0xff] %v9119_v53  ;;  %v9137_v14 = vmax.f32 %v10455_v58, %v1997_v38  ;;  %v10463_v53 = vld [vmem:[#allocation13_spill] sm:$0xff] }
 0x17e   :  { %10453 = vst [vmem:[#allocation44_spill] sm:$0xff] %v9128_v61  ;;  %v10466_v61 = vld [vmem:[#allocation14_spill] sm:$0xff] }
 0x17f   :  { %10456 = vst [vmem:[#allocation30_spill] sm:$0xff] %v9137_v14  ;;  %v10469_v14 = vld [vmem:[#allocation15_spill] sm:$0xff] }
 0x181   :  { %v9139_v3 = vpop.f32.mrb[80].mxu1  ;;  %v7016_v44 = vpop.f32.mrb[80].mxu0 }
 0x182   :  { %v9146_v46 = vmax.f32 %v10458_v50, %v7016_v44  ;;  %v9148_v55 = vpop.f32.mrb[81].mxu1  ;;  %v2010_v16 = vpop.f32.mrb[81].mxu0 }
 0x183   :  { %v9155_v5 = vmax.f32 %v10461_v45, %v2010_v16  ;;  %v9157_v38 = vpop.f32.mrb[82].mxu1  ;;  %v7017_v58 = vpop.f32.mrb[82].mxu0 }
 0x184   :  { %10459 = vst [vmem:[#allocation43_spill] sm:$0xff] %v9146_v46  ;;  %v9164_v60 = vmax.f32 %v10464_v39, %v7017_v58  ;;  %v9166_v44 = vpop.f32.mrb[83].mxu1  ;;  %v2013_v50 = vpop.f32.mrb[83].mxu0  ;;  %v10472_v46 = vld [vmem:[#allocation16_spill] sm:$0xff] }
 0x185   :  { %10462 = vst [vmem:[#allocation46_spill] sm:$0xff] %v9155_v5  ;;  %v9173_v51 = vmax.f32 %v10467_v31, %v2013_v50  ;;  %v10475_v5 = vld [vmem:[#allocation17_spill] sm:$0xff] }
 0x186   :  { %10465 = vst [vmem:[#allocation45_spill] sm:$0xff] %v9164_v60  ;;  %v10478_v60 = vld [vmem:[#allocation18_spill] sm:$0xff] }
 0x187   :  { %10468 = vst [vmem:[#allocation3_spill] sm:$0xff] %v9173_v51  ;;  %v10481_v51 = vld [vmem:[#allocation20_spill] sm:$0xff] }
 0x189   :  { %v9175_v16 = vpop.f32.mrb[84].mxu1  ;;  %v7020_v45 = vpop.f32.mrb[84].mxu0 }
 0x18a   :  { %v9182_v63 = vmax.f32 %v10470_v28, %v7020_v45  ;;  %v9184_v58 = vpop.f32.mrb[85].mxu1  ;;  %v2026_v39 = vpop.f32.mrb[85].mxu0 }
 0x18b   :  { %v9191_v48 = vmax.f32 %v10473_v23, %v2026_v39  ;;  %v9193_v50 = vpop.f32.mrb[86].mxu1  ;;  %v7021_v31 = vpop.f32.mrb[86].mxu0 }
 0x18c   :  { %10471 = vst [vmem:[#allocation4_spill] sm:$0xff] %v9182_v63  ;;  %v9200_v11 = vmax.f32 %v10476_v18, %v7021_v31  ;;  %v9202_v45 = vpop.f32.mrb[87].mxu1  ;;  %v2029_v28 = vpop.f32.mrb[87].mxu0  ;;  %v10484_v63 = vld [vmem:[#allocation22_spill] sm:$0xff] }
 0x18d   :  { %10474 = vst [vmem:[#allocation5_spill] sm:$0xff] %v9191_v48  ;;  %v9209_v9 = vmax.f32 %v10479_v10, %v2029_v28  ;;  %v10487_v48 = vld [vmem:[#allocation24_spill] sm:$0xff] }
 0x18e   :  { %10477 = vst [vmem:[#allocation6_spill] sm:$0xff] %v9200_v11  ;;  %v10490_v11 = vld [vmem:[#allocation25_spill] sm:$0xff] }
 0x18f   :  { %10480 = vst [vmem:[#allocation7_spill] sm:$0xff] %v9209_v9  ;;  %v10493_v9 = vld [vmem:[#allocation26_spill] sm:$0xff] }
 0x191   :  { %v9211_v39 = vpop.f32.mrb[88].mxu1  ;;  %v7024_v23 = vpop.f32.mrb[88].mxu0 }
 0x192   :  { %v9218_v17 = vmax.f32 %v10482_v6, %v7024_v23  ;;  %v9220_v31 = vpop.f32.mrb[89].mxu1  ;;  %v2042_v18 = vpop.f32.mrb[89].mxu0 }
 0x193   :  { %v9227_v20 = vmax.f32 %v10485_v0, %v2042_v18  ;;  %v9229_v28 = vpop.f32.mrb[90].mxu1  ;;  %v7025_v10 = vpop.f32.mrb[90].mxu0 }
 0x194   :  { %10483 = vst [vmem:[#allocation8_spill] sm:$0xff] %v9218_v17  ;;  %v9236_v42 = vmax.f32 %v10488_v8, %v7025_v10  ;;  %v9238_v23 = vpop.f32.mrb[91].mxu1  ;;  %v2045_v6 = vpop.f32.mrb[91].mxu0  ;;  %v10496_v17 = vld [vmem:[#allocation28_spill] sm:$0xff] }
 0x195   :  { %10486 = vst [vmem:[#allocation9_spill] sm:$0xff] %v9227_v20  ;;  %v9245_v37 = vmax.f32 %v10491_v25, %v2045_v6  ;;  %v10499_v20 = vld [vmem:[#allocation29_spill] sm:$0xff] }
 0x196   :  { %10489 = vst [vmem:[#allocation10_spill] sm:$0xff] %v9236_v42  ;;  %v10502_v42 = vld [vmem:[#allocation31_spill] sm:$0xff] }
 0x197   :  { %10492 = vst [vmem:[#allocation11_spill] sm:$0xff] %v9245_v37  ;;  %v9286_v37 = vld [vmem:[%s10269_s2] ss:$0 sm:$0xff] }
 0x199   :  { %v9247_v18 = vpop.f32.mrb[92].mxu1  ;;  %v7028_v0 = vpop.f32.mrb[92].mxu0 }
 0x19a   :  { %v9254_v52 = vmax.f32 %v10494_v47, %v7028_v0  ;;  %v9256_v10 = vpop.f32.mrb[93].mxu1  ;;  %v2058_v8 = vpop.f32.mrb[93].mxu0 }
 0x19b   :  { %v9263_v30 = vmax.f32 %v10497_v33, %v2058_v8  ;;  %v9265_v6 = vpop.f32.mrb[94].mxu1  ;;  %v7029_v25 = vpop.f32.mrb[94].mxu0 }
 0x19c   :  { %10495 = vst [vmem:[#allocation12_spill] sm:$0xff] %v9254_v52  ;;  %v9272_v34 = vmax.f32 %v10500_v54, %v7029_v25  ;;  %v9274_v0 = vpop.f32.mrb[95].mxu1  ;;  %v2061_v47 = vpop.f32.mrb[95].mxu0  ;;  %v10507_v25 = vld [vmem:[#allocation47_spill] sm:$0xff] }
 0x19d   :  { %10498 = vst [vmem:[#allocation13_spill] sm:$0xff] %v9263_v30  ;;  %v9281_v21 = vmax.f32 %v10503_v24, %v2061_v47 }
 0x19e   :  { %10501 = vst [vmem:[#allocation14_spill] sm:$0xff] %v9272_v34 }
 0x19f   :  { %10504 = vst [vmem:[#allocation15_spill] sm:$0xff] %v9281_v21 }
 0x1a1   :  { %v7032_v8 = vpop.f32.mrb[96].mxu0  ;;  %v7062_v33 = vpop.f32.mrb[96].mxu1 }
 0x1a2   :  { %v9291_v13 = vmax.f32 %v10505_v22, %v7032_v8  ;;  %v2925_v54 = vmax.f32 %v10507_v25, %v7062_v33  ;;  %v2074_v52 = vpop.f32.mrb[97].mxu0  ;;  %v2636_v34 = vpop.f32.mrb[97].mxu1  ;;  %v10510_v8 = vld [vmem:[#allocation48_spill] sm:$0xff] }
 0x1a3   :  { %v9297_v26 = vmax.f32 %v10508_v36, %v2074_v52  ;;  %v2923_v47 = vmax.f32 %v8846_v2, %v2636_v34  ;;  %v7033_v24 = vpop.f32.mrb[98].mxu0  ;;  %v7063_v21 = vpop.f32.mrb[98].mxu1  ;;  %v10512_v2 = vld [vmem:[#allocation49_spill] sm:$0xff] }
 0x1a4   :  { %10506 = vst [vmem:[#allocation16_spill] sm:$0xff] %v9291_v13  ;;  %v3004_v30 = vadd.f32 %v9286_v37, %v2925_v54  ;;  %v9304_v43 = vmax.f32 %v10509_v56, %v7033_v24  ;;  %v2926_v33 = vmax.f32 %v10510_v8, %v7063_v21  ;;  %v2077_v22 = vpop.f32.mrb[99].mxu0  ;;  %v2639_v25 = vpop.f32.mrb[99].mxu1 }
 0x1a5   :  { %v3002_v13 = vadd.f32 %v9286_v37, %v2923_v47  ;;  %v9311_v27 = vmax.f32 %v10511_v7, %v2077_v22  ;;  %v2924_v52 = vmax.f32 %v10512_v2, %v2639_v25  ;;  %v10513_v47 = vmax.f32 %v10445_v57, %v9103_v41  ;;  %v10516_v2 = vld [vmem:[#allocation51_spill] sm:$0xff] }
 0x1a6   :  { %v3005_v34 = vadd.f32 %v9286_v37, %v2926_v33  ;;  %v3076_v62 = vmax.f32 %v3004_v30, 0.0  ;;  %v10515_v30 = vmax.f32 %v10448_v32, %v9112_v19  ;;  %v10517_v57 = vmax.f32 %v10451_v4, %v9121_v12 }
 0x1a7   :  { %v3003_v54 = vadd.f32 %v9286_v37, %v2924_v52  ;;  %v3074_v36 = vmax.f32 %v3002_v13, 0.0  ;;  %v10519_v32 = vmax.f32 %v10454_v35, %v9130_v59  ;;  %v10522_v59 = vld [vmem:[#allocation54_spill] sm:$0xff] }
 0x1a8   :  { %v3077_v49 = vmax.f32 %v3005_v34, 0.0 }
 0x1a9   :  { %v3075_v24 = vmax.f32 %v3003_v54, 0.0  ;;  %v7036_v21 = vpop.f32.mrb[100].mxu0  ;;  %v7066_v56 = vpop.f32.mrb[100].mxu1 }
 0x1aa   :  { %v9316_v8 = vpack.c.bf16 %v3077_v49, %v3076_v62  ;;  %v9321_v1 = vmax.f32 %v10513_v47, %v7036_v21  ;;  %v2929_v22 = vmax.f32 %v10514_v40, %v7066_v56  ;;  %v2090_v25 = vpop.f32.mrb[101].mxu0  ;;  %v2652_v7 = vpop.f32.mrb[101].mxu1  ;;  %v10518_v49 = vld [vmem:[#allocation52_spill] sm:$0xff]  ;;  %v10520_v47 = vld [vmem:[#allocation53_spill] sm:$0xff] }
 0x1ab   :  { %v9324_v33 = vpack.c.bf16 %v3075_v24, %v3074_v36  ;;  %v9329_v13 = vmax.f32 %v10515_v30, %v2090_v25  ;;  %v2927_v52 = vmax.f32 %v10516_v2, %v2652_v7  ;;  %v7037_v34 = vpop.f32.mrb[102].mxu0  ;;  %v7067_v54 = vpop.f32.mrb[102].mxu1 }
 0x1ac   :  { %v3008_v62 = vadd.f32 %v9286_v37, %v2929_v22  ;;  %v9336_v41 = vmax.f32 %v10517_v57, %v7037_v34  ;;  %v2930_v21 = vmax.f32 %v10518_v49, %v7067_v54  ;;  %v2093_v36 = vpop.f32.mrb[103].mxu0  ;;  %v2655_v24 = vpop.f32.mrb[103].mxu1 }
 0x1ad   :  { %v3006_v56 = vadd.f32 %v9286_v37, %v2927_v52  ;;  %v9343_v19 = vmax.f32 %v10519_v32, %v2093_v36  ;;  %v2928_v40 = vmax.f32 %v10520_v47, %v2655_v24  ;;  %v10521_v52 = vmax.f32 %v10457_v15, %v9139_v3 }
 0x1ae   :  { %v3009_v22 = vadd.f32 %v9286_v37, %v2930_v21  ;;  %v3080_v4 = vmax.f32 %v3008_v62, 0.0  ;;  %v10523_v62 = vmax.f32 %v10460_v29, %v9148_v55  ;;  %v10525_v15 = vmax.f32 %v10463_v53, %v9157_v38 }
 0x1af   :  { %v3007_v25 = vadd.f32 %v9286_v37, %v2928_v40  ;;  %v3078_v7 = vmax.f32 %v3006_v56, 0.0  ;;  %v10524_v56 = vld [vmem:[#allocation55_spill] sm:$0xff]  ;;  %v10527_v29 = vmax.f32 %v10466_v61, %v9166_v44  ;;  %v10530_v44 = vld [vmem:[#allocation58_spill] sm:$0xff] }
 0x1b0   :  { %v3081_v12 = vmax.f32 %v3009_v22, 0.0 }
 0x1b1   :  { %v3079_v30 = vmax.f32 %v3007_v25, 0.0  ;;  %v7040_v2 = vpop.f32.mrb[104].mxu0  ;;  %v7070_v34 = vpop.f32.mrb[104].mxu1  ;;  %v10526_v25 = vld [vmem:[#allocation56_spill] sm:$0xff] }
 0x1b2   :  { %v9348_v54 = vpack.c.bf16 %v3081_v12, %v3080_v4  ;;  %v9353_v35 = vmax.f32 %v10521_v52, %v7040_v2  ;;  %v2933_v57 = vmax.f32 %v10522_v59, %v7070_v34  ;;  %v2106_v49 = vpop.f32.mrb[105].mxu0  ;;  %v2668_v36 = vpop.f32.mrb[105].mxu1  ;;  %v10528_v2 = vld [vmem:[#allocation57_spill] sm:$0xff] }
 0x1b3   :  { %v9356_v21 = vpack.c.bf16 %v3079_v30, %v3078_v7  ;;  %v9361_v24 = vmax.f32 %v10523_v62, %v2106_v49  ;;  %v2931_v32 = vmax.f32 %v10524_v56, %v2668_v36  ;;  %v7041_v47 = vpop.f32.mrb[106].mxu0  ;;  %v7071_v40 = vpop.f32.mrb[106].mxu1 }
 0x1b4   :  { %v3012_v22 = vadd.f32 %v9286_v37, %v2933_v57  ;;  %v9368_v3 = vmax.f32 %v10525_v15, %v7041_v47  ;;  %v2934_v4 = vmax.f32 %v10526_v25, %v7071_v40  ;;  %v2109_v12 = vpop.f32.mrb[107].mxu0  ;;  %v2671_v7 = vpop.f32.mrb[107].mxu1 }
 0x1b5   :  { %v3010_v30 = vadd.f32 %v9286_v37, %v2931_v32  ;;  %v9375_v55 = vmax.f32 %v10527_v29, %v2109_v12  ;;  %v2932_v34 = vmax.f32 %v10528_v2, %v2671_v7  ;;  %v10529_v32 = vmax.f32 %v10469_v14, %v9175_v16  ;;  %v10532_v12 = vld [vmem:[#allocation59_spill] sm:$0xff] }
 0x1b6   :  { %v3013_v52 = vadd.f32 %v9286_v37, %v2934_v4  ;;  %v3084_v53 = vmax.f32 %v3012_v22, 0.0  ;;  %v10531_v22 = vmax.f32 %v10472_v46, %v9184_v58  ;;  %v10533_v14 = vmax.f32 %v10475_v5, %v9193_v50 }
 0x1b7   :  { %v3011_v59 = vadd.f32 %v9286_v37, %v2932_v34  ;;  %v3082_v57 = vmax.f32 %v3010_v30, 0.0  ;;  %v10534_v34 = vld [vmem:[#allocation60_spill] sm:$0xff]  ;;  %v10535_v46 = vmax.f32 %v10478_v60, %v9202_v45 }
 0x1b8   :  { %v3085_v38 = vmax.f32 %v3013_v52, 0.0  ;;  %v10538_v45 = vld [vmem:[#allocation32_spill] sm:$0xff] }
 0x1b9   :  { %v3083_v49 = vmax.f32 %v3011_v59, 0.0  ;;  %v7044_v36 = vpop.f32.mrb[108].mxu0  ;;  %v7074_v62 = vpop.f32.mrb[108].mxu1 }
 0x1ba   :  { %v9380_v56 = vpack.c.bf16 %v3085_v38, %v3084_v53  ;;  %v9385_v61 = vmax.f32 %v10529_v32, %v7044_v36  ;;  %v2937_v47 = vmax.f32 %v10530_v44, %v7074_v62  ;;  %v2122_v40 = vpop.f32.mrb[109].mxu0  ;;  %v2684_v15 = vpop.f32.mrb[109].mxu1 }
 0x1bb   :  { %v9388_v25 = vpack.c.bf16 %v3083_v49, %v3082_v57  ;;  %v9393_v4 = vmax.f32 %v10531_v22, %v2122_v40  ;;  %v2935_v7 = vmax.f32 %v10532_v12, %v2684_v15  ;;  %v7045_v30 = vpop.f32.mrb[110].mxu0  ;;  %v7075_v29 = vpop.f32.mrb[110].mxu1  ;;  %v10536_v57 = vld [vmem:[#allocation19_spill] sm:$0xff]  ;;  %v10537_v22 = vmax.f32 %v10481_v51, %v9211_v39 }
 0x1bc   :  { %v3016_v2 = vadd.f32 %v9286_v37, %v2937_v47  ;;  %v9400_v16 = vmax.f32 %v10533_v14, %v7045_v30  ;;  %v2938_v52 = vmax.f32 %v10534_v34, %v7075_v29  ;;  %v2125_v59 = vpop.f32.mrb[111].mxu0  ;;  %v2687_v53 = vpop.f32.mrb[111].mxu1  ;;  %v10540_v34 = vld [vmem:[#allocation34_spill] sm:$0xff]  ;;  %v10541_v51 = vmax.f32 %v10487_v48, %v9229_v28 }
 0x1bd   :  { %v3014_v38 = vadd.f32 %v9286_v37, %v2935_v7  ;;  %v9407_v58 = vmax.f32 %v10535_v46, %v2125_v59  ;;  %v2936_v49 = vmax.f32 %v10536_v57, %v2687_v53  ;;  %v10542_v46 = vld [vmem:[#allocation21_spill] sm:$0xff] }
 0x1be   :  { %v3017_v36 = vadd.f32 %v9286_v37, %v2938_v52  ;;  %v3088_v5 = vmax.f32 %v3016_v2, 0.0  ;;  %v10539_v2 = vmax.f32 %v10484_v63, %v9220_v31  ;;  %v10543_v63 = vmax.f32 %v10490_v11, %v9238_v23 }
 0x1bf   :  { %v3015_v62 = vadd.f32 %v9286_v37, %v2936_v49  ;;  %v3086_v32 = vmax.f32 %v3014_v38, 0.0  ;;  %v10545_v23 = vmax.f32 %v10493_v9, %v9247_v18  ;;  %v10549_v9 = vmax.f32 %v10499_v20, %v9265_v6  ;;  %v7864_v20 = vld [vmem:[%s10268_s3 + $0x8] sm:$0xff]  }
 0x1c0   :  { %v3089_v50 = vmax.f32 %v3017_v36, 0.0 }
 0x1c1   :  { %v3087_v44 = vmax.f32 %v3015_v62, 0.0  ;;  %v7048_v47 = vpop.f32.mrb[112].mxu0  ;;  %v7078_v40 = vpop.f32.mrb[112].mxu1 }
 0x1c2   :  { %v9412_v15 = vpack.c.bf16 %v3089_v50, %v3088_v5  ;;  %v9417_v60 = vmax.f32 %v10537_v22, %v7048_v47  ;;  %v2941_v12 = vmax.f32 %v10538_v45, %v7078_v40  ;;  %v2138_v7 = vpop.f32.mrb[113].mxu0  ;;  %v2700_v30 = vpop.f32.mrb[113].mxu1  ;;  %v10544_v5 = vld [vmem:[#allocation33_spill] sm:$0xff] }
 0x1c3   :  { %v9420_v29 = vpack.c.bf16 %v3087_v44, %v3086_v32  ;;  %v9425_v14 = vmax.f32 %v10539_v2, %v2138_v7  ;;  %v2939_v52 = vmax.f32 %v10540_v34, %v2700_v30  ;;  %v7049_v59 = vpop.f32.mrb[114].mxu0  ;;  %v7079_v53 = vpop.f32.mrb[114].mxu1  ;;  %v10546_v30 = vld [vmem:[#allocation36_spill] sm:$0xff] }
 0x1c4   :  { %v3020_v38 = vadd.f32 %v9286_v37, %v2941_v12  ;;  %v9432_v39 = vmax.f32 %v10541_v51, %v7049_v59  ;;  %v2942_v57 = vmax.f32 %v10542_v46, %v7079_v53  ;;  %v2141_v49 = vpop.f32.mrb[115].mxu0  ;;  %v2703_v36 = vpop.f32.mrb[115].mxu1  ;;  %v7863_v12 = vld [vmem:[%s10268_s3] sm:$0xff]   ;;  %v10547_v53 = vmax.f32 %v10496_v17, %v9256_v10 }
 0x1c5   :  { %v3018_v62 = vadd.f32 %v9286_v37, %v2939_v52  ;;  %v9439_v31 = vmax.f32 %v10543_v63, %v2141_v49  ;;  %v2940_v50 = vmax.f32 %v10544_v5, %v2703_v36  ;;  %v10548_v51 = vld [vmem:[#allocation23_spill] sm:$0xff]  ;;  %v10551_v10 = vmax.f32 %v10502_v42, %v9274_v0 }
 0x1c6   :  { %v3021_v32 = vadd.f32 %v9286_v37, %v2942_v57  ;;  %v3092_v48 = vmax.f32 %v3020_v38, 0.0 }
 0x1c7   :  { %v3019_v44 = vadd.f32 %v9286_v37, %v2940_v50  ;;  %v3090_v47 = vmax.f32 %v3018_v62, 0.0  ;;  %v10550_v62 = vld [vmem:[#allocation35_spill] sm:$0xff] }
 0x1c8   :  { %v3093_v28 = vmax.f32 %v3021_v32, 0.0 }
 0x1c9   :  { %v3091_v40 = vmax.f32 %v3019_v44, 0.0  ;;  %v7052_v22 = vpop.f32.mrb[116].mxu0  ;;  %v7082_v45 = vpop.f32.mrb[116].mxu1  ;;  %v10552_v44 = vld [vmem:[#allocation37_spill] sm:$0xff] }
 0x1ca   :  { %v3155_v11 = vpack.c.bf16 %v3093_v28, %v3092_v48  ;;  %v9450_v7 = vmax.f32 %v10545_v23, %v7052_v22  ;;  %v2945_v2 = vmax.f32 %v10546_v30, %v7082_v45  ;;  %v2154_v34 = vpop.f32.mrb[117].mxu0  ;;  %v2716_v52 = vpop.f32.mrb[117].mxu1  ;;  %v10553_v28 = vmov 0.0  }
 0x1cb   :  { %v9453_v59 = vpack.c.bf16 %v3091_v40, %v3090_v47  ;;  %v9458_v38 = vmax.f32 %v10547_v53, %v2154_v34  ;;  %v2943_v46 = vmax.f32 %v10548_v51, %v2716_v52  ;;  %v7053_v57 = vpop.f32.mrb[118].mxu0  ;;  %v7083_v49 = vpop.f32.mrb[118].mxu1  ;;  %v10555_v52 = vld [vmem:[#allocation40_spill] sm:$0xff] }
 0x1cc   :  { %v3024_v36 = vadd.f32 %v9286_v37, %v2945_v2  ;;  %v9465_v18 = vmax.f32 %v10549_v9, %v7053_v57  ;;  %v2946_v63 = vmax.f32 %v10550_v62, %v7083_v49  ;;  %v2157_v5 = vpop.f32.mrb[119].mxu0  ;;  %v2719_v50 = vpop.f32.mrb[119].mxu1  ;;  %7141 = vmatmul.mubr.msk.bf16.vlgmr.msra.gmra.mrb[120].mxu0 %vm3223_vm2, %v3155_v11  ;;  %v10554_v11 = vld [vmem:[#allocation38_spill] sm:$0xff]  ;;  %v7865_v2 = vld [vmem:[%s10268_s3 + $0x10] sm:$0xff]   ;;  %v10556_v57 = vld [vmem:[#allocation27_spill] sm:$0xff] }
 0x1cd   :  { %v3022_v17 = vadd.f32 %v9286_v37, %v2943_v46  ;;  %v9473_v32 = vmax.f32 %v10551_v10, %v2157_v5  ;;  %v2944_v48 = vmax.f32 %v10552_v44, %v2719_v50  ;;  %7177 = vmatpush3.bf16.msra.mxu0 %v7863_v12  ;;  %7144 = vmatprep.mubr.msk.bf16.mxu0 %vm7924_vm1, %v10553_v28  ;;  %v10557_v62 = vld [vmem:[#allocation39_spill] sm:$0xff]  ;;  %v7866_v50 = vld [vmem:[%s10268_s3 + $0x18] sm:$0xff]  }
 0x1ce   :  { %v3025_v6 = vadd.f32 %v9286_v37, %v2946_v63  ;;  %7178 = vmatprep.subr.bf16.mxu0 %v10553_v28  ;;  %v3096_v40 = vmax.f32 %v3024_v36, 0.0 }
 0x1cf   :  { %v3023_v47 = vadd.f32 %v9286_v37, %v2944_v48  ;;  %v3094_v0 = vmax.f32 %v3022_v17, 0.0 }
 0x1d0   :  { %v3097_v42 = vmax.f32 %v3025_v6, 0.0 }
 0x1d1   :  { %v3095_v22 = vmax.f32 %v3023_v47, 0.0  ;;  %v7086_v45 = vpop.f32.mrb[120].mxu1  ;;  %7179 = vmatpush3.bf16.msra.mxu0 %v7864_v20 }
 0x1d2   :  { %v3157_v12 = vpack.c.bf16 %v3097_v42, %v3096_v40  ;;  %v2949_v23 = vmax.f32 %v10554_v11, %v7086_v45  ;;  %v2732_v30 = vpop.f32.mrb[121].mxu1  ;;  %7180 = vmatprep.subr.bf16.mxu0 %v10553_v28  ;;  %v10558_v40 = vld [vmem:[#allocation42_spill] sm:$0xff]  ;;  %v10559_v45 = vld [vmem:[#allocation41_spill] sm:$0xff] }
 0x1d3   :  { %v3156_v34 = vpack.c.bf16 %v3095_v22, %v3094_v0  ;;  %v2947_v53 = vmax.f32 %v10555_v52, %v2732_v30  ;;  %v7087_v51 = vpop.f32.mrb[122].mxu1 }
 0x1d4   :  { %v3028_v46 = vadd.f32 %v9286_v37, %v2949_v23  ;;  %v2950_v49 = vmax.f32 %v10556_v57, %v7087_v51  ;;  %v2735_v36 = vpop.f32.mrb[123].mxu1  ;;  %v10561_v51 = vld [vmem:[#allocation30_spill] sm:$0xff] }
 0x1d5   :  { %v3026_v9 = vadd.f32 %v9286_v37, %v2947_v53  ;;  %v2948_v63 = vmax.f32 %v10557_v62, %v2735_v36  ;;  %7145 = vmatmul.mubr.msk.bf16.gmra.mrb[124].mxu0 %vm3223_vm2, %v3156_v34 }
 0x1d6   :  { %v3029_v5 = vadd.f32 %v9286_v37, %v2950_v49  ;;  %7148 = vmatprep.mubr.msk.bf16.mxu0 %vm7924_vm1, %v10553_v28  ;;  %7181 = vmatpush3.bf16.msra.mxu0 %v7865_v2  ;;  %v3100_v10 = vmax.f32 %v3028_v46, 0.0  ;;  %v10560_v2 = vld [vmem:[#allocation44_spill] sm:$0xff] }
 0x1d7   :  { %v3027_v17 = vadd.f32 %v9286_v37, %v2948_v63  ;;  %7182 = vmatprep.subr.bf16.mxu0 %v10553_v28  ;;  %v3098_v48 = vmax.f32 %v3026_v9, 0.0 }
 0x1d8   :  { %v3101_v44 = vmax.f32 %v3029_v5, 0.0 }
 0x1d9   :  { %v3099_v20 = vmax.f32 %v3027_v17, 0.0  ;;  %v7090_v6 = vpop.f32.mrb[124].mxu1  ;;  %v10562_v17 = vld [vmem:[#allocation43_spill] sm:$0xff] }
 0x1da   :  { %v3159_v47 = vpack.c.bf16 %v3101_v44, %v3100_v10  ;;  %v2953_v42 = vmax.f32 %v10558_v40, %v7090_v6  ;;  %v2748_v0 = vpop.f32.mrb[125].mxu1  ;;  %7183 = vmatpush3.bf16.msra.mxu0 %v7866_v50 }
 0x1db   :  { %v3158_v22 = vpack.c.bf16 %v3099_v20, %v3098_v48  ;;  %v2951_v11 = vmax.f32 %v10559_v45, %v2748_v0  ;;  %v7091_v23 = vpop.f32.mrb[126].mxu1  ;;  %7220 = vmatprep.subr.bf16.mxu0 %v10553_v28  ;;  %v10563_v20 = vld [vmem:[#allocation46_spill] sm:$0xff] }
 0x1dc   :  { %v3032_v30 = vadd.f32 %v9286_v37, %v2953_v42  ;;  %v2954_v34 = vmax.f32 %v10560_v2, %v7091_v23  ;;  %v2751_v52 = vpop.f32.mrb[127].mxu1  ;;  %v10564_v42 = vld [vmem:[#allocation45_spill] sm:$0xff]  ;;  %v10565_v23 = vld [vmem:[#allocation3_spill] sm:$0xff] }
 0x1dd   :  { %v3030_v53 = vadd.f32 %v9286_v37, %v2951_v11  ;;  %v2952_v46 = vmax.f32 %v10561_v51, %v2751_v52  ;;  %7149 = vmatmul.mubr.msk.bf16.gmra.mrb[128].mxu0 %vm3223_vm2, %v3157_v12 }
 0x1de   :  { %v3033_v57 = vadd.f32 %v9286_v37, %v2954_v34  ;;  %7152 = vmatprep.mubr.msk.bf16.mxu0 %vm7924_vm1, %v10553_v28  ;;  %v3104_v36 = vmax.f32 %v3032_v30, 0.0 }
 0x1df   :  { %v3031_v49 = vadd.f32 %v9286_v37, %v2952_v46  ;;  %v3102_v62 = vmax.f32 %v3030_v53, 0.0 }
 0x1e0   :  { %v3105_v9 = vmax.f32 %v3033_v57, 0.0 }
 0x1e1   :  { %v3103_v63 = vmax.f32 %v3031_v49, 0.0  ;;  %v7094_v5 = vpop.f32.mrb[128].mxu1 }
 0x1e2   :  { %v9515_v50 = vpack.c.bf16 %v3105_v9, %v3104_v36  ;;  %v2957_v10 = vmax.f32 %v10562_v17, %v7094_v5  ;;  %v2764_v44 = vpop.f32.mrb[129].mxu1  ;;  %v10566_v36 = vld [vmem:[#allocation4_spill] sm:$0xff] }
 0x1e3   :  { %v3160_v48 = vpack.c.bf16 %v3103_v63, %v3102_v62  ;;  %v2955_v12 = vmax.f32 %v10563_v20, %v2764_v44  ;;  %v7095_v6 = vpop.f32.mrb[130].mxu1  ;;  %v10568_v44 = vld [vmem:[#allocation6_spill] sm:$0xff] }
 0x1e4   :  { %v3036_v40 = vadd.f32 %v9286_v37, %v2957_v10  ;;  %v2958_v0 = vmax.f32 %v10564_v42, %v7095_v6  ;;  %v2767_v45 = vpop.f32.mrb[131].mxu1 }
 0x1e5   :  { %v3034_v11 = vadd.f32 %v9286_v37, %v2955_v12  ;;  %v2956_v30 = vmax.f32 %v10565_v23, %v2767_v45  ;;  %7153 = vmatmul.mubr.msk.bf16.gmra.mrb[132].mxu0 %vm3223_vm2, %v3158_v22  ;;  %v10567_v22 = vld [vmem:[#allocation5_spill] sm:$0xff] }
 0x1e6   :  { %v3037_v2 = vadd.f32 %v9286_v37, %v2958_v0  ;;  %7156 = vmatprep.mubr.msk.bf16.mxu0 %vm7924_vm1, %v10553_v28  ;;  %v3108_v52 = vmax.f32 %v3036_v40, 0.0  ;;  %v10569_v40 = vld [vmem:[#allocation7_spill] sm:$0xff] }
 0x1e7   :  { %v3035_v34 = vadd.f32 %v9286_v37, %v2956_v30  ;;  %v3106_v51 = vmax.f32 %v3034_v11, 0.0 }
 0x1e8   :  { %v3109_v53 = vmax.f32 %v3037_v2, 0.0 }
 0x1e9   :  { %v3107_v46 = vmax.f32 %v3035_v34, 0.0  ;;  %v7098_v57 = vpop.f32.mrb[132].mxu1 }
 0x1ea   :  { %v9528_v49 = vpack.c.bf16 %v3109_v53, %v3108_v52  ;;  %v2961_v9 = vmax.f32 %v10566_v36, %v7098_v57  ;;  %v2780_v62 = vpop.f32.mrb[133].mxu1  ;;  %v10570_v53 = vld [vmem:[#allocation8_spill] sm:$0xff] }
 0x1eb   :  { %v9531_v63 = vpack.c.bf16 %v3107_v46, %v3106_v51  ;;  %v2959_v5 = vmax.f32 %v10567_v22, %v2780_v62  ;;  %v7099_v17 = vpop.f32.mrb[134].mxu1  ;;  %v10572_v22 = vld [vmem:[#allocation10_spill] sm:$0xff] }
 0x1ec   :  { %v3040_v10 = vadd.f32 %v9286_v37, %v2961_v9  ;;  %v2962_v20 = vmax.f32 %v10568_v44, %v7099_v17  ;;  %v2783_v12 = vpop.f32.mrb[135].mxu1  ;;  %v10573_v44 = vld [vmem:[#allocation11_spill] sm:$0xff] }
 0x1ed   :  { %v3038_v6 = vadd.f32 %v9286_v37, %v2959_v5  ;;  %v2960_v42 = vmax.f32 %v10569_v40, %v2783_v12  ;;  %7157 = vmatmul.mubr.msk.bf16.gmra.mrb[136].mxu0 %vm3223_vm2, %v3159_v47  ;;  %v10571_v47 = vld [vmem:[#allocation9_spill] sm:$0xff] }
 0x1ee   :  { %v3041_v0 = vadd.f32 %v9286_v37, %v2962_v20  ;;  %7160 = vmatprep.mubr.msk.bf16.mxu0 %vm7924_vm1, %v10553_v28  ;;  %v3112_v11 = vmax.f32 %v3040_v10, 0.0 }
 0x1ef   :  { %v3039_v45 = vadd.f32 %v9286_v37, %v2960_v42  ;;  %v3110_v30 = vmax.f32 %v3038_v6, 0.0 }
 0x1f0   :  { %v3113_v23 = vmax.f32 %v3041_v0, 0.0 }
 0x1f1   :  { %v3111_v2 = vmax.f32 %v3039_v45, 0.0  ;;  %v7102_v34 = vpop.f32.mrb[136].mxu1 }
 0x1f2   :  { %v9543_v52 = vpack.c.bf16 %v3113_v23, %v3112_v11  ;;  %v2965_v51 = vmax.f32 %v10570_v53, %v7102_v34  ;;  %v2796_v46 = vpop.f32.mrb[137].mxu1 }
 0x1f3   :  { %v9546_v57 = vpack.c.bf16 %v3111_v2, %v3110_v30  ;;  %v2963_v36 = vmax.f32 %v10571_v47, %v2796_v46  ;;  %v7103_v9 = vpop.f32.mrb[138].mxu1  ;;  %v10574_v30 = vld [vmem:[#allocation12_spill] sm:$0xff] }
 0x1f4   :  { %v3044_v62 = vadd.f32 %v9286_v37, %v2965_v51  ;;  %v2966_v5 = vmax.f32 %v10572_v22, %v7103_v9  ;;  %v2799_v17 = vpop.f32.mrb[139].mxu1 }
 0x1f5   :  { %v3042_v10 = vadd.f32 %v9286_v37, %v2963_v36  ;;  %v2964_v20 = vmax.f32 %v10573_v44, %v2799_v17  ;;  %7161 = vmatmul.mubr.msk.bf16.gmra.mrb[140].mxu0 %vm3223_vm2, %v3160_v48  ;;  %v10575_v48 = vld [vmem:[#allocation13_spill] sm:$0xff]  ;;  %v10576_v36 = vld [vmem:[#allocation14_spill] sm:$0xff] }
 0x1f6   :  { %v3045_v12 = vadd.f32 %v9286_v37, %v2966_v5  ;;  %7164 = vmatprep.mubr.msk.bf16.mxu0 %vm7924_vm1, %v10553_v28  ;;  %v3116_v40 = vmax.f32 %v3044_v62, 0.0  ;;  %v10577_v5 = vld [vmem:[#allocation15_spill] sm:$0xff] }
 0x1f7   :  { %v3043_v6 = vadd.f32 %v9286_v37, %v2964_v20  ;;  %v3114_v0 = vmax.f32 %v3042_v10, 0.0 }
 0x1f8   :  { %v3117_v42 = vmax.f32 %v3045_v12, 0.0 }
 0x1f9   :  { %v3115_v45 = vmax.f32 %v3043_v6, 0.0  ;;  %v7106_v11 = vpop.f32.mrb[140].mxu1 }
 0x1fa   :  { %v9558_v23 = vpack.c.bf16 %v3117_v42, %v3116_v40  ;;  %v2969_v2 = vmax.f32 %v10574_v30, %v7106_v11  ;;  %v2812_v34 = vpop.f32.mrb[141].mxu1 }
 0x1fb   :  { %v9561_v53 = vpack.c.bf16 %v3115_v45, %v3114_v0  ;;  %v2967_v51 = vmax.f32 %v10575_v48, %v2812_v34  ;;  %v7107_v46 = vpop.f32.mrb[142].mxu1  ;;  %v10578_v45 = vld [vmem:[#allocation16_spill] sm:$0xff] }
 0x1fc   :  { %v3048_v47 = vadd.f32 %v9286_v37, %v2969_v2  ;;  %v2970_v9 = vmax.f32 %v10576_v36, %v7107_v46  ;;  %v2815_v22 = vpop.f32.mrb[143].mxu1 }
 0x1fd   :  { %v3046_v62 = vadd.f32 %v9286_v37, %v2967_v51  ;;  %v2968_v17 = vmax.f32 %v10577_v5, %v2815_v22  ;;  %7165 = vmatmul.mubr.msk.bf16.gmra.mrb[144].mxu0 %vm3223_vm2, %v9515_v50 }
 0x1fe   :  { %v3049_v10 = vadd.f32 %v9286_v37, %v2970_v9  ;;  %7168 = vmatprep.mubr.msk.bf16.mxu0 %vm7924_vm1, %v10553_v28  ;;  %v3120_v20 = vmax.f32 %v3048_v47, 0.0 }
 0x1ff   :  { %v3047_v44 = vadd.f32 %v9286_v37, %v2968_v17  ;;  %v3118_v6 = vmax.f32 %v3046_v62, 0.0 }
 0x200   :  { %v3121_v12 = vmax.f32 %v3049_v10, 0.0 }
 0x201   :  { %v3119_v40 = vmax.f32 %v3047_v44, 0.0  ;;  %v7110_v42 = vpop.f32.mrb[144].mxu1 }
 0x202   :  { %v9574_v0 = vpack.c.bf16 %v3121_v12, %v3120_v20  ;;  %v2973_v11 = vmax.f32 %v10578_v45, %v7110_v42  ;;  %v2828_v30 = vpop.f32.mrb[145].mxu1 }
 0x203   :  { %v9577_v2 = vpack.c.bf16 %v3119_v40, %v3118_v6  ;;  %v2971_v50 = vmax.f32 %v9297_v26, %v2828_v30  ;;  %v7111_v34 = vpop.f32.mrb[146].mxu1 }
 0x204   :  { %v3052_v48 = vadd.f32 %v9286_v37, %v2973_v11  ;;  %v2974_v51 = vmax.f32 %v9304_v43, %v7111_v34  ;;  %v2831_v46 = vpop.f32.mrb[147].mxu1 }
 0x205   :  { %v3050_v47 = vadd.f32 %v9286_v37, %v2971_v50  ;;  %v2972_v36 = vmax.f32 %v9311_v27, %v2831_v46  ;;  %7169 = vmatmul.mubr.msk.bf16.gmra.mrb[148].mxu0 %vm3223_vm2, %v9531_v63 }
 0x206   :  { %v3053_v9 = vadd.f32 %v9286_v37, %v2974_v51  ;;  %7172 = vmatprep.mubr.msk.bf16.mxu0 %vm7924_vm1, %v10553_v28  ;;  %v3124_v22 = vmax.f32 %v3052_v48, 0.0 }
 0x207   :  { %v3051_v26 = vadd.f32 %v9286_v37, %v2972_v36  ;;  %v3122_v5 = vmax.f32 %v3050_v47, 0.0 }
 0x208   :  { %v3125_v62 = vmax.f32 %v3053_v9, 0.0 }
 0x209   :  { %v3123_v17 = vmax.f32 %v3051_v26, 0.0  ;;  %v7114_v43 = vpop.f32.mrb[148].mxu1 }
 0x20a   :  { %v9590_v10 = vpack.c.bf16 %v3125_v62, %v3124_v22  ;;  %v2977_v44 = vmax.f32 %v9321_v1, %v7114_v43  ;;  %v2844_v27 = vpop.f32.mrb[149].mxu1 }
 0x20b   :  { %v9593_v20 = vpack.c.bf16 %v3123_v17, %v3122_v5  ;;  %v2975_v63 = vmax.f32 %v9329_v13, %v2844_v27  ;;  %v7115_v12 = vpop.f32.mrb[150].mxu1 }
 0x20c   :  { %v3056_v6 = vadd.f32 %v9286_v37, %v2977_v44  ;;  %v2978_v40 = vmax.f32 %v9336_v41, %v7115_v12  ;;  %v2847_v42 = vpop.f32.mrb[151].mxu1 }
 0x20d   :  { %v3054_v45 = vadd.f32 %v9286_v37, %v2975_v63  ;;  %v2976_v11 = vmax.f32 %v9343_v19, %v2847_v42  ;;  %7173 = vmatmul.mubr.msk.bf16.gmra.mrb[152].mxu0 %vm3223_vm2, %v9528_v49  ;;  %v7867_v49 = vld [vmem:[%s10268_s3 + $0x40] sm:$0xff]  }
 0x20e   :  { %v3057_v1 = vadd.f32 %v9286_v37, %v2978_v40  ;;  %7184 = vmatprep.mubr.msk.bf16.mxu0 %vm7924_vm1, %v10553_v28  ;;  %v3128_v30 = vmax.f32 %v3056_v6, 0.0  ;;  %v7869_v40 = vld [vmem:[%s10268_s3 + $0x50] sm:$0xff]  }
 0x20f   :  { %v3055_v13 = vadd.f32 %v9286_v37, %v2976_v11  ;;  %v3126_v34 = vmax.f32 %v3054_v45, 0.0 }
 0x210   :  { %v3129_v50 = vmax.f32 %v3057_v1, 0.0 }
 0x211   :  { %v3127_v48 = vmax.f32 %v3055_v13, 0.0  ;;  %v7118_v41 = vpop.f32.mrb[152].mxu1 }
 0x212   :  { %v9606_v51 = vpack.c.bf16 %v3129_v50, %v3128_v30  ;;  %v2981_v46 = vmax.f32 %v9353_v35, %v7118_v41  ;;  %v2860_v19 = vpop.f32.mrb[153].mxu1 }
 0x213   :  { %v9612_v47 = vpack.c.bf16 %v3127_v48, %v3126_v34  ;;  %v2979_v36 = vmax.f32 %v9361_v24, %v2860_v19  ;;  %v7119_v9 = vpop.f32.mrb[154].mxu1  ;;  %v7868_v24 = vld [vmem:[%s10268_s3 + $0x48] sm:$0xff]  }
 0x214   :  { %v3060_v26 = vadd.f32 %v9286_v37, %v2981_v46  ;;  %v2982_v22 = vmax.f32 %v9368_v3, %v7119_v9  ;;  %v2863_v62 = vpop.f32.mrb[155].mxu1 }
 0x215   :  { %v3058_v5 = vadd.f32 %v9286_v37, %v2979_v36  ;;  %v2980_v17 = vmax.f32 %v9375_v55, %v2863_v62  ;;  %7185 = vmatmul.mubr.msk.bf16.vlgmr.msra.gmra.mrb[120].mxu0 %vm3223_vm2, %v9324_v33 }
 0x216   :  { %v3061_v35 = vadd.f32 %v9286_v37, %v2982_v22  ;;  %7221 = vmatpush3.bf16.msra.mxu0 %v7867_v49  ;;  %7188 = vmatprep.mubr.msk.bf16.mxu0 %vm7924_vm1, %v10553_v28  ;;  %v3132_v43 = vmax.f32 %v3060_v26, 0.0 }
 0x217   :  { %v3059_v3 = vadd.f32 %v9286_v37, %v2980_v17  ;;  %7222 = vmatprep.subr.bf16.mxu0 %v10553_v28  ;;  %v3130_v55 = vmax.f32 %v3058_v5, 0.0 }
 0x218   :  { %v3133_v44 = vmax.f32 %v3061_v35, 0.0 }
 0x219   :  { %v3131_v27 = vmax.f32 %v3059_v3, 0.0  ;;  %v7122_v63 = vpop.f32.mrb[156].mxu1 }
 0x21a   :  { %v9629_v33 = vpack.c.bf16 %v3133_v44, %v3132_v43  ;;  %v2985_v12 = vmax.f32 %v9385_v61, %v7122_v63  ;;  %v2876_v6 = vpop.f32.mrb[157].mxu1  ;;  %7223 = vmatpush3.bf16.msra.mxu0 %v7868_v24 }
 0x21b   :  { %v9635_v42 = vpack.c.bf16 %v3131_v27, %v3130_v55  ;;  %v2983_v45 = vmax.f32 %v9393_v4, %v2876_v6  ;;  %v7123_v11 = vpop.f32.mrb[158].mxu1  ;;  %7224 = vmatprep.subr.bf16.mxu0 %v10553_v28  ;;  %v7870_v4 = vld [vmem:[%s10268_s3 + $0x58] sm:$0xff]  }
 0x21c   :  { %v3064_v1 = vadd.f32 %v9286_v37, %v2985_v12  ;;  %v2986_v13 = vmax.f32 %v9400_v16, %v7123_v11  ;;  %v2879_v30 = vpop.f32.mrb[159].mxu1 }
 0x21d   :  { %v3062_v61 = vadd.f32 %v9286_v37, %v2983_v45  ;;  %v2984_v50 = vmax.f32 %v9407_v58, %v2879_v30  ;;  %7189 = vmatmul.mubr.msk.bf16.gmra.mrb[124].mxu0 %vm3223_vm2, %v9316_v8 }
 0x21e   :  { %v3065_v34 = vadd.f32 %v9286_v37, %v2986_v13  ;;  %7192 = vmatprep.mubr.msk.bf16.mxu0 %vm7924_vm1, %v10553_v28  ;;  %7225 = vmatpush3.bf16.msra.mxu0 %v7869_v40  ;;  %v3136_v48 = vmax.f32 %v3064_v1, 0.0 }
 0x21f   :  { %v3063_v16 = vadd.f32 %v9286_v37, %v2984_v50  ;;  %7226 = vmatprep.subr.bf16.mxu0 %v10553_v28  ;;  %v3134_v58 = vmax.f32 %v3062_v61, 0.0 }
 0x220   :  { %v3137_v41 = vmax.f32 %v3065_v34, 0.0 }
 0x221   :  { %v3135_v46 = vmax.f32 %v3063_v16, 0.0  ;;  %v7126_v19 = vpop.f32.mrb[160].mxu1 }
 0x222   :  { %v9653_v8 = vpack.c.bf16 %v3137_v41, %v3136_v48  ;;  %v2989_v49 = vmax.f32 %v9417_v60, %v7126_v19  ;;  %v2892_v36 = vpop.f32.mrb[161].mxu1  ;;  %7227 = vmatpush3.bf16.msra.mxu0 %v7870_v4 }
 0x223   :  { %v9656_v9 = vpack.c.bf16 %v3135_v46, %v3134_v58  ;;  %v2987_v26 = vmax.f32 %v9425_v14, %v2892_v36  ;;  %v7127_v22 = vpop.f32.mrb[162].mxu1  ;;  %7264 = vmatprep.subr.bf16.mxu0 %v10553_v28 }
 0x224   :  { %v3068_v62 = vadd.f32 %v9286_v37, %v2989_v49  ;;  %v2990_v5 = vmax.f32 %v9432_v39, %v7127_v22  ;;  %v2895_v17 = vpop.f32.mrb[163].mxu1 }
 0x225   :  { %v3066_v35 = vadd.f32 %v9286_v37, %v2987_v26  ;;  %v2988_v24 = vmax.f32 %v9439_v31, %v2895_v17  ;;  %7193 = vmatmul.mubr.msk.bf16.gmra.mrb[128].mxu0 %vm3223_vm2, %v9356_v21 }
 0x226   :  { %v3069_v60 = vadd.f32 %v9286_v37, %v2990_v5  ;;  %7196 = vmatprep.mubr.msk.bf16.mxu0 %vm7924_vm1, %v10553_v28  ;;  %v3140_v3 = vmax.f32 %v3068_v62, 0.0 }
 0x227   :  { %v3067_v14 = vadd.f32 %v9286_v37, %v2988_v24  ;;  %v3138_v44 = vmax.f32 %v3066_v35, 0.0 }
 0x228   :  { %v3141_v43 = vmax.f32 %v3069_v60, 0.0 }
 0x229   :  { %v3139_v55 = vmax.f32 %v3067_v14, 0.0  ;;  %v7130_v39 = vpop.f32.mrb[164].mxu1 }
 0x22a   :  { %v9670_v27 = vpack.c.bf16 %v3141_v43, %v3140_v3  ;;  %v2993_v63 = vmax.f32 %v9450_v7, %v7130_v39  ;;  %v2908_v31 = vpop.f32.mrb[165].mxu1 }
 0x22b   :  { %v9673_v12 = vpack.c.bf16 %v3139_v55, %v3138_v44  ;;  %v2991_v21 = vmax.f32 %v9458_v38, %v2908_v31  ;;  %v7131_v6 = vpop.f32.mrb[166].mxu1 }
 0x22c   :  { %v3072_v40 = vadd.f32 %v9286_v37, %v2993_v63  ;;  %v2994_v45 = vmax.f32 %v9465_v18, %v7131_v6  ;;  %v2911_v11 = vpop.f32.mrb[167].mxu1 }
 0x22d   :  { %v3070_v1 = vadd.f32 %v9286_v37, %v2991_v21  ;;  %v2992_v13 = vmax.f32 %v9473_v32, %v2911_v11  ;;  %7197 = vmatmul.mubr.msk.bf16.gmra.mrb[132].mxu0 %vm3223_vm2, %v9348_v54  ;;  %v7872_v54 = vld [vmem:[%s10268_s3 + $0x68] sm:$0xff]  }
 0x22e   :  { %v3073_v7 = vadd.f32 %v9286_v37, %v2994_v45  ;;  %7200 = vmatprep.mubr.msk.bf16.mxu0 %vm7924_vm1, %v10553_v28  ;;  %v3144_v30 = vmax.f32 %v3072_v40, 0.0 }
 0x22f   :  { %v3071_v38 = vadd.f32 %v9286_v37, %v2992_v13  ;;  %v3142_v50 = vmax.f32 %v3070_v1, 0.0  ;;  %v7871_v37 = vld [vmem:[%s10268_s3 + $0x60] sm:$0xff]  }
 0x230   :  { %v3145_v61 = vmax.f32 %v3073_v7, 0.0 }
 0x231   :  { %v3143_v34 = vmax.f32 %v3071_v38, 0.0 }
 0x232   :  { %v3181_v18 = vpack.c.bf16 %v3145_v61, %v3144_v30 }
 0x233   :  { %v3180_v4 = vpack.c.bf16 %v3143_v34, %v3142_v50 }
 0x235   :  { %7201 = vmatmul.mubr.msk.bf16.gmra.mrb[136].mxu0 %vm3223_vm2, %v9388_v25  ;;  %v7874_v25 = vld [vmem:[%s10268_s3 + $0x78] sm:$0xff]  }
 0x236   :  { %7204 = vmatprep.mubr.msk.bf16.mxu0 %vm7924_vm1, %v10553_v28 }
 0x23d   :  { %7205 = vmatmul.mubr.msk.bf16.gmra.mrb[140].mxu0 %vm3223_vm2, %v9380_v56  ;;  %v7873_v56 = vld [vmem:[%s10268_s3 + $0x70] sm:$0xff]  }
 0x23e   :  { %7208 = vmatprep.mubr.msk.bf16.mxu0 %vm7924_vm1, %v10553_v28 }
 0x245   :  { %7209 = vmatmul.mubr.msk.bf16.gmra.mrb[144].mxu0 %vm3223_vm2, %v9420_v29  ;;  %v7876_v29 = vld [vmem:[%s10270_s5 + $0x8] sm:$0xff]  }
 0x246   :  { %7212 = vmatprep.mubr.msk.bf16.mxu0 %vm7924_vm1, %v10553_v28 }
 0x24d   :  { %7213 = vmatmul.mubr.msk.bf16.gmra.mrb[148].mxu0 %vm3223_vm2, %v9412_v15  ;;  %v7875_v15 = vld [vmem:[%s10270_s5] sm:$0xff]  }
 0x24e   :  { %7216 = vmatprep.mubr.msk.bf16.mxu0 %vm7924_vm1, %v10553_v28  ;;  %7309 = vmatpush3.bf16.msra.mxu1 %v7875_v15 }
 0x24f   :  { %7310 = vmatprep.subr.bf16.mxu1 %v10553_v28 }
 0x252   :  { %7311 = vmatpush3.bf16.msra.mxu1 %v7876_v29 }
 0x253   :  { %7316 = vmatprep.subr.bf16.mxu1 %v10553_v28 }
 0x255   :  { %7217 = vmatmul.mubr.msk.bf16.gmra.mrb[152].mxu0 %vm3223_vm2, %v9453_v59 }
 0x256   :  { %7228 = vmatprep.mubr.msk.bf16.mxu0 %vm7924_vm1, %v10553_v28 }
 0x25d   :  { %7229 = vmatmul.mubr.msk.bf16.vlgmr.msra.gmra.mrb[120].mxu0 %vm3223_vm2, %v9546_v57 }
 0x25e   :  { %7265 = vmatpush3.bf16.msra.mxu0 %v7871_v37  ;;  %7232 = vmatprep.mubr.msk.bf16.mxu0 %vm7924_vm1, %v10553_v28 }
 0x25f   :  { %7266 = vmatprep.subr.bf16.mxu0 %v10553_v28 }
 0x262   :  { %7267 = vmatpush3.bf16.msra.mxu0 %v7872_v54 }
 0x263   :  { %7268 = vmatprep.subr.bf16.mxu0 %v10553_v28 }
 0x265   :  { %7233 = vmatmul.mubr.msk.bf16.gmra.mrb[124].mxu0 %vm3223_vm2, %v9543_v52 }
 0x266   :  { %7236 = vmatprep.mubr.msk.bf16.mxu0 %vm7924_vm1, %v10553_v28  ;;  %7269 = vmatpush3.bf16.msra.mxu0 %v7873_v56 }
 0x267   :  { %7270 = vmatprep.subr.bf16.mxu0 %v10553_v28 }
 0x26a   :  { %7271 = vmatpush3.bf16.msra.mxu0 %v7874_v25 }
 0x26d   :  { %7237 = vmatmul.mubr.msk.bf16.gmra.mrb[128].mxu0 %vm3223_vm2, %v9561_v53 }
 0x26e   :  { %7240 = vmatprep.mubr.msk.bf16.mxu0 %vm7924_vm1, %v10553_v28 }
 0x275   :  { %7241 = vmatmul.mubr.msk.bf16.gmra.mrb[132].mxu0 %vm3223_vm2, %v9558_v23 }
 0x276   :  { %7244 = vmatprep.mubr.msk.bf16.mxu0 %vm7924_vm1, %v10553_v28 }
 0x27d   :  { %7245 = vmatmul.mubr.msk.bf16.gmra.mrb[136].mxu0 %vm3223_vm2, %v9577_v2 }
 0x27e   :  { %7248 = vmatprep.mubr.msk.bf16.mxu0 %vm7924_vm1, %v10553_v28 }
 0x285   :  { %7249 = vmatmul.mubr.msk.bf16.gmra.mrb[140].mxu0 %vm3223_vm2, %v9574_v0 }
 0x286   :  { %7252 = vmatprep.mubr.msk.bf16.mxu0 %vm7924_vm1, %v10553_v28 }
 0x28d   :  { %7253 = vmatmul.mubr.msk.bf16.gmra.mrb[144].mxu0 %vm3223_vm2, %v9593_v20 }
 0x28e   :  { %7256 = vmatprep.mubr.msk.bf16.mxu0 %vm7924_vm1, %v10553_v28 }
 0x295   :  { %7257 = vmatmul.mubr.msk.bf16.gmra.mrb[148].mxu0 %vm3223_vm2, %v9590_v10 }
 0x296   :  { %7260 = vmatprep.mubr.msk.bf16.mxu0 %vm7924_vm1, %v10553_v28 }
 0x29d   :  { %7261 = vmatmul.mubr.msk.bf16.gmra.mrb[152].mxu0 %vm3223_vm2, %v9612_v47 }
 0x29e   :  { %7272 = vmatprep.mubr.msk.bf16.mxu0 %vm7924_vm1, %v10553_v28 }
 0x2a5   :  { %7273 = vmatmul.mubr.msk.bf16.vlgmr.msra.gmra.mrb[120].mxu0 %vm3223_vm2, %v9606_v51 }
 0x2a6   :  { %7276 = vmatprep.mubr.msk.bf16.mxu0 %vm7924_vm1, %v10553_v28 }
 0x2ad   :  { %7277 = vmatmul.mubr.msk.bf16.gmra.mrb[124].mxu0 %vm3223_vm2, %v9635_v42 }
 0x2ae   :  { %7280 = vmatprep.mubr.msk.bf16.mxu0 %vm7924_vm1, %v10553_v28 }
 0x2b5   :  { %7281 = vmatmul.mubr.msk.bf16.gmra.mrb[128].mxu0 %vm3223_vm2, %v9629_v33 }
 0x2b6   :  { %7284 = vmatprep.mubr.msk.bf16.mxu0 %vm7924_vm1, %v10553_v28 }
 0x2bd   :  { %7285 = vmatmul.mubr.msk.bf16.gmra.mrb[132].mxu0 %vm3223_vm2, %v9656_v9 }
 0x2be   :  { %7288 = vmatprep.mubr.msk.bf16.mxu0 %vm7924_vm1, %v10553_v28 }
 0x2c5   :  { %7289 = vmatmul.mubr.msk.bf16.gmra.mrb[136].mxu0 %vm3223_vm2, %v9653_v8 }
 0x2c6   :  { %7292 = vmatprep.mubr.msk.bf16.mxu0 %vm7924_vm1, %v10553_v28 }
 0x2cd   :  { %7293 = vmatmul.mubr.msk.bf16.gmra.mrb[140].mxu0 %vm3223_vm2, %v9673_v12 }
 0x2ce   :  { %7296 = vmatprep.mubr.msk.bf16.mxu0 %vm7924_vm1, %v10553_v28 }
 0x2d5   :  { %7297 = vmatmul.mubr.msk.bf16.gmra.mrb[144].mxu0 %vm3223_vm2, %v9670_v27 }
 0x2d6   :  { %7300 = vmatprep.mubr.msk.bf16.mxu0 %vm7924_vm1, %v10553_v28 }
 0x2dd   :  { %7301 = vmatmul.mubr.msk.bf16.gmra.mrb[148].mxu0 %vm3223_vm2, %v3180_v4 }
 0x2de   :  { %7304 = vmatprep.mubr.msk.bf16.mxu0 %vm7924_vm1, %v10553_v28 }
 0x2e5   :  { %7305 = vmatmul.mubr.msk.bf16.gmra.mrb[152].mxu0 %vm3223_vm2, %v3181_v18 }
 0x378   :  { %v9797_v59 = vpop.f32.mrb[120].mxu0 }
 0x379   :  { %v7274_v32 = vpop.f32.mrb[121].mxu0  ;;  %v3937_v57 = vrot.slane %v9797_v59, 1 }
 0x37a   :  { %v9799_v52 = vpop.f32.mrb[122].mxu0 }
 0x37b   :  { %v3938_v23 = vrot.slane %v9799_v52, 1  ;;  %v7275_v53 = vpop.f32.mrb[123].mxu0 }
 0x37d   :  { %v3939_v0 = vsel %vm3936_vm3, %v3937_v57, %v3938_v23 }
 0x37e   :  { %3961 = vrot.lane.b32.xlu0 %v3939_v0, %s7925_s15 }
 0x380   :  { %v9807_v2 = vpop.f32.mrb[124].mxu0 }
 0x381   :  { %4057 = vrot.lane.b32.xlu1 %v9807_v2, %s7926_s16  ;;  %v7278_v10 = vpop.f32.mrb[125].mxu0  ;;  %v3940_v51 = vrot.slane %v9807_v2, 1 }
 0x382   :  { %v9811_v20 = vpop.f32.mrb[126].mxu0 }
 0x383   :  { %v9815_v47 = vrot.slane %v9811_v20, 1  ;;  %v7279_v33 = vpop.f32.mrb[127].mxu0 }
 0x385   :  { %v3942_v42 = vsel %vm3936_vm3, %v3940_v51, %v9815_v47 }
 0x386   :  { %3965 = vrot.lane.b32.xlu0 %v3942_v42, %s7925_s15 }
 0x388   :  { %v9820_v16 = vpop.f32.mrb[128].mxu0 }
 0x389   :  { %4061 = vrot.lane.b32.xlu1 %v9820_v16, %s7926_s16  ;;  %v7282_v48 = vpop.f32.mrb[129].mxu0  ;;  %v3943_v58 = vrot.slane %v9820_v16, 1 }
 0x38a   :  { %4145 = vrot.lane.b32.xlu0 %v3942_v42, %s7927_s17  ;;  %v9825_v41 = vpop.f32.mrb[130].mxu0  ;;  %v9935_v42 = vld [vmem:[%s10271_s4] ss:$0 sm:$0xff] }
 0x38b   :  { %v9829_v46 = vrot.slane %v9825_v41, 1  ;;  %v7283_v19 = vpop.f32.mrb[131].mxu0 }
 0x38d   :  { %v3945_v8 = vsel %vm3936_vm3, %v3943_v58, %v9829_v46 }
 0x38e   :  { %3969 = vrot.lane.b32.xlu0 %v3945_v8, %s7925_s15  ;;  %4149 = vrot.lane.b32.xlu1 %v3945_v8, %s7927_s17 }
 0x390   :  { %v9835_v49 = vpop.f32.mrb[132].mxu0 }
 0x391   :  { %v7286_v36 = vpop.f32.mrb[133].mxu0  ;;  %v3946_v26 = vrot.slane %v9835_v49, 1 }
 0x392   :  { %4065 = vrot.lane.b32.xlu0 %v9835_v49, %s7926_s16  ;;  %v9839_v9 = vpop.f32.mrb[134].mxu0 }
 0x393   :  { %v3947_v22 = vrot.slane %v9839_v9, 1  ;;  %v7287_v62 = vpop.f32.mrb[135].mxu0 }
 0x395   :  { %v3948_v5 = vsel %vm3936_vm3, %v3946_v26, %v3947_v22 }
 0x396   :  { %4153 = vrot.lane.b32.xlu0 %v3948_v5, %s7927_s17  ;;  %3973 = vrot.lane.b32.xlu1 %v3948_v5, %s7925_s15 }
 0x398   :  { %v9846_v17 = vpop.f32.mrb[136].mxu0 }
 0x399   :  { %v7290_v35 = vpop.f32.mrb[137].mxu0  ;;  %v3949_v60 = vrot.slane %v9846_v17, 1 }
 0x39a   :  { %4069 = vrot.lane.b32.xlu1 %v9846_v17, %s7926_s16  ;;  %v9850_v24 = vpop.f32.mrb[138].mxu0 }
 0x39b   :  { %v3950_v14 = vrot.slane %v9850_v24, 1  ;;  %v7291_v3 = vpop.f32.mrb[139].mxu0 }
 0x39d   :  { %v3951_v43 = vsel %vm3936_vm3, %v3949_v60, %v3950_v14 }
 0x39e   :  { %3977 = vrot.lane.b32.xlu0 %v3951_v43, %s7925_s15  ;;  %4157 = vrot.lane.b32.xlu1 %v3951_v43, %s7927_s17 }
 0x3a0   :  { %v9857_v44 = vpop.f32.mrb[140].mxu0 }
 0x3a1   :  { %v7294_v55 = vpop.f32.mrb[141].mxu0  ;;  %v3952_v27 = vrot.slane %v9857_v44, 1 }
 0x3a2   :  { %4073 = vrot.lane.b32.xlu0 %v9857_v44, %s7926_s16  ;;  %v9861_v39 = vpop.f32.mrb[142].mxu0  ;;  %v7877_v55 = vld [vmem:[%s10270_s5 + $0x10] sm:$0xff]  }
 0x3a3   :  { %v3953_v63 = vrot.slane %v9861_v39, 1  ;;  %v7295_v31 = vpop.f32.mrb[143].mxu0 }
 0x3a5   :  { %v3954_v12 = vsel %vm3936_vm3, %v3952_v27, %v3953_v63 }
 0x3a6   :  { %4161 = vrot.lane.b32.xlu0 %v3954_v12, %s7927_s17  ;;  %3981 = vrot.lane.b32.xlu1 %v3954_v12, %s7925_s15 }
 0x3a8   :  { %v9868_v21 = vpop.f32.mrb[144].mxu0 }
 0x3a9   :  { %v7298_v6 = vpop.f32.mrb[145].mxu0  ;;  %v3955_v45 = vrot.slane %v9868_v21, 1 }
 0x3aa   :  { %4077 = vrot.lane.b32.xlu1 %v9868_v21, %s7926_s16  ;;  %v9872_v40 = vpop.f32.mrb[146].mxu0 }
 0x3ab   :  { %v3956_v11 = vrot.slane %v9872_v40, 1  ;;  %v7299_v1 = vpop.f32.mrb[147].mxu0 }
 0x3ad   :  { %v3957_v13 = vsel %vm3936_vm3, %v3955_v45, %v3956_v11  ;;  %v7878_v45 = vld [vmem:[%s10270_s5 + $0x18] sm:$0xff]  }
 0x3ae   :  { %3985 = vrot.lane.b32.xlu0 %v3957_v13, %s7925_s15  ;;  %4165 = vrot.lane.b32.xlu1 %v3957_v13, %s7927_s17 }
 0x3b0   :  { %v9879_v7 = vpop.f32.mrb[148].mxu0 }
 0x3b1   :  { %v7302_v38 = vpop.f32.mrb[149].mxu0  ;;  %v3958_v61 = vrot.slane %v9879_v7, 1 }
 0x3b2   :  { %4081 = vrot.lane.b32.xlu0 %v9879_v7, %s7926_s16  ;;  %v9883_v30 = vpop.f32.mrb[150].mxu0 }
 0x3b3   :  { %v3959_v50 = vrot.slane %v9883_v30, 1  ;;  %v7303_v34 = vpop.f32.mrb[151].mxu0 }
 0x3b5   :  { %v3960_v18 = vsel %vm3936_vm3, %v3958_v61, %v3959_v50 }
 0x3b6   :  { %4169 = vrot.lane.b32.xlu0 %v3960_v18, %s7927_s17  ;;  %3989 = vrot.lane.b32.xlu1 %v3960_v18, %s7925_s15 }
 0x3b8   :  { %v3853_v4 = vpop.f32.mrb[152].mxu0 }
 0x3b9   :  { %v7306_v37 = vpop.f32.mrb[153].mxu0  ;;  %v4142_v56 = vrot.slane %v3853_v4, 1 }
 0x3ba   :  { %3963 = vrot.lane.b32.xlu0 %v3938_v23, %s7925_s15  ;;  %4085 = vrot.lane.b32.xlu1 %v3853_v4, %s7926_s16  ;;  %v3856_v54 = vpop.f32.mrb[154].mxu0 }
 0x3bb   :  { %v4143_v25 = vrot.slane %v3856_v54, 1  ;;  %v7307_v15 = vpop.f32.mrb[155].mxu0 }
 0x3bc   :  { %v7879_v15 = vld [vmem:[%s10270_s5 + $0x20] sm:$0xff]  }
 0x3bd   :  { %v4144_v29 = vsel %vm3936_vm3, %v4142_v56, %v4143_v25 }
 0x3be   :  { %4059 = vrot.lane.b32.xlu0 %v9811_v20, %s7926_s16  ;;  %4173 = vrot.lane.b32.xlu1 %v4144_v29, %s7927_s17 }
 0x3c2   :  { %4147 = vrot.lane.b32.xlu0 %v9815_v47, %s7927_s17  ;;  %3967 = vrot.lane.b32.xlu1 %v9815_v47, %s7925_s15 }
 0x3c6   :  { %3971 = vrot.lane.b32.xlu0 %v9829_v46, %s7925_s15  ;;  %4063 = vrot.lane.b32.xlu1 %v9825_v41, %s7926_s16 }
 0x3ca   :  { %4067 = vrot.lane.b32.xlu0 %v9839_v9, %s7926_s16  ;;  %4151 = vrot.lane.b32.xlu1 %v9829_v46, %s7927_s17 }
 0x3ce   :  { %4155 = vrot.lane.b32.xlu0 %v3947_v22, %s7927_s17  ;;  %3975 = vrot.lane.b32.xlu1 %v3947_v22, %s7925_s15 }
 0x3d2   :  { %3979 = vrot.lane.b32.xlu0 %v3950_v14, %s7925_s15  ;;  %4071 = vrot.lane.b32.xlu1 %v9850_v24, %s7926_s16 }
 0x3d6   :  { %4075 = vrot.lane.b32.xlu0 %v9861_v39, %s7926_s16  ;;  %4159 = vrot.lane.b32.xlu1 %v3950_v14, %s7927_s17 }
 0x3da   :  { %4163 = vrot.lane.b32.xlu0 %v3953_v63, %s7927_s17  ;;  %3983 = vrot.lane.b32.xlu1 %v3953_v63, %s7925_s15 }
 0x3de   :  { %3987 = vrot.lane.b32.xlu0 %v3956_v11, %s7925_s15  ;;  %4079 = vrot.lane.b32.xlu1 %v9872_v40, %s7926_s16 }
 0x3e2   :  { %4083 = vrot.lane.b32.xlu0 %v9883_v30, %s7926_s16  ;;  %4167 = vrot.lane.b32.xlu1 %v3956_v11, %s7927_s17 }
 0x3e6   :  { %4171 = vrot.lane.b32.xlu0 %v3959_v50, %s7927_s17  ;;  %3991 = vrot.lane.b32.xlu1 %v3959_v50, %s7925_s15 }
 0x3ea   :  { %4087 = vrot.lane.b32.xlu1 %v3856_v54, %s7926_s16 }
 0x3ee   :  { %4175 = vrot.lane.b32.xlu1 %v4143_v25, %s7927_s17 }
 0x3f0   :  { %v3962_v32 = vpop.permute.xlu0 %3961 }
 0x3f1   :  { %v4009_v57 = vadd.f32 %v3962_v32, %v9797_v59 }
 0x3f3   :  { %v4058_v23 = vpop.permute.xlu1 %4057 }
 0x3f4   :  { %v4105_v0 = vadd.f32 %v4058_v23, %v4009_v57 }
 0x3f8   :  { %v3966_v53 = vpop.permute.xlu0 %3965 }
 0x3f9   :  { %v4011_v10 = vadd.f32 %v3966_v53, %v9807_v2 }
 0x3fb   :  { %v4062_v51 = vpop.permute.xlu1 %4061 }
 0x3fc   :  { %v4146_v47 = vpop.permute.xlu0 %4145  ;;  %v4107_v48 = vadd.f32 %v4062_v51, %v4011_v10 }
 0x3fd   :  { %v4193_v33 = vadd.f32 %v4146_v47, %v4105_v0  ;;  %v7880_v0 = vld [vmem:[%s10270_s5 + $0x28] sm:$0xff]  }
 0x3ff   :  { %v4216_v19 = vadd.f32 %v9935_v42, %v4193_v33 }
 0x400   :  { %v3970_v58 = vpop.permute.xlu0 %3969  ;;  %v4150_v46 = vpop.permute.xlu1 %4149 }
 0x401   :  { %v4195_v8 = vadd.f32 %v4150_v46, %v4107_v48  ;;  %v4232_v26 = vmax.f32 %v4216_v19, 0.0  ;;  %v4013_v5 = vadd.f32 %v3970_v58, %v9820_v16 }
 0x403   :  { %v4218_v59 = vadd.f32 %v9935_v42, %v4195_v8 }
 0x404   :  { %v4066_v36 = vpop.permute.xlu0 %4065 }
 0x405   :  { %v4234_v22 = vmax.f32 %v4218_v59, 0.0  ;;  %v4109_v3 = vadd.f32 %v4066_v36, %v4013_v5 }
 0x407   :  { %v4249_v2 = vmax.f32 %v4232_v26, %v4234_v22 }
 0x408   :  { %v3974_v62 = vpop.permute.xlu1 %3973  ;;  %v4154_v60 = vpop.permute.xlu0 %4153 }
 0x409   :  { %v4251_v35 = vrot.slane %v4249_v2, 1  ;;  %v4197_v63 = vadd.f32 %v4154_v60, %v4109_v3  ;;  %v4015_v31 = vadd.f32 %v3974_v62, %v9835_v49  ;;  %v7881_v62 = vld [vmem:[%s10270_s5 + $0x30] sm:$0xff]  }
 0x40b   :  { %v4253_v14 = vmax.f32 %v4249_v2, %v4251_v35  ;;  %v4220_v11 = vadd.f32 %v9935_v42, %v4197_v63 }
 0x40c   :  { %v4070_v43 = vpop.permute.xlu1 %4069 }
 0x40d   :  { %v9943_v27 = vpack.c.bf16 %v4253_v14, %v4253_v14  ;;  %v4111_v12 = vadd.f32 %v4070_v43, %v4015_v31  ;;  %v4236_v38 = vmax.f32 %v4220_v11, 0.0  ;;  %v7882_v43 = vld [vmem:[%s10270_s5 + $0x38] sm:$0xff]  }
 0x40f   :  { %7313 = vmatmul.mubr.msk.bf16.vlgmr.msra.gmra.mrb[168].mxu1 %vm4271_vm4, %v9943_v27 }
 0x410   :  { %v3978_v16 = vpop.permute.xlu0 %3977  ;;  %v4158_v6 = vpop.permute.xlu1 %4157  ;;  %7317 = vmatpush3.bf16.msra.mxu1 %v7877_v55  ;;  %7320 = vmatprep.mubr.msk.bf16.mxu1 %vm7924_vm1, %v10553_v28 }
 0x411   :  { %v4199_v1 = vadd.f32 %v4158_v6, %v4111_v12  ;;  %7318 = vmatprep.subr.bf16.mxu1 %v10553_v28  ;;  %v4017_v18 = vadd.f32 %v3978_v16, %v9846_v17 }
 0x413   :  { %v4222_v49 = vadd.f32 %v9935_v42, %v4199_v1 }
 0x414   :  { %v4074_v13 = vpop.permute.xlu0 %4073  ;;  %7319 = vmatpush3.bf16.msra.mxu1 %v7878_v45 }
 0x415   :  { %v4238_v61 = vmax.f32 %v4222_v49, 0.0  ;;  %7324 = vmatprep.subr.bf16.mxu1 %v10553_v28  ;;  %v4113_v56 = vadd.f32 %v4074_v13, %v4017_v18 }
 0x417   :  { %v4316_v50 = vmax.f32 %v4236_v38, %v4238_v61 }
 0x418   :  { %v3982_v34 = vpop.permute.xlu1 %3981  ;;  %v4162_v37 = vpop.permute.xlu0 %4161 }
 0x419   :  { %v4318_v4 = vrot.slane %v4316_v50, 1  ;;  %v4201_v32 = vadd.f32 %v4162_v37, %v4113_v56  ;;  %v4019_v57 = vadd.f32 %v3982_v34, %v9857_v44 }
 0x41b   :  { %v4320_v54 = vmax.f32 %v4316_v50, %v4318_v4  ;;  %v4224_v10 = vadd.f32 %v9935_v42, %v4201_v32 }
 0x41c   :  { %v4078_v25 = vpop.permute.xlu1 %4077 }
 0x41d   :  { %v9961_v29 = vpack.c.bf16 %v4320_v54, %v4320_v54  ;;  %v4115_v23 = vadd.f32 %v4078_v25, %v4019_v57  ;;  %v4240_v33 = vmax.f32 %v4224_v10, 0.0  ;;  %v7883_v54 = vld [vmem:[%s10270_s5 + $0x40] sm:$0xff]   ;;  %v7884_v57 = vld [vmem:[%s10270_s5 + $0x48] sm:$0xff]  }
 0x41f   :  { %7321 = vmatmul.mubr.msk.bf16.vlgmr.msra.gmra.mrb[168].mxu1 %vm4271_vm4, %v9961_v29 }
 0x420   :  { %v3986_v53 = vpop.permute.xlu0 %3985  ;;  %v4166_v17 = vpop.permute.xlu1 %4165  ;;  %7325 = vmatpush3.bf16.msra.mxu1 %v7879_v15  ;;  %7328 = vmatprep.mubr.msk.bf16.mxu1 %vm7924_vm1, %v10553_v28 }
 0x421   :  { %v4203_v51 = vadd.f32 %v4166_v17, %v4115_v23  ;;  %7326 = vmatprep.subr.bf16.mxu1 %v10553_v28  ;;  %v4021_v8 = vadd.f32 %v3986_v53, %v9868_v21 }
 0x423   :  { %v4226_v44 = vadd.f32 %v9935_v42, %v4203_v51 }
 0x424   :  { %v4082_v47 = vpop.permute.xlu0 %4081  ;;  %7327 = vmatpush3.bf16.msra.mxu1 %v7880_v0 }
 0x425   :  { %v4242_v48 = vmax.f32 %v4226_v44, 0.0  ;;  %7332 = vmatprep.subr.bf16.mxu1 %v10553_v28  ;;  %v4117_v26 = vadd.f32 %v4082_v47, %v4021_v8 }
 0x427   :  { %v4383_v58 = vmax.f32 %v4240_v33, %v4242_v48 }
 0x428   :  { %v4170_v46 = vpop.permute.xlu0 %4169  ;;  %v3990_v19 = vpop.permute.xlu1 %3989 }
 0x429   :  { %v4385_v59 = vrot.slane %v4383_v58, 1  ;;  %v4205_v35 = vadd.f32 %v4170_v46, %v4117_v26  ;;  %v4023_v60 = vadd.f32 %v3990_v19, %v9879_v7 }
 0x42b   :  { %v4387_v36 = vmax.f32 %v4383_v58, %v4385_v59  ;;  %v4228_v55 = vadd.f32 %v9935_v42, %v4205_v35  ;;  %v4523_v59 = vrot.slane %v9943_v27, 1 }
 0x42c   :  { %v3964_v22 = vpop.permute.xlu0 %3963  ;;  %v4086_v2 = vpop.permute.xlu1 %4085 }
 0x42d   :  { %v9979_v5 = vpack.c.bf16 %v4387_v36, %v4387_v36  ;;  %v4119_v14 = vadd.f32 %v4086_v2, %v4023_v60  ;;  %v4244_v16 = vmax.f32 %v4228_v55, 0.0  ;;  %v4010_v6 = vadd.f32 %v3964_v22, %v9799_v52  ;;  %v7886_v22 = vld [vmem:[%s10270_s5 + $0x58] sm:$0xff]  }
 0x42f   :  { %7329 = vmatmul.mubr.msk.bf16.vlgmr.msra.gmra.mrb[168].mxu1 %vm4271_vm4, %v9979_v5 }
 0x430   :  { %v4060_v3 = vpop.permute.xlu0 %4059  ;;  %v4174_v21 = vpop.permute.xlu1 %4173  ;;  %7333 = vmatpush3.bf16.msra.mxu1 %v7881_v62  ;;  %7336 = vmatprep.mubr.msk.bf16.mxu1 %vm7924_vm1, %v10553_v28 }
 0x431   :  { %v4207_v63 = vadd.f32 %v4174_v21, %v4119_v14  ;;  %7334 = vmatprep.subr.bf16.mxu1 %v10553_v28  ;;  %v4106_v11 = vadd.f32 %v4060_v3, %v4010_v6  ;;  %v4586_v6 = vrot.slane %v9961_v29, 1 }
 0x433   :  { %v4230_v7 = vadd.f32 %v9935_v42, %v4207_v63 }
 0x434   :  { %v4148_v31 = vpop.permute.xlu0 %4147  ;;  %v3968_v12 = vpop.permute.xlu1 %3967  ;;  %7335 = vmatpush3.bf16.msra.mxu1 %v7882_v43 }
 0x435   :  { %v4246_v45 = vmax.f32 %v4230_v7, 0.0  ;;  %7340 = vmatprep.subr.bf16.mxu1 %v10553_v28  ;;  %v4194_v61 = vadd.f32 %v4148_v31, %v4106_v11  ;;  %v4012_v50 = vadd.f32 %v3968_v12, %v9811_v20  ;;  %v7888_v11 = vld [vmem:[%s10270_s5 + $0x68] sm:$0xff]  }
 0x437   :  { %v4450_v1 = vmax.f32 %v4244_v16, %v4246_v45  ;;  %v4217_v56 = vadd.f32 %v9935_v42, %v4194_v61 }
 0x438   :  { %v3972_v49 = vpop.permute.xlu0 %3971  ;;  %v4064_v13 = vpop.permute.xlu1 %4063 }
 0x439   :  { %v4452_v38 = vrot.slane %v4450_v1, 1  ;;  %v4108_v18 = vadd.f32 %v4064_v13, %v4012_v50  ;;  %v4233_v23 = vmax.f32 %v4217_v56, 0.0  ;;  %v4014_v53 = vadd.f32 %v3972_v49, %v9825_v41  ;;  %v7885_v41 = vld [vmem:[%s10270_s5 + $0x50] sm:$0xff]  }
 0x43b   :  { %v4454_v34 = vmax.f32 %v4450_v1, %v4452_v38 }
 0x43c   :  { %v4068_v4 = vpop.permute.xlu0 %4067  ;;  %v4152_v37 = vpop.permute.xlu1 %4151 }
 0x43d   :  { %v9998_v52 = vpack.c.bf16 %v4454_v34, %v4454_v34  ;;  %v4196_v25 = vadd.f32 %v4152_v37, %v4108_v18  ;;  %v4110_v0 = vadd.f32 %v4068_v4, %v4014_v53 }
 0x43f   :  { %v4219_v15 = vadd.f32 %v9935_v42, %v4196_v25  ;;  %7337 = vmatmul.mubr.msk.bf16.vlgmr.msra.gmra.mrb[168].mxu1 %vm4271_vm4, %v9998_v52  ;;  %v4712_v53 = vrot.slane %v9998_v52, 1 }
 0x440   :  { %v4156_v32 = vpop.permute.xlu0 %4155  ;;  %7341 = vmatpush3.bf16.msra.mxu1 %v7883_v54  ;;  %v3976_v20 = vpop.permute.xlu1 %3975  ;;  %7344 = vmatprep.mubr.msk.bf16.mxu1 %vm7924_vm1, %v10553_v28 }
 0x441   :  { %v4235_v17 = vmax.f32 %v4219_v15, 0.0  ;;  %7342 = vmatprep.subr.bf16.mxu1 %v10553_v28  ;;  %v4198_v47 = vadd.f32 %v4156_v32, %v4110_v0  ;;  %v4016_v33 = vadd.f32 %v3976_v20, %v9839_v9  ;;  %v4649_v15 = vrot.slane %v9979_v5, 1  ;;  %v7893_v0 = vld [vmem:[%s10270_s5 + $0x90] sm:$0xff]  }
 0x443   :  { %v10011_v10 = vmax.f32 %v4233_v23, %v4235_v17  ;;  %v4221_v19 = vadd.f32 %v9935_v42, %v4198_v47  ;;  %v7892_v17 = vld [vmem:[%s10270_s5 + $0x88] sm:$0xff]   ;;  %v7895_v47 = vld [vmem:[%s10270_s5 + $0xa0] sm:$0xff]  }
 0x444   :  { %v3980_v51 = vpop.permute.xlu0 %3979  ;;  %v4072_v44 = vpop.permute.xlu1 %4071  ;;  %7343 = vmatpush3.bf16.msra.mxu1 %v7884_v57 }
 0x445   :  { %7348 = vmatprep.subr.bf16.mxu1 %v10553_v28  ;;  %v4112_v48 = vadd.f32 %v4072_v44, %v4016_v33  ;;  %v4237_v2 = vmax.f32 %v4221_v19, 0.0  ;;  %v4018_v62 = vadd.f32 %v3980_v51, %v9850_v24  ;;  %v7887_v24 = vld [vmem:[%s10270_s5 + $0x60] sm:$0xff]   ;;  %v4774_v51 = vrot.slane %v9943_v27, 2  ;;  %v7894_v44 = vld [vmem:[%s10270_s5 + $0x98] sm:$0xff]  }
 0x446   :  { %v4836_v33 = vrot.slane %v9961_v29, 2  ;;  %v7899_v19 = vld [vmem:[%s10270_s5 + $0xc0] sm:$0xff]  }
 0x448   :  { %v4076_v58 = vpop.permute.xlu0 %4075  ;;  %v4160_v46 = vpop.permute.xlu1 %4159 }
 0x449   :  { %v4200_v8 = vadd.f32 %v4160_v46, %v4112_v48  ;;  %v4114_v60 = vadd.f32 %v4076_v58, %v4018_v62  ;;  %v7896_v48 = vld [vmem:[%s10270_s5 + $0xa8] sm:$0xff]   ;;  %v7897_v58 = vld [vmem:[%s10270_s5 + $0xb0] sm:$0xff]   ;;  %v4898_v46 = vrot.slane %v9979_v5, 2 }
 0x44a   :  { %v7905_v62 = vld [vmem:[%s10270_s5 + $0xf0] sm:$0xff]  }
 0x44b   :  { %v4223_v36 = vadd.f32 %v9935_v42, %v4200_v8  ;;  %7345 = vmatmul.mubr.msk.bf16.vlgmr.msra.gmra.mrb[168].mxu1 %vm4271_vm4, %v4523_v59  ;;  %v4960_v8 = vrot.slane %v9998_v52, 2  ;;  %v7900_v59 = vld [vmem:[%s10270_s5 + $0xc8] sm:$0xff]  }
 0x44c   :  { %v4164_v26 = vpop.permute.xlu0 %4163  ;;  %7349 = vmatpush3.bf16.msra.mxu1 %v7885_v41  ;;  %v3984_v9 = vpop.permute.xlu1 %3983  ;;  %7352 = vmatprep.mubr.msk.bf16.mxu1 %vm7924_vm1, %v10553_v28  ;;  %v7898_v41 = vld [vmem:[%s10270_s5 + $0xb8] sm:$0xff]  }
 0x44d   :  { %v4239_v35 = vmax.f32 %v4223_v36, 0.0  ;;  %7350 = vmatprep.subr.bf16.mxu1 %v10553_v28  ;;  %v4202_v43 = vadd.f32 %v4164_v26, %v4114_v60  ;;  %v4020_v55 = vadd.f32 %v3984_v9, %v9861_v39  ;;  %v7901_v36 = vld [vmem:[%s10270_s5 + $0xd0] sm:$0xff]   ;;  %v5022_v26 = vrot.slane %v9943_v27, 3  ;;  %v7902_v9 = vld [vmem:[%s10270_s5 + $0xd8] sm:$0xff]   ;;  %v7907_v60 = vld [vmem:[%s10270_s5 + $0x100] sm:$0xff]  }
 0x44e   :  { %v5084_v27 = vrot.slane %v9961_v29, 3  ;;  %v5146_v29 = vrot.slane %v9979_v5, 3  ;;  %v5208_v5 = vrot.slane %v9998_v52, 3  ;;  %v7909_v52 = vld [vmem:[%s10270_s5 + $0x110] sm:$0xff]  }
 0x44f   :  { %v10029_v14 = vmax.f32 %v4237_v2, %v4239_v35  ;;  %v4225_v12 = vadd.f32 %v9935_v42, %v4202_v43  ;;  %v7904_v2 = vld [vmem:[%s10270_s5 + $0xe8] sm:$0xff]   ;;  %v7906_v35 = vld [vmem:[%s10270_s5 + $0xf8] sm:$0xff]  }
 0x450   :  { %v3988_v3 = vpop.permute.xlu0 %3987  ;;  %v4080_v21 = vpop.permute.xlu1 %4079  ;;  %7351 = vmatpush3.bf16.msra.mxu1 %v7886_v22  ;;  %v7903_v22 = vld [vmem:[%s10270_s5 + $0xe0] sm:$0xff]  }
 0x451   :  { %7356 = vmatprep.subr.bf16.mxu1 %v10553_v28  ;;  %v4116_v63 = vadd.f32 %v4080_v21, %v4020_v55  ;;  %v4241_v1 = vmax.f32 %v4225_v12, 0.0  ;;  %v4022_v49 = vadd.f32 %v3988_v3, %v9872_v40  ;;  %v7889_v40 = vld [vmem:[%s10270_s5 + $0x70] sm:$0xff]   ;;  %v7908_v3 = vld [vmem:[%s10270_s5 + $0x108] sm:$0xff]   ;;  %v5267_v21 = vrot.slane %v10011_v10, 1 }
 0x452   :  { %v7912_v12 = vld [vmem:[%s10270_s5 + $0x128] sm:$0xff]  }
 0x453   :  { %v5269_v43 = vmax.f32 %v10011_v10, %v5267_v21 }
 0x454   :  { %v4084_v7 = vpop.permute.xlu0 %4083  ;;  %v4168_v31 = vpop.permute.xlu1 %4167 }
 0x455   :  { %v4204_v16 = vadd.f32 %v4168_v31, %v4116_v63  ;;  %v4118_v61 = vadd.f32 %v4084_v7, %v4022_v49  ;;  %v5270_v55 = vpack.c.bf16 %v5269_v43, %v5269_v43  ;;  %v7910_v63 = vld [vmem:[%s10270_s5 + $0x118] sm:$0xff]   ;;  %v5334_v7 = vrot.slane %v10029_v14, 1  ;;  %v7911_v31 = vld [vmem:[%s10270_s5 + $0x120] sm:$0xff]  }
 0x456   :  { %v7915_v49 = vld [vmem:[%s10270_s5 + $0x140] sm:$0xff]  }
 0x457   :  { %v4227_v45 = vadd.f32 %v9935_v42, %v4204_v16  ;;  %7353 = vmatmul.mubr.msk.bf16.vlgmr.msra.gmra.mrb[168].mxu1 %vm4271_vm4, %v4586_v6  ;;  %v5336_v10 = vmax.f32 %v10029_v14, %v5334_v7  ;;  %v7913_v6 = vld [vmem:[%s10270_s5 + $0x130] sm:$0xff]  }
 0x458   :  { %7357 = vmatpush3.bf16.msra.mxu1 %v7887_v24  ;;  %v3992_v39 = vpop.permute.xlu1 %3991  ;;  %7360 = vmatprep.mubr.msk.bf16.mxu1 %vm7924_vm1, %v10553_v28  ;;  %v4172_v38 = vpop.permute.xlu0 %4171 }
 0x459   :  { %v4243_v13 = vmax.f32 %v4227_v45, 0.0  ;;  %7358 = vmatprep.subr.bf16.mxu1 %v10553_v28  ;;  %v4206_v18 = vadd.f32 %v4172_v38, %v4118_v61  ;;  %v4024_v4 = vadd.f32 %v3992_v39, %v9883_v30  ;;  %v7890_v30 = vld [vmem:[%s10270_s5 + $0x78] sm:$0xff]   ;;  %v5337_v24 = vpack.c.bf16 %v5336_v10, %v5336_v10  ;;  %v7916_v38 = vld [vmem:[%s10270_s5 + $0x148] sm:$0xff]   ;;  %v7917_v61 = vld [vmem:[%s10270_s5 + $0x150] sm:$0xff]  }
 0x45a   :  { %v7914_v39 = vld [vmem:[%s10270_s5 + $0x138] sm:$0xff]  }
 0x45b   :  { %v10047_v50 = vmax.f32 %v4241_v1, %v4243_v13  ;;  %v4229_v56 = vadd.f32 %v9935_v42, %v4206_v18  ;;  %v7919_v18 = vld [vmem:[%s10270_s5 + $0x160] sm:$0xff]  }
 0x45c   :  { %v4088_v34 = vpop.permute.xlu1 %4087  ;;  %7359 = vmatpush3.bf16.msra.mxu1 %v7888_v11 }
 0x45d   :  { %7364 = vmatprep.subr.bf16.mxu1 %v10553_v28  ;;  %v4120_v37 = vadd.f32 %v4088_v34, %v4024_v4  ;;  %v4245_v20 = vmax.f32 %v4229_v56, 0.0  ;;  %v5401_v16 = vrot.slane %v10047_v50, 1  ;;  %v7918_v34 = vld [vmem:[%s10270_s5 + $0x158] sm:$0xff]   ;;  %v5602_v4 = vrot.slane %v5337_v24, 1 }
 0x45e   :  { %v7922_v56 = vld [vmem:[%s10270_s5 + $0x178] sm:$0xff]  }
 0x45f   :  { %v5403_v14 = vmax.f32 %v10047_v50, %v5401_v16  ;;  %v5539_v50 = vrot.slane %v5270_v55, 1 }
 0x460   :  { %v4176_v54 = vpop.permute.xlu1 %4175 }
 0x461   :  { %v4208_v25 = vadd.f32 %v4176_v54, %v4120_v37  ;;  %v5404_v45 = vpack.c.bf16 %v5403_v14, %v5403_v14  ;;  %v7920_v37 = vld [vmem:[%s10270_s5 + $0x168] sm:$0xff]   ;;  %v7921_v54 = vld [vmem:[%s10270_s5 + $0x170] sm:$0xff]  }
 0x463   :  { %v4231_v32 = vadd.f32 %v9935_v42, %v4208_v25  ;;  %7361 = vmatmul.mubr.msk.bf16.vlgmr.msra.gmra.mrb[168].mxu1 %vm4271_vm4, %v4649_v15  ;;  %v7891_v42 = vld [vmem:[%s10270_s5 + $0x80] sm:$0xff]  }
 0x464   :  { %7365 = vmatpush3.bf16.msra.mxu1 %v7889_v40  ;;  %7368 = vmatprep.mubr.msk.bf16.mxu1 %vm7924_vm1, %v10553_v28  ;;  %v5665_v40 = vrot.slane %v5404_v45, 1  ;;  %v4248_v15 = vld [vmem:[%s10272_s6] sm:$0x1] }
 0x465   :  { %v4247_v57 = vmax.f32 %v4231_v32, 0.0  ;;  %7366 = vmatprep.subr.bf16.mxu1 %v10553_v28 }
 0x467   :  { %v10064_v23 = vmax.f32 %v4245_v20, %v4247_v57 }
 0x468   :  { %7367 = vmatpush3.bf16.msra.mxu1 %v7890_v30 }
 0x469   :  { %7372 = vmatprep.subr.bf16.mxu1 %v10553_v28  ;;  %v5468_v11 = vrot.slane %v10064_v23, 1 }
 0x46b   :  { %v5470_v1 = vmax.f32 %v10064_v23, %v5468_v11 }
 0x46d   :  { %v5471_v13 = vpack.c.bf16 %v5470_v1, %v5470_v1 }
 0x46f   :  { %7369 = vmatmul.mubr.msk.bf16.vlgmr.msra.gmra.mrb[168].mxu1 %vm4271_vm4, %v4712_v53  ;;  %v5728_v25 = vrot.slane %v5471_v13, 1 }
 0x470   :  { %7373 = vmatpush3.bf16.msra.mxu1 %v7891_v42  ;;  %7376 = vmatprep.mubr.msk.bf16.mxu1 %vm7924_vm1, %v10553_v28 }
 0x471   :  { %7374 = vmatprep.subr.bf16.mxu1 %v10553_v28 }
 0x474   :  { %7375 = vmatpush3.bf16.msra.mxu1 %v7892_v17 }
 0x475   :  { %7380 = vmatprep.subr.bf16.mxu1 %v10553_v28 }
 0x47b   :  { %7377 = vmatmul.mubr.msk.bf16.vlgmr.msra.gmra.mrb[168].mxu1 %vm4271_vm4, %v4774_v51 }
 0x47c   :  { %7381 = vmatpush3.bf16.msra.mxu1 %v7893_v0  ;;  %7384 = vmatprep.mubr.msk.bf16.mxu1 %vm7924_vm1, %v10553_v28 }
 0x47d   :  { %7382 = vmatprep.subr.bf16.mxu1 %v10553_v28 }
 0x480   :  { %7383 = vmatpush3.bf16.msra.mxu1 %v7894_v44 }
 0x481   :  { %7388 = vmatprep.subr.bf16.mxu1 %v10553_v28 }
 0x487   :  { %7385 = vmatmul.mubr.msk.bf16.vlgmr.msra.gmra.mrb[168].mxu1 %vm4271_vm4, %v4836_v33 }
 0x488   :  { %7389 = vmatpush3.bf16.msra.mxu1 %v7895_v47  ;;  %7392 = vmatprep.mubr.msk.bf16.mxu1 %vm7924_vm1, %v10553_v28 }
 0x489   :  { %7390 = vmatprep.subr.bf16.mxu1 %v10553_v28 }
 0x48c   :  { %7391 = vmatpush3.bf16.msra.mxu1 %v7896_v48 }
 0x48d   :  { %7396 = vmatprep.subr.bf16.mxu1 %v10553_v28 }
 0x493   :  { %7393 = vmatmul.mubr.msk.bf16.vlgmr.msra.gmra.mrb[168].mxu1 %vm4271_vm4, %v4898_v46 }
 0x494   :  { %7397 = vmatpush3.bf16.msra.mxu1 %v7897_v58  ;;  %7400 = vmatprep.mubr.msk.bf16.mxu1 %vm7924_vm1, %v10553_v28 }
 0x495   :  { %7398 = vmatprep.subr.bf16.mxu1 %v10553_v28 }
 0x498   :  { %7399 = vmatpush3.bf16.msra.mxu1 %v7898_v41 }
 0x499   :  { %7404 = vmatprep.subr.bf16.mxu1 %v10553_v28 }
 0x49f   :  { %7401 = vmatmul.mubr.msk.bf16.vlgmr.msra.gmra.mrb[168].mxu1 %vm4271_vm4, %v4960_v8 }
 0x4a0   :  { %7405 = vmatpush3.bf16.msra.mxu1 %v7899_v19  ;;  %7408 = vmatprep.mubr.msk.bf16.mxu1 %vm7924_vm1, %v10553_v28 }
 0x4a1   :  { %7406 = vmatprep.subr.bf16.mxu1 %v10553_v28 }
 0x4a4   :  { %7407 = vmatpush3.bf16.msra.mxu1 %v7900_v59 }
 0x4a5   :  { %7412 = vmatprep.subr.bf16.mxu1 %v10553_v28 }
 0x4ab   :  { %7409 = vmatmul.mubr.msk.bf16.vlgmr.msra.gmra.mrb[168].mxu1 %vm4271_vm4, %v5022_v26 }
 0x4ac   :  { %7413 = vmatpush3.bf16.msra.mxu1 %v7901_v36  ;;  %7416 = vmatprep.mubr.msk.bf16.mxu1 %vm7924_vm1, %v10553_v28 }
 0x4ad   :  { %7414 = vmatprep.subr.bf16.mxu1 %v10553_v28 }
 0x4b0   :  { %7415 = vmatpush3.bf16.msra.mxu1 %v7902_v9 }
 0x4b1   :  { %7420 = vmatprep.subr.bf16.mxu1 %v10553_v28 }
 0x4b7   :  { %7417 = vmatmul.mubr.msk.bf16.vlgmr.msra.gmra.mrb[168].mxu1 %vm4271_vm4, %v5084_v27 }
 0x4b8   :  { %7421 = vmatpush3.bf16.msra.mxu1 %v7903_v22  ;;  %7424 = vmatprep.mubr.msk.bf16.mxu1 %vm7924_vm1, %v10553_v28 }
 0x4b9   :  { %7422 = vmatprep.subr.bf16.mxu1 %v10553_v28 }
 0x4bc   :  { %7423 = vmatpush3.bf16.msra.mxu1 %v7904_v2 }
 0x4bd   :  { %7428 = vmatprep.subr.bf16.mxu1 %v10553_v28 }
 0x4c3   :  { %7425 = vmatmul.mubr.msk.bf16.vlgmr.msra.gmra.mrb[168].mxu1 %vm4271_vm4, %v5146_v29 }
 0x4c4   :  { %7429 = vmatpush3.bf16.msra.mxu1 %v7905_v62  ;;  %7432 = vmatprep.mubr.msk.bf16.mxu1 %vm7924_vm1, %v10553_v28 }
 0x4c5   :  { %7430 = vmatprep.subr.bf16.mxu1 %v10553_v28 }
 0x4c8   :  { %7431 = vmatpush3.bf16.msra.mxu1 %v7906_v35 }
 0x4c9   :  { %7436 = vmatprep.subr.bf16.mxu1 %v10553_v28 }
 0x4cf   :  { %7433 = vmatmul.mubr.msk.bf16.vlgmr.msra.gmra.mrb[168].mxu1 %vm4271_vm4, %v5208_v5 }
 0x4d0   :  { %7437 = vmatpush3.bf16.msra.mxu1 %v7907_v60  ;;  %7440 = vmatprep.mubr.msk.bf16.mxu1 %vm7924_vm1, %v10553_v28 }
 0x4d1   :  { %7438 = vmatprep.subr.bf16.mxu1 %v10553_v28 }
 0x4d4   :  { %7439 = vmatpush3.bf16.msra.mxu1 %v7908_v3 }
 0x4d5   :  { %7444 = vmatprep.subr.bf16.mxu1 %v10553_v28 }
 0x4db   :  { %7441 = vmatmul.mubr.msk.bf16.vlgmr.msra.gmra.mrb[168].mxu1 %vm4271_vm4, %v5270_v55 }
 0x4dc   :  { %7445 = vmatpush3.bf16.msra.mxu1 %v7909_v52  ;;  %7448 = vmatprep.mubr.msk.bf16.mxu1 %vm7924_vm1, %v10553_v28 }
 0x4dd   :  { %7446 = vmatprep.subr.bf16.mxu1 %v10553_v28 }
 0x4e0   :  { %7447 = vmatpush3.bf16.msra.mxu1 %v7910_v63 }
 0x4e1   :  { %7452 = vmatprep.subr.bf16.mxu1 %v10553_v28 }
 0x4e7   :  { %7449 = vmatmul.mubr.msk.bf16.vlgmr.msra.gmra.mrb[168].mxu1 %vm4271_vm4, %v5337_v24 }
 0x4e8   :  { %7453 = vmatpush3.bf16.msra.mxu1 %v7911_v31  ;;  %7456 = vmatprep.mubr.msk.bf16.mxu1 %vm7924_vm1, %v10553_v28 }
 0x4e9   :  { %7454 = vmatprep.subr.bf16.mxu1 %v10553_v28 }
 0x4ec   :  { %7455 = vmatpush3.bf16.msra.mxu1 %v7912_v12 }
 0x4ed   :  { %7460 = vmatprep.subr.bf16.mxu1 %v10553_v28 }
 0x4f3   :  { %7457 = vmatmul.mubr.msk.bf16.vlgmr.msra.gmra.mrb[168].mxu1 %vm4271_vm4, %v5404_v45 }
 0x4f4   :  { %7461 = vmatpush3.bf16.msra.mxu1 %v7913_v6  ;;  %7464 = vmatprep.mubr.msk.bf16.mxu1 %vm7924_vm1, %v10553_v28 }
 0x4f5   :  { %7462 = vmatprep.subr.bf16.mxu1 %v10553_v28 }
 0x4f8   :  { %7463 = vmatpush3.bf16.msra.mxu1 %v7914_v39 }
 0x4f9   :  { %7468 = vmatprep.subr.bf16.mxu1 %v10553_v28 }
 0x4ff   :  { %7465 = vmatmul.mubr.msk.bf16.vlgmr.msra.gmra.mrb[168].mxu1 %vm4271_vm4, %v5471_v13 }
 0x500   :  { %7469 = vmatpush3.bf16.msra.mxu1 %v7915_v49  ;;  %7472 = vmatprep.mubr.msk.bf16.mxu1 %vm7924_vm1, %v10553_v28 }
 0x501   :  { %7470 = vmatprep.subr.bf16.mxu1 %v10553_v28 }
 0x504   :  { %7471 = vmatpush3.bf16.msra.mxu1 %v7916_v38 }
 0x505   :  { %7476 = vmatprep.subr.bf16.mxu1 %v10553_v28 }
 0x50b   :  { %7473 = vmatmul.mubr.msk.bf16.vlgmr.msra.gmra.mrb[168].mxu1 %vm4271_vm4, %v5539_v50 }
 0x50c   :  { %7477 = vmatpush3.bf16.msra.mxu1 %v7917_v61  ;;  %7480 = vmatprep.mubr.msk.bf16.mxu1 %vm7924_vm1, %v10553_v28 }
 0x50d   :  { %7478 = vmatprep.subr.bf16.mxu1 %v10553_v28 }
 0x510   :  { %7479 = vmatpush3.bf16.msra.mxu1 %v7918_v34 }
 0x511   :  { %7484 = vmatprep.subr.bf16.mxu1 %v10553_v28 }
 0x517   :  { %7481 = vmatmul.mubr.msk.bf16.vlgmr.msra.gmra.mrb[168].mxu1 %vm4271_vm4, %v5602_v4 }
 0x518   :  { %7485 = vmatpush3.bf16.msra.mxu1 %v7919_v18  ;;  %7488 = vmatprep.mubr.msk.bf16.mxu1 %vm7924_vm1, %v10553_v28 }
 0x519   :  { %7486 = vmatprep.subr.bf16.mxu1 %v10553_v28 }
 0x51c   :  { %7487 = vmatpush3.bf16.msra.mxu1 %v7920_v37 }
 0x51d   :  { %7492 = vmatprep.subr.bf16.mxu1 %v10553_v28 }
 0x523   :  { %7489 = vmatmul.mubr.msk.bf16.vlgmr.msra.gmra.mrb[168].mxu1 %vm4271_vm4, %v5665_v40 }
 0x524   :  { %7493 = vmatpush3.bf16.msra.mxu1 %v7921_v54  ;;  %7496 = vmatprep.mubr.msk.bf16.mxu1 %vm7924_vm1, %v10553_v28 }
 0x525   :  { %7494 = vmatprep.subr.bf16.mxu1 %v10553_v28 }
 0x528   :  { %7495 = vmatpush3.bf16.msra.mxu1 %v7922_v56 }
 0x52f   :  { %7497 = vmatmul.mubr.msk.bf16.vlgmr.msra.gmra.mrb[168].mxu1 %vm4271_vm4, %v5728_v25 }
 0x602   :  { %v5778_v32 = vpop.f32.mrb[168].mxu1 }
 0x603   :  { %v7506_v30 = vadd.f32 %v5778_v32, %v4248_v15  ;;  %v7498_v20 = vpop.f32.mrb[169].mxu1 }
 0x604   :  { %v5781_v57 = vpop.f32.mrb[170].mxu1 }
 0x605   :  { %v5785_v23 = vmax.f32 %v7506_v30, 0.0  ;;  %v7499_v42 = vpop.f32.mrb[171].mxu1 }
 0x607   :  { %5786 = vst [vmem:[%s10273_s7] sm:$0x1] %v5785_v23 }

</bundles_post_ra>
